<compile_context>
chip_gen: v7x
topology: tpu7x:2x2x1
jax: 0.10.0
libtpu: 0.0.40
codegen_flags: <defaults>
</compile_context>

<pallas_src>
from typing import NamedTuple

import jax
import jax.numpy as jnp
from jax.experimental import pallas as pl
from jax.experimental.pallas import tpu as pltpu


_VMEM_TILE_BUDGET = 6 * 1024 * 1024     # target per-tile working set (bytes)
_VMEM_LIMIT_BYTES = 32 * 1024 * 1024    # explicit scoped-VMEM limit (v5e default is 16 MiB)


class _WideOut(NamedTuple):
    """Lane-dense kernel output (N, C, H*Wp) plus its static layout metadata."""
    wide: jax.Array
    h: int
    w: int
    wp: int


# ----------------------------------------------------------------------------
# Layout selection and wrapper-side input prep
# ----------------------------------------------------------------------------
def _choose_layout(h, w, d, k_total, cout):
    """Pick the wide row stride Wp and the number of output rows per grid tile."""
    def tile_bytes(rows, wp):
        m = rows * wp
        # im2col scratch (bf16) + f32 matmul result + bf16 out/residual blocks.
        return m * (2 * k_total + 4 * cout + 4 * cout)

    wp0 = w + 2 * d
    if tile_bytes(h, wp0) <= _VMEM_TILE_BUDGET:
        return wp0, h                       # whole image per tile, no lane padding
    # Large image: lane-align the row stride so row tiles are legal, unmasked
    # (8,128) blocks, then take the largest row count under the VMEM budget.
    wp = -(-wp0 // 128) * 128
    for rows in range(h, 0, -1):
        if h % rows == 0 and tile_bytes(rows, wp) <= _VMEM_TILE_BUDGET:
            return wp, rows
    return wp, 1


def _to_tiled_wide(x_nchw, d, wp, rows):
    """NCHW -> (N, num_tiles, C, slab) bf16 row-tile slabs.

    Each slab is the flattened, zero-padded rows [r*rows, r*rows + rows + 2d)
    (tile + conv halo) with row stride Wp, plus a 2d lane tail so every tap
    window inside the kernel is a static, in-bounds slice.  The whole chain
    (cast + pad + reshape + overlapping slice/stack) fuses into one XLA copy
    pass of ~(1 + 2d/rows)x the activation volume.
    """
    n, c, h, w = x_nchw.shape
    xp = jnp.pad(x_nchw.astype(jnp.bfloat16),
                 ((0, 0), (0, 0), (d, d), (d, wp - w - d)))
    xf = jnp.pad(xp.reshape(n, c, (h + 2 * d) * wp), ((0, 0), (0, 0), (0, 2 * d)))
    num_tiles = h // rows
    if num_tiles == 1:
        return xf[:, None]                                    # (n, 1, c, slab)
    m = rows * wp
    slab = m + 2 * d * wp + 2 * d
    return jnp.stack([xf[:, :, r * m: r * m + slab] for r in range(num_tiles)],
                     axis=1)


# ----------------------------------------------------------------------------
# Pallas kernel factory: fused (dilated 3x3 conv + folded BN + ReLU [+ residual])
# on one (batch, row-tile) block, with fused channel-concat via weight splitting.
# ----------------------------------------------------------------------------
def _make_conv_kernel(cins, d, wp, rows, has_residual):
    m = rows * wp
    num_inputs = len(cins)
    seg_len = m + 2 * d

    def kernel(*refs):
        x_refs = refs[:num_inputs]                 # (1, 1, Cin_i, slab) bf16
        w_ref = refs[num_inputs]                   # (Cout, 9*sum(cins)) bf16
        b_ref = refs[num_inputs + 1]               # (Cout, 1) f32
        r_ref = refs[num_inputs + 2] if has_residual else None
        o_ref = refs[-2]                           # (1, Cout, m) bf16
        col_ref = refs[-1]                         # (9*sum(cins), m) bf16 scratch

        # 1) im2col into the VMEM scratch.  Per input: 3 row-base loads (one per
        #    dy tap row, lane-aligned whenever Wp % 128 == 0); the +/-d column
        #    taps are static lane shifts of those values (XLU) instead of 9
        #    extra misaligned ref loads.
        row0 = 0
        for x_ref, cin in zip(x_refs, cins):
            for dy in range(3):
                seg = x_ref[0, 0, :, pl.ds(dy * d * wp, seg_len)]   # (cin, m+2d)
                for dx in range(3):
                    k = dy * 3 + dx
                    col_ref[pl.ds(row0 + k * cin, cin), :] = seg[:, dx * d:dx * d + m]
            row0 += 9 * cin

        # 2) one MXU matmul, contraction depth K = 9*sum(cins) (36..216), f32 acc.
        acc = jnp.dot(w_ref[...], col_ref[...], preferred_element_type=jnp.float32)

        # 3) f32 epilogue: bias + ReLU (+ fused residual), single cast at store.
        out = jnp.maximum(acc + b_ref[...], 0.0)
        if has_residual:
            out = out + r_ref[0].astype(jnp.float32)
        o_ref[0] = out.astype(o_ref.dtype)

    return kernel


# ----------------------------------------------------------------------------
# Wrapper around one REBNCONV pallas_call
# ----------------------------------------------------------------------------
def rebnconv_pallas(inputs, w_chunks, bias, dirate, residual=None):
    """Fused REBNCONV: 3x3 dilated conv + BN(eval, folded) + ReLU (+ residual).

    inputs   : list of NCHW activations sharing (N, H, W); a channel concat is
               fused by passing several inputs with per-input weight chunks.
    w_chunks : tuple of (Cout, 9*Cin_i) bf16 weights (BN folded), one per input.
    bias     : (Cout, 1) f32 effective bias.
    residual : optional _WideOut added after the ReLU (the `+ hxin` path).
    Returns (out_nchw bf16, _WideOut) so the wide output can later be fused as a
    residual without an HBM re-layout.
    """
    d = int(dirate)
    n, _, h, w = inputs[0].shape
    cout = int(bias.shape[0])
    cins = tuple(int(c.shape[1]) // 9 for c in w_chunks)
    k_total = 9 * sum(cins)
    assert len(inputs) == len(w_chunks)
    for x, cin in zip(inputs, cins):
        assert x.shape == (n, cin, h, w), (x.shape, (n, cin, h, w))

    wp, rows = _choose_layout(h, w, d, k_total, cout)
    num_tiles = h // rows
    m_tile = rows * wp
    m_full = h * wp

    w_packed = w_chunks[0] if len(w_chunks) == 1 else jnp.concatenate(w_chunks, axis=1)
    x_slabs = [_to_tiled_wide(x, d, wp, rows) for x in inputs]

    res_wide = None
    if residual is not None:
        assert (residual.h, residual.w) == (h, w), "residual spatial mismatch"
        assert residual.wide.shape[:2] == (n, cout), "residual channel mismatch"
        if residual.wp == wp:
            res_wide = residual.wide          # layouts match: fuse directly
        else:                                  # rare: producer picked another Wp
            r_nchw = residual.wide.reshape(n, cout, h, residual.wp)[:, :, :, :w]
            res_wide = jnp.pad(r_nchw, ((0, 0), (0, 0), (0, 0), (0, wp - w))
                               ).reshape(n, cout, m_full)

    kernel = _make_conv_kernel(cins, d, wp, rows, res_wide is not None)

    args, in_specs = [], []
    for xs in x_slabs:                       # per-tile input slab (halo included)
        args.append(xs)
        in_specs.append(pl.BlockSpec((1, 1) + xs.shape[2:], lambda b, r: (b, r, 0, 0)))
    args.append(w_packed)                    # weights / bias stay VMEM-resident
    in_specs.append(pl.BlockSpec(w_packed.shape, lambda b, r: (0, 0)))
    args.append(bias)
    in_specs.append(pl.BlockSpec(bias.shape, lambda b, r: (0, 0)))
    if res_wide is not None:
        args.append(res_wide)
        in_specs.append(pl.BlockSpec((1, cout, m_tile), lambda b, r: (b, 0, r)))

    # Advisory cost hint.  NOTE: sublane padding on <=8-channel operands makes
    # real HBM traffic somewhat larger than this raw byte count.
    flops = 2 * n * m_full * cout * k_total
    bytes_accessed = sum(int(a.size) * a.dtype.itemsize for a in args)
    bytes_accessed += n * cout * m_full * 2

    out_wide = pl.pallas_call(
        kernel,
        out_shape=jax.ShapeDtypeStruct((n, cout, m_full), jnp.bfloat16),
        grid=(n, num_tiles),
        in_specs=in_specs,
        out_specs=pl.BlockSpec((1, cout, m_tile), lambda b, r: (b, 0, r)),
        scratch_shapes=[pltpu.VMEM((k_total, m_tile), jnp.bfloat16)],
        compiler_params=pltpu.CompilerParams(
            dimension_semantics=("parallel", "parallel"),
            vmem_limit_bytes=_VMEM_LIMIT_BYTES),
        cost_estimate=pl.CostEstimate(
            flops=flops, transcendentals=0, bytes_accessed=bytes_accessed),
    )(*args)

    # Drop the garbage columns on the right of each wide row -> NCHW.
    out_nchw = out_wide.reshape(n, cout, h, wp)[:, :, :, :w]
    return out_nchw, _WideOut(wide=out_wide, h=h, w=w, wp=wp)


# ----------------------------------------------------------------------------
# Plain-JAX glue: max pool (2x2, stride 2, ceil_mode=True) and bilinear upsample
# ----------------------------------------------------------------------------
def maxpool2x2_ceil(x):
    """nn.MaxPool2d(2, stride=2, ceil_mode=True) on NCHW."""
    n, c, h, w = x.shape
    ho, wo = -(-h // 2), -(-w // 2)
    xp = jnp.pad(x, ((0, 0), (0, 0), (0, ho * 2 - h), (0, wo * 2 - w)),
                 constant_values=-jnp.inf)
    return xp.reshape(n, c, ho, 2, wo, 2).max(axis=(3, 5))


def upsample_like(src, tar):
    """F.interpolate(mode='bilinear', align_corners=False) == half-pixel bilinear."""
    n, c = src.shape[:2]
    return jax.image.resize(
        src, (n, c, tar.shape[2], tar.shape[3]), method="bilinear"
    ).astype(src.dtype)


# ----------------------------------------------------------------------------
# Parameter init (deterministic; mirrors weight_init: kaiming_normal fan_in/relu,
# zero conv bias, BN gamma=1/beta=0, eval-mode stats mean=0/var=1 folded in)
# ----------------------------------------------------------------------------
def init_rebnconv_params(key, in_ch, out_ch, eps=1e-5):
    std = (2.0 / (in_ch * 3 * 3)) ** 0.5
    w = jax.random.normal(key, (3, 3, in_ch, out_ch), jnp.float32) * std
    w_eff = w * (1.0 / jnp.sqrt(1.0 + eps))        # gamma / sqrt(var + eps)
    b_eff = jnp.zeros((out_ch,), jnp.float32)      # (bias - mean)*scale + beta
    return w_eff, b_eff


def _prep_conv(w_eff, b_eff, cin_splits):
    """(3,3,Cin,Cout) -> tuple of (Cout, 9*Cin_i) bf16 chunks (fused concat via
    weight splitting; row order matches the kernel's im2col layout) and a
    (Cout, 1) f32 bias."""
    cout = w_eff.shape[3]
    chunks, s = [], 0
    for c in cin_splits:
        blk = w_eff[:, :, s:s + c, :].reshape(9 * c, cout)   # rows ordered (ky,kx,cin)
        chunks.append(blk.T.astype(jnp.bfloat16))            # (Cout, 9*Cin_i)
        s += c
    return tuple(chunks), b_eff.reshape(cout, 1).astype(jnp.float32)


def init_rsu4_params(key, in_ch=4, mid_ch=12, out_ch=4):
    keys = jax.random.split(key, 8)
    raw = {
        "in": (init_rebnconv_params(keys[0], in_ch, out_ch), (in_ch,)),
        "1":  (init_rebnconv_params(keys[1], out_ch, mid_ch), (out_ch,)),
        "2":  (init_rebnconv_params(keys[2], mid_ch, mid_ch), (mid_ch,)),
        "3":  (init_rebnconv_params(keys[3], mid_ch, mid_ch), (mid_ch,)),
        "4":  (init_rebnconv_params(keys[4], mid_ch, mid_ch), (mid_ch,)),
        "3d": (init_rebnconv_params(keys[5], mid_ch * 2, mid_ch), (mid_ch, mid_ch)),
        "2d": (init_rebnconv_params(keys[6], mid_ch * 2, mid_ch), (mid_ch, mid_ch)),
        "1d": (init_rebnconv_params(keys[7], mid_ch * 2, out_ch), (mid_ch, mid_ch)),
    }
    return {k: _prep_conv(w, b, splits) for k, ((w, b), splits) in raw.items()}


# ----------------------------------------------------------------------------
# RSU4 forward (same dataflow as the PyTorch module; NCHW in / NCHW out)
# ----------------------------------------------------------------------------
@jax.jit
def rsu4_forward(x_nchw, params):
    hxin, hxin_wide = rebnconv_pallas([x_nchw], *params["in"], dirate=1)
    hx1, _ = rebnconv_pallas([hxin], *params["1"], dirate=1)
    hx = maxpool2x2_ceil(hx1)
    hx2, _ = rebnconv_pallas([hx], *params["2"], dirate=1)
    hx = maxpool2x2_ceil(hx2)
    hx3, _ = rebnconv_pallas([hx], *params["3"], dirate=1)
    hx4, _ = rebnconv_pallas([hx3], *params["4"], dirate=2)

    # Decoder: torch.cat((a, b), 1) is fused into the kernel via weight splitting.
    hx3d, _ = rebnconv_pallas([hx4, hx3], *params["3d"], dirate=1)
    hx3dup = upsample_like(hx3d, hx2)
    hx2d, _ = rebnconv_pallas([hx3dup, hx2], *params["2d"], dirate=1)
    hx2dup = upsample_like(hx2d, hx1)
    # Final REBNCONV with the `+ hxin` residual fused (hxin kept in wide layout).
    hx1d, _ = rebnconv_pallas([hx2dup, hx1], *params["1d"], dirate=1,
                              residual=hxin_wide)

    return hx1d.astype(jnp.float32)


if __name__ == "__main__":
    key = jax.random.PRNGKey(0)
    k_x, k_p = jax.random.split(key)

    N, IN_CH, MID_CH, OUT_CH, H, W = 2, 4, 12, 4, 16, 16
    x = jax.random.normal(k_x, (N, IN_CH, H, W), jnp.float32)
    params = init_rsu4_params(k_p, in_ch=IN_CH, mid_ch=MID_CH, out_ch=OUT_CH)

    y = jax.block_until_ready(rsu4_forward(x, params))

    assert y.shape == (N, OUT_CH, H, W), y.shape
    assert bool(jnp.all(jnp.isfinite(y)))
    print("KERNEL_OK")
</pallas_src>

<mosaic_0001>
module attributes {stable_mosaic.version = 11 : i64} {
  func.func @kernel(%arg0: i32, %arg1: i32, %arg2: memref<1x1x4x326xbf16, #tpu.memory_space<vmem>>, %arg3: memref<12x36xbf16, #tpu.memory_space<vmem>>, %arg4: memref<12x1xf32, #tpu.memory_space<vmem>>, %arg5: memref<1x12x288xbf16, #tpu.memory_space<vmem>>, %arg6: memref<36x288xbf16, #tpu.memory_space<vmem>>) attributes {dimension_semantics = [#tpu.dimension_semantics<parallel>, #tpu.dimension_semantics<parallel>], iteration_bounds = array<i64: 2, 1>, scalar_prefetch = 0 : i64, scratch_operands = 1 : i64, tpu.core_type = #tpu.core_type<tc>, window_params = [{transform_indices = @transform_0, window_bounds = array<i64: 1, 1, 4, 326>}, {pipeline_mode = #tpu.pipeline_mode<synchronous>, transform_indices = @transform_1, window_bounds = array<i64: 12, 36>}, {pipeline_mode = #tpu.pipeline_mode<synchronous>, transform_indices = @transform_2, window_bounds = array<i64: 12, 1>}, {transform_indices = @transform_3, window_bounds = array<i64: 1, 12, 288>}]} {
    %c0 = arith.constant 0 : index
    %c0_0 = arith.constant 0 : index
    %c0_1 = arith.constant 0 : index
    %c0_2 = arith.constant 0 : index
    %0 = vector.load %arg2[%c0, %c0_0, %c0_1, %c0_2] : memref<1x1x4x326xbf16, #tpu.memory_space<vmem>>, vector<1x1x4x290xbf16>
    %1 = vector.shape_cast %0 : vector<1x1x4x290xbf16> to vector<4x290xbf16>
    %2 = vector.extract_strided_slice %1 {offsets = [0, 0], sizes = [4, 288], strides = [1, 1]} : vector<4x290xbf16> to vector<4x288xbf16>
    %c0_3 = arith.constant 0 : index
    %c0_4 = arith.constant 0 : index
    %3 = vector.load %arg6[%c0_3, %c0_4] : memref<36x288xbf16, #tpu.memory_space<vmem>>, vector<4x288xbf16>
    tpu.vector_store %arg6[%c0_3, %c0_4], %2 {strides = array<i32>} : memref<36x288xbf16, #tpu.memory_space<vmem>>, vector<4x288xbf16>,
    %4 = vector.extract_strided_slice %1 {offsets = [0, 1], sizes = [4, 288], strides = [1, 1]} : vector<4x290xbf16> to vector<4x288xbf16>
    %c4 = arith.constant 4 : index
    %c0_5 = arith.constant 0 : index
    %5 = vector.load %arg6[%c4, %c0_5] : memref<36x288xbf16, #tpu.memory_space<vmem>>, vector<4x288xbf16>
    tpu.vector_store %arg6[%c4, %c0_5], %4 {strides = array<i32>} : memref<36x288xbf16, #tpu.memory_space<vmem>>, vector<4x288xbf16>,
    %6 = vector.extract_strided_slice %1 {offsets = [0, 2], sizes = [4, 288], strides = [1, 1]} : vector<4x290xbf16> to vector<4x288xbf16>
    %c8 = arith.constant 8 : index
    %c0_6 = arith.constant 0 : index
    %7 = vector.load %arg6[%c8, %c0_6] : memref<36x288xbf16, #tpu.memory_space<vmem>>, vector<4x288xbf16>
    tpu.vector_store %arg6[%c8, %c0_6], %6 {strides = array<i32>} : memref<36x288xbf16, #tpu.memory_space<vmem>>, vector<4x288xbf16>,
    %c0_7 = arith.constant 0 : index
    %c0_8 = arith.constant 0 : index
    %c0_9 = arith.constant 0 : index
    %c18 = arith.constant 18 : index
    %8 = vector.load %arg2[%c0_7, %c0_8, %c0_9, %c18] : memref<1x1x4x326xbf16, #tpu.memory_space<vmem>>, vector<1x1x4x290xbf16>
    %9 = vector.shape_cast %8 : vector<1x1x4x290xbf16> to vector<4x290xbf16>
    %10 = vector.extract_strided_slice %9 {offsets = [0, 0], sizes = [4, 288], strides = [1, 1]} : vector<4x290xbf16> to vector<4x288xbf16>
    %c12 = arith.constant 12 : index
    %c0_10 = arith.constant 0 : index
    %11 = vector.load %arg6[%c12, %c0_10] : memref<36x288xbf16, #tpu.memory_space<vmem>>, vector<4x288xbf16>
    tpu.vector_store %arg6[%c12, %c0_10], %10 {strides = array<i32>} : memref<36x288xbf16, #tpu.memory_space<vmem>>, vector<4x288xbf16>,
    %12 = vector.extract_strided_slice %9 {offsets = [0, 1], sizes = [4, 288], strides = [1, 1]} : vector<4x290xbf16> to vector<4x288xbf16>
    %c16 = arith.constant 16 : index
    %c0_11 = arith.constant 0 : index
    %13 = vector.load %arg6[%c16, %c0_11] : memref<36x288xbf16, #tpu.memory_space<vmem>>, vector<4x288xbf16>
    tpu.vector_store %arg6[%c16, %c0_11], %12 {strides = array<i32>} : memref<36x288xbf16, #tpu.memory_space<vmem>>, vector<4x288xbf16>,
    %14 = vector.extract_strided_slice %9 {offsets = [0, 2], sizes = [4, 288], strides = [1, 1]} : vector<4x290xbf16> to vector<4x288xbf16>
    %c20 = arith.constant 20 : index
    %c0_12 = arith.constant 0 : index
    %15 = vector.load %arg6[%c20, %c0_12] : memref<36x288xbf16, #tpu.memory_space<vmem>>, vector<4x288xbf16>
    tpu.vector_store %arg6[%c20, %c0_12], %14 {strides = array<i32>} : memref<36x288xbf16, #tpu.memory_space<vmem>>, vector<4x288xbf16>,
    %c0_13 = arith.constant 0 : index
    %c0_14 = arith.constant 0 : index
    %c0_15 = arith.constant 0 : index
    %c36 = arith.constant 36 : index
    %16 = vector.load %arg2[%c0_13, %c0_14, %c0_15, %c36] : memref<1x1x4x326xbf16, #tpu.memory_space<vmem>>, vector<1x1x4x290xbf16>
    %17 = vector.shape_cast %16 : vector<1x1x4x290xbf16> to vector<4x290xbf16>
    %18 = vector.extract_strided_slice %17 {offsets = [0, 0], sizes = [4, 288], strides = [1, 1]} : vector<4x290xbf16> to vector<4x288xbf16>
    %c24 = arith.constant 24 : index
    %c0_16 = arith.constant 0 : index
    %19 = vector.load %arg6[%c24, %c0_16] : memref<36x288xbf16, #tpu.memory_space<vmem>>, vector<4x288xbf16>
    tpu.vector_store %arg6[%c24, %c0_16], %18 {strides = array<i32>} : memref<36x288xbf16, #tpu.memory_space<vmem>>, vector<4x288xbf16>,
    %20 = vector.extract_strided_slice %17 {offsets = [0, 1], sizes = [4, 288], strides = [1, 1]} : vector<4x290xbf16> to vector<4x288xbf16>
    %c28 = arith.constant 28 : index
    %c0_17 = arith.constant 0 : index
    %21 = vector.load %arg6[%c28, %c0_17] : memref<36x288xbf16, #tpu.memory_space<vmem>>, vector<4x288xbf16>
    tpu.vector_store %arg6[%c28, %c0_17], %20 {strides = array<i32>} : memref<36x288xbf16, #tpu.memory_space<vmem>>, vector<4x288xbf16>,
    %22 = vector.extract_strided_slice %17 {offsets = [0, 2], sizes = [4, 288], strides = [1, 1]} : vector<4x290xbf16> to vector<4x288xbf16>
    %c32 = arith.constant 32 : index
    %c0_18 = arith.constant 0 : index
    %23 = vector.load %arg6[%c32, %c0_18] : memref<36x288xbf16, #tpu.memory_space<vmem>>, vector<4x288xbf16>
    tpu.vector_store %arg6[%c32, %c0_18], %22 {strides = array<i32>} : memref<36x288xbf16, #tpu.memory_space<vmem>>, vector<4x288xbf16>,
    %c0_19 = arith.constant 0 : index
    %c0_20 = arith.constant 0 : index
    %24 = vector.load %arg3[%c0_19, %c0_20] : memref<12x36xbf16, #tpu.memory_space<vmem>>, vector<12x36xbf16>
    %c0_21 = arith.constant 0 : index
    %c0_22 = arith.constant 0 : index
    %25 = vector.load %arg6[%c0_21, %c0_22] : memref<36x288xbf16, #tpu.memory_space<vmem>>, vector<36x288xbf16>
    %cst = arith.constant dense<0.000000e+00> : vector<12x288xf32>
    %26 = tpu.matmul %24, %25, %cst {dimension_numbers = #tpu.dot_dimension_numbers<[1], [0], [0], [1], [0, 0, 1, 1], [], []>} : vector<12x36xbf16>, vector<36x288xbf16>, vector<12x288xf32> -> vector<12x288xf32>
    %c0_23 = arith.constant 0 : index
    %c0_24 = arith.constant 0 : index
    %27 = vector.load %arg4[%c0_23, %c0_24] : memref<12x1xf32, #tpu.memory_space<vmem>>, vector<12x1xf32>
    %28 = vector.broadcast %27 : vector<12x1xf32> to vector<12x288xf32>
    %29 = arith.addf %26, %28 : vector<12x288xf32>
    %cst_25 = arith.constant 0.000000e+00 : f32
    %30 = vector.broadcast %cst_25 : f32 to vector<12x288xf32>
    %31 = arith.maximumf %29, %30 : vector<12x288xf32>
    %32 = arith.truncf %31 : vector<12x288xf32> to vector<12x288xbf16>
    %c0_26 = arith.constant 0 : index
    %c0_27 = arith.constant 0 : index
    %c0_28 = arith.constant 0 : index
    %33 = vector.load %arg5[%c0_26, %c0_27, %c0_28] : memref<1x12x288xbf16, #tpu.memory_space<vmem>>, vector<1x12x288xbf16>
    %34 = vector.shape_cast %33 : vector<1x12x288xbf16> to vector<12x288xbf16>
    %35 = vector.shape_cast %32 : vector<12x288xbf16> to vector<1x12x288xbf16>
    tpu.vector_store %arg5[%c0_26, %c0_27, %c0_28], %35 {strides = array<i32>} : memref<1x12x288xbf16, #tpu.memory_space<vmem>>, vector<1x12x288xbf16>,
    return
  }
  func.func @transform_0(%arg0: i32, %arg1: i32) -> (i32, i32, i32, i32) {
    %c0_i32 = arith.constant 0 : i32
    %c0_i32_0 = arith.constant 0 : i32
    %c0_i32_1 = arith.constant 0 : i32
    return %arg0, %arg1, %c0_i32, %c0_i32_0 : i32, i32, i32, i32
  }
  func.func @transform_1(%arg0: i32, %arg1: i32) -> (i32, i32) {
    %c0_i32 = arith.constant 0 : i32
    %c0_i32_0 = arith.constant 0 : i32
    %c0_i32_1 = arith.constant 0 : i32
    return %c0_i32, %c0_i32_0 : i32, i32
  }
  func.func @transform_2(%arg0: i32, %arg1: i32) -> (i32, i32) {
    %c0_i32 = arith.constant 0 : i32
    %c0_i32_0 = arith.constant 0 : i32
    %c0_i32_1 = arith.constant 0 : i32
    return %c0_i32, %c0_i32_0 : i32, i32
  }
  func.func @transform_3(%arg0: i32, %arg1: i32) -> (i32, i32, i32) {
    %c0_i32 = arith.constant 0 : i32
    %c0_i32_0 = arith.constant 0 : i32
    return %arg0, %c0_i32, %arg1 : i32, i32, i32
  }
}

module attributes {stable_mosaic.version = 11 : i64} {
  func.func @kernel(%arg0: i32, %arg1: i32, %arg2: memref<1x1x4x326xbf16, #tpu.memory_space<vmem>>, %arg3: memref<4x36xbf16, #tpu.memory_space<vmem>>, %arg4: memref<4x1xf32, #tpu.memory_space<vmem>>, %arg5: memref<1x4x288xbf16, #tpu.memory_space<vmem>>, %arg6: memref<36x288xbf16, #tpu.memory_space<vmem>>) attributes {dimension_semantics = [#tpu.dimension_semantics<parallel>, #tpu.dimension_semantics<parallel>], iteration_bounds = array<i64: 2, 1>, scalar_prefetch = 0 : i64, scratch_operands = 1 : i64, tpu.core_type = #tpu.core_type<tc>, window_params = [{transform_indices = @transform_0, window_bounds = array<i64: 1, 1, 4, 326>}, {pipeline_mode = #tpu.pipeline_mode<synchronous>, transform_indices = @transform_1, window_bounds = array<i64: 4, 36>}, {pipeline_mode = #tpu.pipeline_mode<synchronous>, transform_indices = @transform_2, window_bounds = array<i64: 4, 1>}, {transform_indices = @transform_3, window_bounds = array<i64: 1, 4, 288>}]} {
    %c0 = arith.constant 0 : index
    %c0_0 = arith.constant 0 : index
    %c0_1 = arith.constant 0 : index
    %c0_2 = arith.constant 0 : index
    %0 = vector.load %arg2[%c0, %c0_0, %c0_1, %c0_2] : memref<1x1x4x326xbf16, #tpu.memory_space<vmem>>, vector<1x1x4x290xbf16>
    %1 = vector.shape_cast %0 : vector<1x1x4x290xbf16> to vector<4x290xbf16>
    %2 = vector.extract_strided_slice %1 {offsets = [0, 0], sizes = [4, 288], strides = [1, 1]} : vector<4x290xbf16> to vector<4x288xbf16>
    %c0_3 = arith.constant 0 : index
    %c0_4 = arith.constant 0 : index
    %3 = vector.load %arg6[%c0_3, %c0_4] : memref<36x288xbf16, #tpu.memory_space<vmem>>, vector<4x288xbf16>
    tpu.vector_store %arg6[%c0_3, %c0_4], %2 {strides = array<i32>} : memref<36x288xbf16, #tpu.memory_space<vmem>>, vector<4x288xbf16>,
    %4 = vector.extract_strided_slice %1 {offsets = [0, 1], sizes = [4, 288], strides = [1, 1]} : vector<4x290xbf16> to vector<4x288xbf16>
    %c4 = arith.constant 4 : index
    %c0_5 = arith.constant 0 : index
    %5 = vector.load %arg6[%c4, %c0_5] : memref<36x288xbf16, #tpu.memory_space<vmem>>, vector<4x288xbf16>
    tpu.vector_store %arg6[%c4, %c0_5], %4 {strides = array<i32>} : memref<36x288xbf16, #tpu.memory_space<vmem>>, vector<4x288xbf16>,
    %6 = vector.extract_strided_slice %1 {offsets = [0, 2], sizes = [4, 288], strides = [1, 1]} : vector<4x290xbf16> to vector<4x288xbf16>
    %c8 = arith.constant 8 : index
    %c0_6 = arith.constant 0 : index
    %7 = vector.load %arg6[%c8, %c0_6] : memref<36x288xbf16, #tpu.memory_space<vmem>>, vector<4x288xbf16>
    tpu.vector_store %arg6[%c8, %c0_6], %6 {strides = array<i32>} : memref<36x288xbf16, #tpu.memory_space<vmem>>, vector<4x288xbf16>,
    %c0_7 = arith.constant 0 : index
    %c0_8 = arith.constant 0 : index
    %c0_9 = arith.constant 0 : index
    %c18 = arith.constant 18 : index
    %8 = vector.load %arg2[%c0_7, %c0_8, %c0_9, %c18] : memref<1x1x4x326xbf16, #tpu.memory_space<vmem>>, vector<1x1x4x290xbf16>
    %9 = vector.shape_cast %8 : vector<1x1x4x290xbf16> to vector<4x290xbf16>
    %10 = vector.extract_strided_slice %9 {offsets = [0, 0], sizes = [4, 288], strides = [1, 1]} : vector<4x290xbf16> to vector<4x288xbf16>
    %c12 = arith.constant 12 : index
    %c0_10 = arith.constant 0 : index
    %11 = vector.load %arg6[%c12, %c0_10] : memref<36x288xbf16, #tpu.memory_space<vmem>>, vector<4x288xbf16>
    tpu.vector_store %arg6[%c12, %c0_10], %10 {strides = array<i32>} : memref<36x288xbf16, #tpu.memory_space<vmem>>, vector<4x288xbf16>,
    %12 = vector.extract_strided_slice %9 {offsets = [0, 1], sizes = [4, 288], strides = [1, 1]} : vector<4x290xbf16> to vector<4x288xbf16>
    %c16 = arith.constant 16 : index
    %c0_11 = arith.constant 0 : index
    %13 = vector.load %arg6[%c16, %c0_11] : memref<36x288xbf16, #tpu.memory_space<vmem>>, vector<4x288xbf16>
    tpu.vector_store %arg6[%c16, %c0_11], %12 {strides = array<i32>} : memref<36x288xbf16, #tpu.memory_space<vmem>>, vector<4x288xbf16>,
    %14 = vector.extract_strided_slice %9 {offsets = [0, 2], sizes = [4, 288], strides = [1, 1]} : vector<4x290xbf16> to vector<4x288xbf16>
    %c20 = arith.constant 20 : index
    %c0_12 = arith.constant 0 : index
    %15 = vector.load %arg6[%c20, %c0_12] : memref<36x288xbf16, #tpu.memory_space<vmem>>, vector<4x288xbf16>
    tpu.vector_store %arg6[%c20, %c0_12], %14 {strides = array<i32>} : memref<36x288xbf16, #tpu.memory_space<vmem>>, vector<4x288xbf16>,
    %c0_13 = arith.constant 0 : index
    %c0_14 = arith.constant 0 : index
    %c0_15 = arith.constant 0 : index
    %c36 = arith.constant 36 : index
    %16 = vector.load %arg2[%c0_13, %c0_14, %c0_15, %c36] : memref<1x1x4x326xbf16, #tpu.memory_space<vmem>>, vector<1x1x4x290xbf16>
    %17 = vector.shape_cast %16 : vector<1x1x4x290xbf16> to vector<4x290xbf16>
    %18 = vector.extract_strided_slice %17 {offsets = [0, 0], sizes = [4, 288], strides = [1, 1]} : vector<4x290xbf16> to vector<4x288xbf16>
    %c24 = arith.constant 24 : index
    %c0_16 = arith.constant 0 : index
    %19 = vector.load %arg6[%c24, %c0_16] : memref<36x288xbf16, #tpu.memory_space<vmem>>, vector<4x288xbf16>
    tpu.vector_store %arg6[%c24, %c0_16], %18 {strides = array<i32>} : memref<36x288xbf16, #tpu.memory_space<vmem>>, vector<4x288xbf16>,
    %20 = vector.extract_strided_slice %17 {offsets = [0, 1], sizes = [4, 288], strides = [1, 1]} : vector<4x290xbf16> to vector<4x288xbf16>
    %c28 = arith.constant 28 : index
    %c0_17 = arith.constant 0 : index
    %21 = vector.load %arg6[%c28, %c0_17] : memref<36x288xbf16, #tpu.memory_space<vmem>>, vector<4x288xbf16>
    tpu.vector_store %arg6[%c28, %c0_17], %20 {strides = array<i32>} : memref<36x288xbf16, #tpu.memory_space<vmem>>, vector<4x288xbf16>,
    %22 = vector.extract_strided_slice %17 {offsets = [0, 2], sizes = [4, 288], strides = [1, 1]} : vector<4x290xbf16> to vector<4x288xbf16>
    %c32 = arith.constant 32 : index
    %c0_18 = arith.constant 0 : index
    %23 = vector.load %arg6[%c32, %c0_18] : memref<36x288xbf16, #tpu.memory_space<vmem>>, vector<4x288xbf16>
    tpu.vector_store %arg6[%c32, %c0_18], %22 {strides = array<i32>} : memref<36x288xbf16, #tpu.memory_space<vmem>>, vector<4x288xbf16>,
    %c0_19 = arith.constant 0 : index
    %c0_20 = arith.constant 0 : index
    %24 = vector.load %arg3[%c0_19, %c0_20] : memref<4x36xbf16, #tpu.memory_space<vmem>>, vector<4x36xbf16>
    %c0_21 = arith.constant 0 : index
    %c0_22 = arith.constant 0 : index
    %25 = vector.load %arg6[%c0_21, %c0_22] : memref<36x288xbf16, #tpu.memory_space<vmem>>, vector<36x288xbf16>
    %cst = arith.constant dense<0.000000e+00> : vector<4x288xf32>
    %26 = tpu.matmul %24, %25, %cst {dimension_numbers = #tpu.dot_dimension_numbers<[1], [0], [0], [1], [0, 0, 1, 1], [], []>} : vector<4x36xbf16>, vector<36x288xbf16>, vector<4x288xf32> -> vector<4x288xf32>
    %c0_23 = arith.constant 0 : index
    %c0_24 = arith.constant 0 : index
    %27 = vector.load %arg4[%c0_23, %c0_24] : memref<4x1xf32, #tpu.memory_space<vmem>>, vector<4x1xf32>
    %28 = vector.broadcast %27 : vector<4x1xf32> to vector<4x288xf32>
    %29 = arith.addf %26, %28 : vector<4x288xf32>
    %cst_25 = arith.constant 0.000000e+00 : f32
    %30 = vector.broadcast %cst_25 : f32 to vector<4x288xf32>
    %31 = arith.maximumf %29, %30 : vector<4x288xf32>
    %32 = arith.truncf %31 : vector<4x288xf32> to vector<4x288xbf16>
    %c0_26 = arith.constant 0 : index
    %c0_27 = arith.constant 0 : index
    %c0_28 = arith.constant 0 : index
    %33 = vector.load %arg5[%c0_26, %c0_27, %c0_28] : memref<1x4x288xbf16, #tpu.memory_space<vmem>>, vector<1x4x288xbf16>
    %34 = vector.shape_cast %33 : vector<1x4x288xbf16> to vector<4x288xbf16>
    %35 = vector.shape_cast %32 : vector<4x288xbf16> to vector<1x4x288xbf16>
    tpu.vector_store %arg5[%c0_26, %c0_27, %c0_28], %35 {strides = array<i32>} : memref<1x4x288xbf16, #tpu.memory_space<vmem>>, vector<1x4x288xbf16>,
    return
  }
  func.func @transform_0(%arg0: i32, %arg1: i32) -> (i32, i32, i32, i32) {
    %c0_i32 = arith.constant 0 : i32
    %c0_i32_0 = arith.constant 0 : i32
    %c0_i32_1 = arith.constant 0 : i32
    return %arg0, %arg1, %c0_i32, %c0_i32_0 : i32, i32, i32, i32
  }
  func.func @transform_1(%arg0: i32, %arg1: i32) -> (i32, i32) {
    %c0_i32 = arith.constant 0 : i32
    %c0_i32_0 = arith.constant 0 : i32
    %c0_i32_1 = arith.constant 0 : i32
    return %c0_i32, %c0_i32_0 : i32, i32
  }
  func.func @transform_2(%arg0: i32, %arg1: i32) -> (i32, i32) {
    %c0_i32 = arith.constant 0 : i32
    %c0_i32_0 = arith.constant 0 : i32
    %c0_i32_1 = arith.constant 0 : i32
    return %c0_i32, %c0_i32_0 : i32, i32
  }
  func.func @transform_3(%arg0: i32, %arg1: i32) -> (i32, i32, i32) {
    %c0_i32 = arith.constant 0 : i32
    %c0_i32_0 = arith.constant 0 : i32
    return %arg0, %c0_i32, %arg1 : i32, i32, i32
  }
}

module attributes {stable_mosaic.version = 11 : i64} {
  func.func @kernel(%arg0: i32, %arg1: i32, %arg2: memref<1x1x12x102xbf16, #tpu.memory_space<vmem>>, %arg3: memref<12x108xbf16, #tpu.memory_space<vmem>>, %arg4: memref<12x1xf32, #tpu.memory_space<vmem>>, %arg5: memref<1x12x80xbf16, #tpu.memory_space<vmem>>, %arg6: memref<108x80xbf16, #tpu.memory_space<vmem>>) attributes {dimension_semantics = [#tpu.dimension_semantics<parallel>, #tpu.dimension_semantics<parallel>], iteration_bounds = array<i64: 2, 1>, scalar_prefetch = 0 : i64, scratch_operands = 1 : i64, tpu.core_type = #tpu.core_type<tc>, window_params = [{transform_indices = @transform_0, window_bounds = array<i64: 1, 1, 12, 102>}, {pipeline_mode = #tpu.pipeline_mode<synchronous>, transform_indices = @transform_1, window_bounds = array<i64: 12, 108>}, {pipeline_mode = #tpu.pipeline_mode<synchronous>, transform_indices = @transform_2, window_bounds = array<i64: 12, 1>}, {transform_indices = @transform_3, window_bounds = array<i64: 1, 12, 80>}]} {
    %c0 = arith.constant 0 : index
    %c0_0 = arith.constant 0 : index
    %c0_1 = arith.constant 0 : index
    %c0_2 = arith.constant 0 : index
    %0 = vector.load %arg2[%c0, %c0_0, %c0_1, %c0_2] : memref<1x1x12x102xbf16, #tpu.memory_space<vmem>>, vector<1x1x12x82xbf16>
    %1 = vector.shape_cast %0 : vector<1x1x12x82xbf16> to vector<12x82xbf16>
    %2 = vector.extract_strided_slice %1 {offsets = [0, 0], sizes = [12, 80], strides = [1, 1]} : vector<12x82xbf16> to vector<12x80xbf16>
    %c0_3 = arith.constant 0 : index
    %c0_4 = arith.constant 0 : index
    %3 = vector.load %arg6[%c0_3, %c0_4] : memref<108x80xbf16, #tpu.memory_space<vmem>>, vector<12x80xbf16>
    tpu.vector_store %arg6[%c0_3, %c0_4], %2 {strides = array<i32>} : memref<108x80xbf16, #tpu.memory_space<vmem>>, vector<12x80xbf16>,
    %4 = vector.extract_strided_slice %1 {offsets = [0, 1], sizes = [12, 80], strides = [1, 1]} : vector<12x82xbf16> to vector<12x80xbf16>
    %c12 = arith.constant 12 : index
    %c0_5 = arith.constant 0 : index
    %5 = vector.load %arg6[%c12, %c0_5] : memref<108x80xbf16, #tpu.memory_space<vmem>>, vector<12x80xbf16>
    tpu.vector_store %arg6[%c12, %c0_5], %4 {strides = array<i32>} : memref<108x80xbf16, #tpu.memory_space<vmem>>, vector<12x80xbf16>,
    %6 = vector.extract_strided_slice %1 {offsets = [0, 2], sizes = [12, 80], strides = [1, 1]} : vector<12x82xbf16> to vector<12x80xbf16>
    %c24 = arith.constant 24 : index
    %c0_6 = arith.constant 0 : index
    %7 = vector.load %arg6[%c24, %c0_6] : memref<108x80xbf16, #tpu.memory_space<vmem>>, vector<12x80xbf16>
    tpu.vector_store %arg6[%c24, %c0_6], %6 {strides = array<i32>} : memref<108x80xbf16, #tpu.memory_space<vmem>>, vector<12x80xbf16>,
    %c0_7 = arith.constant 0 : index
    %c0_8 = arith.constant 0 : index
    %c0_9 = arith.constant 0 : index
    %c10 = arith.constant 10 : index
    %8 = vector.load %arg2[%c0_7, %c0_8, %c0_9, %c10] : memref<1x1x12x102xbf16, #tpu.memory_space<vmem>>, vector<1x1x12x82xbf16>
    %9 = vector.shape_cast %8 : vector<1x1x12x82xbf16> to vector<12x82xbf16>
    %10 = vector.extract_strided_slice %9 {offsets = [0, 0], sizes = [12, 80], strides = [1, 1]} : vector<12x82xbf16> to vector<12x80xbf16>
    %c36 = arith.constant 36 : index
    %c0_10 = arith.constant 0 : index
    %11 = vector.load %arg6[%c36, %c0_10] : memref<108x80xbf16, #tpu.memory_space<vmem>>, vector<12x80xbf16>
    tpu.vector_store %arg6[%c36, %c0_10], %10 {strides = array<i32>} : memref<108x80xbf16, #tpu.memory_space<vmem>>, vector<12x80xbf16>,
    %12 = vector.extract_strided_slice %9 {offsets = [0, 1], sizes = [12, 80], strides = [1, 1]} : vector<12x82xbf16> to vector<12x80xbf16>
    %c48 = arith.constant 48 : index
    %c0_11 = arith.constant 0 : index
    %13 = vector.load %arg6[%c48, %c0_11] : memref<108x80xbf16, #tpu.memory_space<vmem>>, vector<12x80xbf16>
    tpu.vector_store %arg6[%c48, %c0_11], %12 {strides = array<i32>} : memref<108x80xbf16, #tpu.memory_space<vmem>>, vector<12x80xbf16>,
    %14 = vector.extract_strided_slice %9 {offsets = [0, 2], sizes = [12, 80], strides = [1, 1]} : vector<12x82xbf16> to vector<12x80xbf16>
    %c60 = arith.constant 60 : index
    %c0_12 = arith.constant 0 : index
    %15 = vector.load %arg6[%c60, %c0_12] : memref<108x80xbf16, #tpu.memory_space<vmem>>, vector<12x80xbf16>
    tpu.vector_store %arg6[%c60, %c0_12], %14 {strides = array<i32>} : memref<108x80xbf16, #tpu.memory_space<vmem>>, vector<12x80xbf16>,
    %c0_13 = arith.constant 0 : index
    %c0_14 = arith.constant 0 : index
    %c0_15 = arith.constant 0 : index
    %c20 = arith.constant 20 : index
    %16 = vector.load %arg2[%c0_13, %c0_14, %c0_15, %c20] : memref<1x1x12x102xbf16, #tpu.memory_space<vmem>>, vector<1x1x12x82xbf16>
    %17 = vector.shape_cast %16 : vector<1x1x12x82xbf16> to vector<12x82xbf16>
    %18 = vector.extract_strided_slice %17 {offsets = [0, 0], sizes = [12, 80], strides = [1, 1]} : vector<12x82xbf16> to vector<12x80xbf16>
    %c72 = arith.constant 72 : index
    %c0_16 = arith.constant 0 : index
    %19 = vector.load %arg6[%c72, %c0_16] : memref<108x80xbf16, #tpu.memory_space<vmem>>, vector<12x80xbf16>
    tpu.vector_store %arg6[%c72, %c0_16], %18 {strides = array<i32>} : memref<108x80xbf16, #tpu.memory_space<vmem>>, vector<12x80xbf16>,
    %20 = vector.extract_strided_slice %17 {offsets = [0, 1], sizes = [12, 80], strides = [1, 1]} : vector<12x82xbf16> to vector<12x80xbf16>
    %c84 = arith.constant 84 : index
    %c0_17 = arith.constant 0 : index
    %21 = vector.load %arg6[%c84, %c0_17] : memref<108x80xbf16, #tpu.memory_space<vmem>>, vector<12x80xbf16>
    tpu.vector_store %arg6[%c84, %c0_17], %20 {strides = array<i32>} : memref<108x80xbf16, #tpu.memory_space<vmem>>, vector<12x80xbf16>,
    %22 = vector.extract_strided_slice %17 {offsets = [0, 2], sizes = [12, 80], strides = [1, 1]} : vector<12x82xbf16> to vector<12x80xbf16>
    %c96 = arith.constant 96 : index
    %c0_18 = arith.constant 0 : index
    %23 = vector.load %arg6[%c96, %c0_18] : memref<108x80xbf16, #tpu.memory_space<vmem>>, vector<12x80xbf16>
    tpu.vector_store %arg6[%c96, %c0_18], %22 {strides = array<i32>} : memref<108x80xbf16, #tpu.memory_space<vmem>>, vector<12x80xbf16>,
    %c0_19 = arith.constant 0 : index
    %c0_20 = arith.constant 0 : index
    %24 = vector.load %arg3[%c0_19, %c0_20] : memref<12x108xbf16, #tpu.memory_space<vmem>>, vector<12x108xbf16>
    %c0_21 = arith.constant 0 : index
    %c0_22 = arith.constant 0 : index
    %25 = vector.load %arg6[%c0_21, %c0_22] : memref<108x80xbf16, #tpu.memory_space<vmem>>, vector<108x80xbf16>
    %cst = arith.constant dense<0.000000e+00> : vector<12x80xf32>
    %26 = tpu.matmul %24, %25, %cst {dimension_numbers = #tpu.dot_dimension_numbers<[1], [0], [0], [1], [0, 0, 1, 1], [], []>} : vector<12x108xbf16>, vector<108x80xbf16>, vector<12x80xf32> -> vector<12x80xf32>
    %c0_23 = arith.constant 0 : index
    %c0_24 = arith.constant 0 : index
    %27 = vector.load %arg4[%c0_23, %c0_24] : memref<12x1xf32, #tpu.memory_space<vmem>>, vector<12x1xf32>
    %28 = vector.broadcast %27 : vector<12x1xf32> to vector<12x80xf32>
    %29 = arith.addf %26, %28 : vector<12x80xf32>
    %cst_25 = arith.constant 0.000000e+00 : f32
    %30 = vector.broadcast %cst_25 : f32 to vector<12x80xf32>
    %31 = arith.maximumf %29, %30 : vector<12x80xf32>
    %32 = arith.truncf %31 : vector<12x80xf32> to vector<12x80xbf16>
    %c0_26 = arith.constant 0 : index
    %c0_27 = arith.constant 0 : index
    %c0_28 = arith.constant 0 : index
    %33 = vector.load %arg5[%c0_26, %c0_27, %c0_28] : memref<1x12x80xbf16, #tpu.memory_space<vmem>>, vector<1x12x80xbf16>
    %34 = vector.shape_cast %33 : vector<1x12x80xbf16> to vector<12x80xbf16>
    %35 = vector.shape_cast %32 : vector<12x80xbf16> to vector<1x12x80xbf16>
    tpu.vector_store %arg5[%c0_26, %c0_27, %c0_28], %35 {strides = array<i32>} : memref<1x12x80xbf16, #tpu.memory_space<vmem>>, vector<1x12x80xbf16>,
    return
  }
  func.func @transform_0(%arg0: i32, %arg1: i32) -> (i32, i32, i32, i32) {
    %c0_i32 = arith.constant 0 : i32
    %c0_i32_0 = arith.constant 0 : i32
    %c0_i32_1 = arith.constant 0 : i32
    return %arg0, %arg1, %c0_i32, %c0_i32_0 : i32, i32, i32, i32
  }
  func.func @transform_1(%arg0: i32, %arg1: i32) -> (i32, i32) {
    %c0_i32 = arith.constant 0 : i32
    %c0_i32_0 = arith.constant 0 : i32
    %c0_i32_1 = arith.constant 0 : i32
    return %c0_i32, %c0_i32_0 : i32, i32
  }
  func.func @transform_2(%arg0: i32, %arg1: i32) -> (i32, i32) {
    %c0_i32 = arith.constant 0 : i32
    %c0_i32_0 = arith.constant 0 : i32
    %c0_i32_1 = arith.constant 0 : i32
    return %c0_i32, %c0_i32_0 : i32, i32
  }
  func.func @transform_3(%arg0: i32, %arg1: i32) -> (i32, i32, i32) {
    %c0_i32 = arith.constant 0 : i32
    %c0_i32_0 = arith.constant 0 : i32
    return %arg0, %c0_i32, %arg1 : i32, i32, i32
  }
}

module attributes {stable_mosaic.version = 11 : i64} {
  func.func @kernel(%arg0: i32, %arg1: i32, %arg2: memref<1x1x12x38xbf16, #tpu.memory_space<vmem>>, %arg3: memref<12x108xbf16, #tpu.memory_space<vmem>>, %arg4: memref<12x1xf32, #tpu.memory_space<vmem>>, %arg5: memref<1x12x24xbf16, #tpu.memory_space<vmem>>, %arg6: memref<108x24xbf16, #tpu.memory_space<vmem>>) attributes {dimension_semantics = [#tpu.dimension_semantics<parallel>, #tpu.dimension_semantics<parallel>], iteration_bounds = array<i64: 2, 1>, scalar_prefetch = 0 : i64, scratch_operands = 1 : i64, tpu.core_type = #tpu.core_type<tc>, window_params = [{transform_indices = @transform_0, window_bounds = array<i64: 1, 1, 12, 38>}, {pipeline_mode = #tpu.pipeline_mode<synchronous>, transform_indices = @transform_1, window_bounds = array<i64: 12, 108>}, {pipeline_mode = #tpu.pipeline_mode<synchronous>, transform_indices = @transform_2, window_bounds = array<i64: 12, 1>}, {transform_indices = @transform_3, window_bounds = array<i64: 1, 12, 24>}]} {
    %c0 = arith.constant 0 : index
    %c0_0 = arith.constant 0 : index
    %c0_1 = arith.constant 0 : index
    %c0_2 = arith.constant 0 : index
    %0 = vector.load %arg2[%c0, %c0_0, %c0_1, %c0_2] : memref<1x1x12x38xbf16, #tpu.memory_space<vmem>>, vector<1x1x12x26xbf16>
    %1 = vector.shape_cast %0 : vector<1x1x12x26xbf16> to vector<12x26xbf16>
    %2 = vector.extract_strided_slice %1 {offsets = [0, 0], sizes = [12, 24], strides = [1, 1]} : vector<12x26xbf16> to vector<12x24xbf16>
    %c0_3 = arith.constant 0 : index
    %c0_4 = arith.constant 0 : index
    %3 = vector.load %arg6[%c0_3, %c0_4] : memref<108x24xbf16, #tpu.memory_space<vmem>>, vector<12x24xbf16>
    tpu.vector_store %arg6[%c0_3, %c0_4], %2 {strides = array<i32>} : memref<108x24xbf16, #tpu.memory_space<vmem>>, vector<12x24xbf16>,
    %4 = vector.extract_strided_slice %1 {offsets = [0, 1], sizes = [12, 24], strides = [1, 1]} : vector<12x26xbf16> to vector<12x24xbf16>
    %c12 = arith.constant 12 : index
    %c0_5 = arith.constant 0 : index
    %5 = vector.load %arg6[%c12, %c0_5] : memref<108x24xbf16, #tpu.memory_space<vmem>>, vector<12x24xbf16>
    tpu.vector_store %arg6[%c12, %c0_5], %4 {strides = array<i32>} : memref<108x24xbf16, #tpu.memory_space<vmem>>, vector<12x24xbf16>,
    %6 = vector.extract_strided_slice %1 {offsets = [0, 2], sizes = [12, 24], strides = [1, 1]} : vector<12x26xbf16> to vector<12x24xbf16>
    %c24 = arith.constant 24 : index
    %c0_6 = arith.constant 0 : index
    %7 = vector.load %arg6[%c24, %c0_6] : memref<108x24xbf16, #tpu.memory_space<vmem>>, vector<12x24xbf16>
    tpu.vector_store %arg6[%c24, %c0_6], %6 {strides = array<i32>} : memref<108x24xbf16, #tpu.memory_space<vmem>>, vector<12x24xbf16>,
    %c0_7 = arith.constant 0 : index
    %c0_8 = arith.constant 0 : index
    %c0_9 = arith.constant 0 : index
    %c6 = arith.constant 6 : index
    %8 = vector.load %arg2[%c0_7, %c0_8, %c0_9, %c6] : memref<1x1x12x38xbf16, #tpu.memory_space<vmem>>, vector<1x1x12x26xbf16>
    %9 = vector.shape_cast %8 : vector<1x1x12x26xbf16> to vector<12x26xbf16>
    %10 = vector.extract_strided_slice %9 {offsets = [0, 0], sizes = [12, 24], strides = [1, 1]} : vector<12x26xbf16> to vector<12x24xbf16>
    %c36 = arith.constant 36 : index
    %c0_10 = arith.constant 0 : index
    %11 = vector.load %arg6[%c36, %c0_10] : memref<108x24xbf16, #tpu.memory_space<vmem>>, vector<12x24xbf16>
    tpu.vector_store %arg6[%c36, %c0_10], %10 {strides = array<i32>} : memref<108x24xbf16, #tpu.memory_space<vmem>>, vector<12x24xbf16>,
    %12 = vector.extract_strided_slice %9 {offsets = [0, 1], sizes = [12, 24], strides = [1, 1]} : vector<12x26xbf16> to vector<12x24xbf16>
    %c48 = arith.constant 48 : index
    %c0_11 = arith.constant 0 : index
    %13 = vector.load %arg6[%c48, %c0_11] : memref<108x24xbf16, #tpu.memory_space<vmem>>, vector<12x24xbf16>
    tpu.vector_store %arg6[%c48, %c0_11], %12 {strides = array<i32>} : memref<108x24xbf16, #tpu.memory_space<vmem>>, vector<12x24xbf16>,
    %14 = vector.extract_strided_slice %9 {offsets = [0, 2], sizes = [12, 24], strides = [1, 1]} : vector<12x26xbf16> to vector<12x24xbf16>
    %c60 = arith.constant 60 : index
    %c0_12 = arith.constant 0 : index
    %15 = vector.load %arg6[%c60, %c0_12] : memref<108x24xbf16, #tpu.memory_space<vmem>>, vector<12x24xbf16>
    tpu.vector_store %arg6[%c60, %c0_12], %14 {strides = array<i32>} : memref<108x24xbf16, #tpu.memory_space<vmem>>, vector<12x24xbf16>,
    %c0_13 = arith.constant 0 : index
    %c0_14 = arith.constant 0 : index
    %c0_15 = arith.constant 0 : index
    %c12_16 = arith.constant 12 : index
    %16 = vector.load %arg2[%c0_13, %c0_14, %c0_15, %c12_16] : memref<1x1x12x38xbf16, #tpu.memory_space<vmem>>, vector<1x1x12x26xbf16>
    %17 = vector.shape_cast %16 : vector<1x1x12x26xbf16> to vector<12x26xbf16>
    %18 = vector.extract_strided_slice %17 {offsets = [0, 0], sizes = [12, 24], strides = [1, 1]} : vector<12x26xbf16> to vector<12x24xbf16>
    %c72 = arith.constant 72 : index
    %c0_17 = arith.constant 0 : index
    %19 = vector.load %arg6[%c72, %c0_17] : memref<108x24xbf16, #tpu.memory_space<vmem>>, vector<12x24xbf16>
    tpu.vector_store %arg6[%c72, %c0_17], %18 {strides = array<i32>} : memref<108x24xbf16, #tpu.memory_space<vmem>>, vector<12x24xbf16>,
    %20 = vector.extract_strided_slice %17 {offsets = [0, 1], sizes = [12, 24], strides = [1, 1]} : vector<12x26xbf16> to vector<12x24xbf16>
    %c84 = arith.constant 84 : index
    %c0_18 = arith.constant 0 : index
    %21 = vector.load %arg6[%c84, %c0_18] : memref<108x24xbf16, #tpu.memory_space<vmem>>, vector<12x24xbf16>
    tpu.vector_store %arg6[%c84, %c0_18], %20 {strides = array<i32>} : memref<108x24xbf16, #tpu.memory_space<vmem>>, vector<12x24xbf16>,
    %22 = vector.extract_strided_slice %17 {offsets = [0, 2], sizes = [12, 24], strides = [1, 1]} : vector<12x26xbf16> to vector<12x24xbf16>
    %c96 = arith.constant 96 : index
    %c0_19 = arith.constant 0 : index
    %23 = vector.load %arg6[%c96, %c0_19] : memref<108x24xbf16, #tpu.memory_space<vmem>>, vector<12x24xbf16>
    tpu.vector_store %arg6[%c96, %c0_19], %22 {strides = array<i32>} : memref<108x24xbf16, #tpu.memory_space<vmem>>, vector<12x24xbf16>,
    %c0_20 = arith.constant 0 : index
    %c0_21 = arith.constant 0 : index
    %24 = vector.load %arg3[%c0_20, %c0_21] : memref<12x108xbf16, #tpu.memory_space<vmem>>, vector<12x108xbf16>
    %c0_22 = arith.constant 0 : index
    %c0_23 = arith.constant 0 : index
    %25 = vector.load %arg6[%c0_22, %c0_23] : memref<108x24xbf16, #tpu.memory_space<vmem>>, vector<108x24xbf16>
    %cst = arith.constant dense<0.000000e+00> : vector<12x24xf32>
    %26 = tpu.matmul %24, %25, %cst {dimension_numbers = #tpu.dot_dimension_numbers<[1], [0], [0], [1], [0, 0, 1, 1], [], []>} : vector<12x108xbf16>, vector<108x24xbf16>, vector<12x24xf32> -> vector<12x24xf32>
    %c0_24 = arith.constant 0 : index
    %c0_25 = arith.constant 0 : index
    %27 = vector.load %arg4[%c0_24, %c0_25] : memref<12x1xf32, #tpu.memory_space<vmem>>, vector<12x1xf32>
    %28 = vector.broadcast %27 : vector<12x1xf32> to vector<12x24xf32>
    %29 = arith.addf %26, %28 : vector<12x24xf32>
    %cst_26 = arith.constant 0.000000e+00 : f32
    %30 = vector.broadcast %cst_26 : f32 to vector<12x24xf32>
    %31 = arith.maximumf %29, %30 : vector<12x24xf32>
    %32 = arith.truncf %31 : vector<12x24xf32> to vector<12x24xbf16>
    %c0_27 = arith.constant 0 : index
    %c0_28 = arith.constant 0 : index
    %c0_29 = arith.constant 0 : index
    %33 = vector.load %arg5[%c0_27, %c0_28, %c0_29] : memref<1x12x24xbf16, #tpu.memory_space<vmem>>, vector<1x12x24xbf16>
    %34 = vector.shape_cast %33 : vector<1x12x24xbf16> to vector<12x24xbf16>
    %35 = vector.shape_cast %32 : vector<12x24xbf16> to vector<1x12x24xbf16>
    tpu.vector_store %arg5[%c0_27, %c0_28, %c0_29], %35 {strides = array<i32>} : memref<1x12x24xbf16, #tpu.memory_space<vmem>>, vector<1x12x24xbf16>,
    return
  }
  func.func @transform_0(%arg0: i32, %arg1: i32) -> (i32, i32, i32, i32) {
    %c0_i32 = arith.constant 0 : i32
    %c0_i32_0 = arith.constant 0 : i32
    %c0_i32_1 = arith.constant 0 : i32
    return %arg0, %arg1, %c0_i32, %c0_i32_0 : i32, i32, i32, i32
  }
  func.func @transform_1(%arg0: i32, %arg1: i32) -> (i32, i32) {
    %c0_i32 = arith.constant 0 : i32
    %c0_i32_0 = arith.constant 0 : i32
    %c0_i32_1 = arith.constant 0 : i32
    return %c0_i32, %c0_i32_0 : i32, i32
  }
  func.func @transform_2(%arg0: i32, %arg1: i32) -> (i32, i32) {
    %c0_i32 = arith.constant 0 : i32
    %c0_i32_0 = arith.constant 0 : i32
    %c0_i32_1 = arith.constant 0 : i32
    return %c0_i32, %c0_i32_0 : i32, i32
  }
  func.func @transform_3(%arg0: i32, %arg1: i32) -> (i32, i32, i32) {
    %c0_i32 = arith.constant 0 : i32
    %c0_i32_0 = arith.constant 0 : i32
    return %arg0, %c0_i32, %arg1 : i32, i32, i32
  }
}

module attributes {stable_mosaic.version = 11 : i64} {
  func.func @kernel(%arg0: i32, %arg1: i32, %arg2: memref<1x1x12x68xbf16, #tpu.memory_space<vmem>>, %arg3: memref<12x108xbf16, #tpu.memory_space<vmem>>, %arg4: memref<12x1xf32, #tpu.memory_space<vmem>>, %arg5: memref<1x12x32xbf16, #tpu.memory_space<vmem>>, %arg6: memref<108x32xbf16, #tpu.memory_space<vmem>>) attributes {dimension_semantics = [#tpu.dimension_semantics<parallel>, #tpu.dimension_semantics<parallel>], iteration_bounds = array<i64: 2, 1>, scalar_prefetch = 0 : i64, scratch_operands = 1 : i64, tpu.core_type = #tpu.core_type<tc>, window_params = [{transform_indices = @transform_0, window_bounds = array<i64: 1, 1, 12, 68>}, {pipeline_mode = #tpu.pipeline_mode<synchronous>, transform_indices = @transform_1, window_bounds = array<i64: 12, 108>}, {pipeline_mode = #tpu.pipeline_mode<synchronous>, transform_indices = @transform_2, window_bounds = array<i64: 12, 1>}, {transform_indices = @transform_3, window_bounds = array<i64: 1, 12, 32>}]} {
    %c0 = arith.constant 0 : index
    %c0_0 = arith.constant 0 : index
    %c0_1 = arith.constant 0 : index
    %c0_2 = arith.constant 0 : index
    %0 = vector.load %arg2[%c0, %c0_0, %c0_1, %c0_2] : memref<1x1x12x68xbf16, #tpu.memory_space<vmem>>, vector<1x1x12x36xbf16>
    %1 = vector.shape_cast %0 : vector<1x1x12x36xbf16> to vector<12x36xbf16>
    %2 = vector.extract_strided_slice %1 {offsets = [0, 0], sizes = [12, 32], strides = [1, 1]} : vector<12x36xbf16> to vector<12x32xbf16>
    %c0_3 = arith.constant 0 : index
    %c0_4 = arith.constant 0 : index
    %3 = vector.load %arg6[%c0_3, %c0_4] : memref<108x32xbf16, #tpu.memory_space<vmem>>, vector<12x32xbf16>
    tpu.vector_store %arg6[%c0_3, %c0_4], %2 {strides = array<i32>} : memref<108x32xbf16, #tpu.memory_space<vmem>>, vector<12x32xbf16>,
    %4 = vector.extract_strided_slice %1 {offsets = [0, 2], sizes = [12, 32], strides = [1, 1]} : vector<12x36xbf16> to vector<12x32xbf16>
    %c12 = arith.constant 12 : index
    %c0_5 = arith.constant 0 : index
    %5 = vector.load %arg6[%c12, %c0_5] : memref<108x32xbf16, #tpu.memory_space<vmem>>, vector<12x32xbf16>
    tpu.vector_store %arg6[%c12, %c0_5], %4 {strides = array<i32>} : memref<108x32xbf16, #tpu.memory_space<vmem>>, vector<12x32xbf16>,
    %6 = vector.extract_strided_slice %1 {offsets = [0, 4], sizes = [12, 32], strides = [1, 1]} : vector<12x36xbf16> to vector<12x32xbf16>
    %c24 = arith.constant 24 : index
    %c0_6 = arith.constant 0 : index
    %7 = vector.load %arg6[%c24, %c0_6] : memref<108x32xbf16, #tpu.memory_space<vmem>>, vector<12x32xbf16>
    tpu.vector_store %arg6[%c24, %c0_6], %6 {strides = array<i32>} : memref<108x32xbf16, #tpu.memory_space<vmem>>, vector<12x32xbf16>,
    %c0_7 = arith.constant 0 : index
    %c0_8 = arith.constant 0 : index
    %c0_9 = arith.constant 0 : index
    %c16 = arith.constant 16 : index
    %8 = vector.load %arg2[%c0_7, %c0_8, %c0_9, %c16] : memref<1x1x12x68xbf16, #tpu.memory_space<vmem>>, vector<1x1x12x36xbf16>
    %9 = vector.shape_cast %8 : vector<1x1x12x36xbf16> to vector<12x36xbf16>
    %10 = vector.extract_strided_slice %9 {offsets = [0, 0], sizes = [12, 32], strides = [1, 1]} : vector<12x36xbf16> to vector<12x32xbf16>
    %c36 = arith.constant 36 : index
    %c0_10 = arith.constant 0 : index
    %11 = vector.load %arg6[%c36, %c0_10] : memref<108x32xbf16, #tpu.memory_space<vmem>>, vector<12x32xbf16>
    tpu.vector_store %arg6[%c36, %c0_10], %10 {strides = array<i32>} : memref<108x32xbf16, #tpu.memory_space<vmem>>, vector<12x32xbf16>,
    %12 = vector.extract_strided_slice %9 {offsets = [0, 2], sizes = [12, 32], strides = [1, 1]} : vector<12x36xbf16> to vector<12x32xbf16>
    %c48 = arith.constant 48 : index
    %c0_11 = arith.constant 0 : index
    %13 = vector.load %arg6[%c48, %c0_11] : memref<108x32xbf16, #tpu.memory_space<vmem>>, vector<12x32xbf16>
    tpu.vector_store %arg6[%c48, %c0_11], %12 {strides = array<i32>} : memref<108x32xbf16, #tpu.memory_space<vmem>>, vector<12x32xbf16>,
    %14 = vector.extract_strided_slice %9 {offsets = [0, 4], sizes = [12, 32], strides = [1, 1]} : vector<12x36xbf16> to vector<12x32xbf16>
    %c60 = arith.constant 60 : index
    %c0_12 = arith.constant 0 : index
    %15 = vector.load %arg6[%c60, %c0_12] : memref<108x32xbf16, #tpu.memory_space<vmem>>, vector<12x32xbf16>
    tpu.vector_store %arg6[%c60, %c0_12], %14 {strides = array<i32>} : memref<108x32xbf16, #tpu.memory_space<vmem>>, vector<12x32xbf16>,
    %c0_13 = arith.constant 0 : index
    %c0_14 = arith.constant 0 : index
    %c0_15 = arith.constant 0 : index
    %c32 = arith.constant 32 : index
    %16 = vector.load %arg2[%c0_13, %c0_14, %c0_15, %c32] : memref<1x1x12x68xbf16, #tpu.memory_space<vmem>>, vector<1x1x12x36xbf16>
    %17 = vector.shape_cast %16 : vector<1x1x12x36xbf16> to vector<12x36xbf16>
    %18 = vector.extract_strided_slice %17 {offsets = [0, 0], sizes = [12, 32], strides = [1, 1]} : vector<12x36xbf16> to vector<12x32xbf16>
    %c72 = arith.constant 72 : index
    %c0_16 = arith.constant 0 : index
    %19 = vector.load %arg6[%c72, %c0_16] : memref<108x32xbf16, #tpu.memory_space<vmem>>, vector<12x32xbf16>
    tpu.vector_store %arg6[%c72, %c0_16], %18 {strides = array<i32>} : memref<108x32xbf16, #tpu.memory_space<vmem>>, vector<12x32xbf16>,
    %20 = vector.extract_strided_slice %17 {offsets = [0, 2], sizes = [12, 32], strides = [1, 1]} : vector<12x36xbf16> to vector<12x32xbf16>
    %c84 = arith.constant 84 : index
    %c0_17 = arith.constant 0 : index
    %21 = vector.load %arg6[%c84, %c0_17] : memref<108x32xbf16, #tpu.memory_space<vmem>>, vector<12x32xbf16>
    tpu.vector_store %arg6[%c84, %c0_17], %20 {strides = array<i32>} : memref<108x32xbf16, #tpu.memory_space<vmem>>, vector<12x32xbf16>,
    %22 = vector.extract_strided_slice %17 {offsets = [0, 4], sizes = [12, 32], strides = [1, 1]} : vector<12x36xbf16> to vector<12x32xbf16>
    %c96 = arith.constant 96 : index
    %c0_18 = arith.constant 0 : index
    %23 = vector.load %arg6[%c96, %c0_18] : memref<108x32xbf16, #tpu.memory_space<vmem>>, vector<12x32xbf16>
    tpu.vector_store %arg6[%c96, %c0_18], %22 {strides = array<i32>} : memref<108x32xbf16, #tpu.memory_space<vmem>>, vector<12x32xbf16>,
    %c0_19 = arith.constant 0 : index
    %c0_20 = arith.constant 0 : index
    %24 = vector.load %arg3[%c0_19, %c0_20] : memref<12x108xbf16, #tpu.memory_space<vmem>>, vector<12x108xbf16>
    %c0_21 = arith.constant 0 : index
    %c0_22 = arith.constant 0 : index
    %25 = vector.load %arg6[%c0_21, %c0_22] : memref<108x32xbf16, #tpu.memory_space<vmem>>, vector<108x32xbf16>
    %cst = arith.constant dense<0.000000e+00> : vector<12x32xf32>
    %26 = tpu.matmul %24, %25, %cst {dimension_numbers = #tpu.dot_dimension_numbers<[1], [0], [0], [1], [0, 0, 1, 1], [], []>} : vector<12x108xbf16>, vector<108x32xbf16>, vector<12x32xf32> -> vector<12x32xf32>
    %c0_23 = arith.constant 0 : index
    %c0_24 = arith.constant 0 : index
    %27 = vector.load %arg4[%c0_23, %c0_24] : memref<12x1xf32, #tpu.memory_space<vmem>>, vector<12x1xf32>
    %28 = vector.broadcast %27 : vector<12x1xf32> to vector<12x32xf32>
    %29 = arith.addf %26, %28 : vector<12x32xf32>
    %cst_25 = arith.constant 0.000000e+00 : f32
    %30 = vector.broadcast %cst_25 : f32 to vector<12x32xf32>
    %31 = arith.maximumf %29, %30 : vector<12x32xf32>
    %32 = arith.truncf %31 : vector<12x32xf32> to vector<12x32xbf16>
    %c0_26 = arith.constant 0 : index
    %c0_27 = arith.constant 0 : index
    %c0_28 = arith.constant 0 : index
    %33 = vector.load %arg5[%c0_26, %c0_27, %c0_28] : memref<1x12x32xbf16, #tpu.memory_space<vmem>>, vector<1x12x32xbf16>
    %34 = vector.shape_cast %33 : vector<1x12x32xbf16> to vector<12x32xbf16>
    %35 = vector.shape_cast %32 : vector<12x32xbf16> to vector<1x12x32xbf16>
    tpu.vector_store %arg5[%c0_26, %c0_27, %c0_28], %35 {strides = array<i32>} : memref<1x12x32xbf16, #tpu.memory_space<vmem>>, vector<1x12x32xbf16>,
    return
  }
  func.func @transform_0(%arg0: i32, %arg1: i32) -> (i32, i32, i32, i32) {
    %c0_i32 = arith.constant 0 : i32
    %c0_i32_0 = arith.constant 0 : i32
    %c0_i32_1 = arith.constant 0 : i32
    return %arg0, %arg1, %c0_i32, %c0_i32_0 : i32, i32, i32, i32
  }
  func.func @transform_1(%arg0: i32, %arg1: i32) -> (i32, i32) {
    %c0_i32 = arith.constant 0 : i32
    %c0_i32_0 = arith.constant 0 : i32
    %c0_i32_1 = arith.constant 0 : i32
    return %c0_i32, %c0_i32_0 : i32, i32
  }
  func.func @transform_2(%arg0: i32, %arg1: i32) -> (i32, i32) {
    %c0_i32 = arith.constant 0 : i32
    %c0_i32_0 = arith.constant 0 : i32
    %c0_i32_1 = arith.constant 0 : i32
    return %c0_i32, %c0_i32_0 : i32, i32
  }
  func.func @transform_3(%arg0: i32, %arg1: i32) -> (i32, i32, i32) {
    %c0_i32 = arith.constant 0 : i32
    %c0_i32_0 = arith.constant 0 : i32
    return %arg0, %c0_i32, %arg1 : i32, i32, i32
  }
}

module attributes {stable_mosaic.version = 11 : i64} {
  func.func @kernel(%arg0: i32, %arg1: i32, %arg2: memref<1x1x12x38xbf16, #tpu.memory_space<vmem>>, %arg3: memref<1x1x12x38xbf16, #tpu.memory_space<vmem>>, %arg4: memref<12x216xbf16, #tpu.memory_space<vmem>>, %arg5: memref<12x1xf32, #tpu.memory_space<vmem>>, %arg6: memref<1x12x24xbf16, #tpu.memory_space<vmem>>, %arg7: memref<216x24xbf16, #tpu.memory_space<vmem>>) attributes {dimension_semantics = [#tpu.dimension_semantics<parallel>, #tpu.dimension_semantics<parallel>], iteration_bounds = array<i64: 2, 1>, scalar_prefetch = 0 : i64, scratch_operands = 1 : i64, tpu.core_type = #tpu.core_type<tc>, window_params = [{transform_indices = @transform_0, window_bounds = array<i64: 1, 1, 12, 38>}, {transform_indices = @transform_1, window_bounds = array<i64: 1, 1, 12, 38>}, {pipeline_mode = #tpu.pipeline_mode<synchronous>, transform_indices = @transform_2, window_bounds = array<i64: 12, 216>}, {pipeline_mode = #tpu.pipeline_mode<synchronous>, transform_indices = @transform_3, window_bounds = array<i64: 12, 1>}, {transform_indices = @transform_4, window_bounds = array<i64: 1, 12, 24>}]} {
    %c0 = arith.constant 0 : index
    %c0_0 = arith.constant 0 : index
    %c0_1 = arith.constant 0 : index
    %c0_2 = arith.constant 0 : index
    %0 = vector.load %arg2[%c0, %c0_0, %c0_1, %c0_2] : memref<1x1x12x38xbf16, #tpu.memory_space<vmem>>, vector<1x1x12x26xbf16>
    %1 = vector.shape_cast %0 : vector<1x1x12x26xbf16> to vector<12x26xbf16>
    %2 = vector.extract_strided_slice %1 {offsets = [0, 0], sizes = [12, 24], strides = [1, 1]} : vector<12x26xbf16> to vector<12x24xbf16>
    %c0_3 = arith.constant 0 : index
    %c0_4 = arith.constant 0 : index
    %3 = vector.load %arg7[%c0_3, %c0_4] : memref<216x24xbf16, #tpu.memory_space<vmem>>, vector<12x24xbf16>
    tpu.vector_store %arg7[%c0_3, %c0_4], %2 {strides = array<i32>} : memref<216x24xbf16, #tpu.memory_space<vmem>>, vector<12x24xbf16>,
    %4 = vector.extract_strided_slice %1 {offsets = [0, 1], sizes = [12, 24], strides = [1, 1]} : vector<12x26xbf16> to vector<12x24xbf16>
    %c12 = arith.constant 12 : index
    %c0_5 = arith.constant 0 : index
    %5 = vector.load %arg7[%c12, %c0_5] : memref<216x24xbf16, #tpu.memory_space<vmem>>, vector<12x24xbf16>
    tpu.vector_store %arg7[%c12, %c0_5], %4 {strides = array<i32>} : memref<216x24xbf16, #tpu.memory_space<vmem>>, vector<12x24xbf16>,
    %6 = vector.extract_strided_slice %1 {offsets = [0, 2], sizes = [12, 24], strides = [1, 1]} : vector<12x26xbf16> to vector<12x24xbf16>
    %c24 = arith.constant 24 : index
    %c0_6 = arith.constant 0 : index
    %7 = vector.load %arg7[%c24, %c0_6] : memref<216x24xbf16, #tpu.memory_space<vmem>>, vector<12x24xbf16>
    tpu.vector_store %arg7[%c24, %c0_6], %6 {strides = array<i32>} : memref<216x24xbf16, #tpu.memory_space<vmem>>, vector<12x24xbf16>,
    %c0_7 = arith.constant 0 : index
    %c0_8 = arith.constant 0 : index
    %c0_9 = arith.constant 0 : index
    %c6 = arith.constant 6 : index
    %8 = vector.load %arg2[%c0_7, %c0_8, %c0_9, %c6] : memref<1x1x12x38xbf16, #tpu.memory_space<vmem>>, vector<1x1x12x26xbf16>
    %9 = vector.shape_cast %8 : vector<1x1x12x26xbf16> to vector<12x26xbf16>
    %10 = vector.extract_strided_slice %9 {offsets = [0, 0], sizes = [12, 24], strides = [1, 1]} : vector<12x26xbf16> to vector<12x24xbf16>
    %c36 = arith.constant 36 : index
    %c0_10 = arith.constant 0 : index
    %11 = vector.load %arg7[%c36, %c0_10] : memref<216x24xbf16, #tpu.memory_space<vmem>>, vector<12x24xbf16>
    tpu.vector_store %arg7[%c36, %c0_10], %10 {strides = array<i32>} : memref<216x24xbf16, #tpu.memory_space<vmem>>, vector<12x24xbf16>,
    %12 = vector.extract_strided_slice %9 {offsets = [0, 1], sizes = [12, 24], strides = [1, 1]} : vector<12x26xbf16> to vector<12x24xbf16>
    %c48 = arith.constant 48 : index
    %c0_11 = arith.constant 0 : index
    %13 = vector.load %arg7[%c48, %c0_11] : memref<216x24xbf16, #tpu.memory_space<vmem>>, vector<12x24xbf16>
    tpu.vector_store %arg7[%c48, %c0_11], %12 {strides = array<i32>} : memref<216x24xbf16, #tpu.memory_space<vmem>>, vector<12x24xbf16>,
    %14 = vector.extract_strided_slice %9 {offsets = [0, 2], sizes = [12, 24], strides = [1, 1]} : vector<12x26xbf16> to vector<12x24xbf16>
    %c60 = arith.constant 60 : index
    %c0_12 = arith.constant 0 : index
    %15 = vector.load %arg7[%c60, %c0_12] : memref<216x24xbf16, #tpu.memory_space<vmem>>, vector<12x24xbf16>
    tpu.vector_store %arg7[%c60, %c0_12], %14 {strides = array<i32>} : memref<216x24xbf16, #tpu.memory_space<vmem>>, vector<12x24xbf16>,
    %c0_13 = arith.constant 0 : index
    %c0_14 = arith.constant 0 : index
    %c0_15 = arith.constant 0 : index
    %c12_16 = arith.constant 12 : index
    %16 = vector.load %arg2[%c0_13, %c0_14, %c0_15, %c12_16] : memref<1x1x12x38xbf16, #tpu.memory_space<vmem>>, vector<1x1x12x26xbf16>
    %17 = vector.shape_cast %16 : vector<1x1x12x26xbf16> to vector<12x26xbf16>
    %18 = vector.extract_strided_slice %17 {offsets = [0, 0], sizes = [12, 24], strides = [1, 1]} : vector<12x26xbf16> to vector<12x24xbf16>
    %c72 = arith.constant 72 : index
    %c0_17 = arith.constant 0 : index
    %19 = vector.load %arg7[%c72, %c0_17] : memref<216x24xbf16, #tpu.memory_space<vmem>>, vector<12x24xbf16>
    tpu.vector_store %arg7[%c72, %c0_17], %18 {strides = array<i32>} : memref<216x24xbf16, #tpu.memory_space<vmem>>, vector<12x24xbf16>,
    %20 = vector.extract_strided_slice %17 {offsets = [0, 1], sizes = [12, 24], strides = [1, 1]} : vector<12x26xbf16> to vector<12x24xbf16>
    %c84 = arith.constant 84 : index
    %c0_18 = arith.constant 0 : index
    %21 = vector.load %arg7[%c84, %c0_18] : memref<216x24xbf16, #tpu.memory_space<vmem>>, vector<12x24xbf16>
    tpu.vector_store %arg7[%c84, %c0_18], %20 {strides = array<i32>} : memref<216x24xbf16, #tpu.memory_space<vmem>>, vector<12x24xbf16>,
    %22 = vector.extract_strided_slice %17 {offsets = [0, 2], sizes = [12, 24], strides = [1, 1]} : vector<12x26xbf16> to vector<12x24xbf16>
    %c96 = arith.constant 96 : index
    %c0_19 = arith.constant 0 : index
    %23 = vector.load %arg7[%c96, %c0_19] : memref<216x24xbf16, #tpu.memory_space<vmem>>, vector<12x24xbf16>
    tpu.vector_store %arg7[%c96, %c0_19], %22 {strides = array<i32>} : memref<216x24xbf16, #tpu.memory_space<vmem>>, vector<12x24xbf16>,
    %c0_20 = arith.constant 0 : index
    %c0_21 = arith.constant 0 : index
    %c0_22 = arith.constant 0 : index
    %c0_23 = arith.constant 0 : index
    %24 = vector.load %arg3[%c0_20, %c0_21, %c0_22, %c0_23] : memref<1x1x12x38xbf16, #tpu.memory_space<vmem>>, vector<1x1x12x26xbf16>
    %25 = vector.shape_cast %24 : vector<1x1x12x26xbf16> to vector<12x26xbf16>
    %26 = vector.extract_strided_slice %25 {offsets = [0, 0], sizes = [12, 24], strides = [1, 1]} : vector<12x26xbf16> to vector<12x24xbf16>
    %c108 = arith.constant 108 : index
    %c0_24 = arith.constant 0 : index
    %27 = vector.load %arg7[%c108, %c0_24] : memref<216x24xbf16, #tpu.memory_space<vmem>>, vector<12x24xbf16>
    tpu.vector_store %arg7[%c108, %c0_24], %26 {strides = array<i32>} : memref<216x24xbf16, #tpu.memory_space<vmem>>, vector<12x24xbf16>,
    %28 = vector.extract_strided_slice %25 {offsets = [0, 1], sizes = [12, 24], strides = [1, 1]} : vector<12x26xbf16> to vector<12x24xbf16>
    %c120 = arith.constant 120 : index
    %c0_25 = arith.constant 0 : index
    %29 = vector.load %arg7[%c120, %c0_25] : memref<216x24xbf16, #tpu.memory_space<vmem>>, vector<12x24xbf16>
    tpu.vector_store %arg7[%c120, %c0_25], %28 {strides = array<i32>} : memref<216x24xbf16, #tpu.memory_space<vmem>>, vector<12x24xbf16>,
    %30 = vector.extract_strided_slice %25 {offsets = [0, 2], sizes = [12, 24], strides = [1, 1]} : vector<12x26xbf16> to vector<12x24xbf16>
    %c132 = arith.constant 132 : index
    %c0_26 = arith.constant 0 : index
    %31 = vector.load %arg7[%c132, %c0_26] : memref<216x24xbf16, #tpu.memory_space<vmem>>, vector<12x24xbf16>
    tpu.vector_store %arg7[%c132, %c0_26], %30 {strides = array<i32>} : memref<216x24xbf16, #tpu.memory_space<vmem>>, vector<12x24xbf16>,
    %c0_27 = arith.constant 0 : index
    %c0_28 = arith.constant 0 : index
    %c0_29 = arith.constant 0 : index
    %c6_30 = arith.constant 6 : index
    %32 = vector.load %arg3[%c0_27, %c0_28, %c0_29, %c6_30] : memref<1x1x12x38xbf16, #tpu.memory_space<vmem>>, vector<1x1x12x26xbf16>
    %33 = vector.shape_cast %32 : vector<1x1x12x26xbf16> to vector<12x26xbf16>
    %34 = vector.extract_strided_slice %33 {offsets = [0, 0], sizes = [12, 24], strides = [1, 1]} : vector<12x26xbf16> to vector<12x24xbf16>
    %c144 = arith.constant 144 : index
    %c0_31 = arith.constant 0 : index
    %35 = vector.load %arg7[%c144, %c0_31] : memref<216x24xbf16, #tpu.memory_space<vmem>>, vector<12x24xbf16>
    tpu.vector_store %arg7[%c144, %c0_31], %34 {strides = array<i32>} : memref<216x24xbf16, #tpu.memory_space<vmem>>, vector<12x24xbf16>,
    %36 = vector.extract_strided_slice %33 {offsets = [0, 1], sizes = [12, 24], strides = [1, 1]} : vector<12x26xbf16> to vector<12x24xbf16>
    %c156 = arith.constant 156 : index
    %c0_32 = arith.constant 0 : index
    %37 = vector.load %arg7[%c156, %c0_32] : memref<216x24xbf16, #tpu.memory_space<vmem>>, vector<12x24xbf16>
    tpu.vector_store %arg7[%c156, %c0_32], %36 {strides = array<i32>} : memref<216x24xbf16, #tpu.memory_space<vmem>>, vector<12x24xbf16>,
    %38 = vector.extract_strided_slice %33 {offsets = [0, 2], sizes = [12, 24], strides = [1, 1]} : vector<12x26xbf16> to vector<12x24xbf16>
    %c168 = arith.constant 168 : index
    %c0_33 = arith.constant 0 : index
    %39 = vector.load %arg7[%c168, %c0_33] : memref<216x24xbf16, #tpu.memory_space<vmem>>, vector<12x24xbf16>
    tpu.vector_store %arg7[%c168, %c0_33], %38 {strides = array<i32>} : memref<216x24xbf16, #tpu.memory_space<vmem>>, vector<12x24xbf16>,
    %c0_34 = arith.constant 0 : index
    %c0_35 = arith.constant 0 : index
    %c0_36 = arith.constant 0 : index
    %c12_37 = arith.constant 12 : index
    %40 = vector.load %arg3[%c0_34, %c0_35, %c0_36, %c12_37] : memref<1x1x12x38xbf16, #tpu.memory_space<vmem>>, vector<1x1x12x26xbf16>
    %41 = vector.shape_cast %40 : vector<1x1x12x26xbf16> to vector<12x26xbf16>
    %42 = vector.extract_strided_slice %41 {offsets = [0, 0], sizes = [12, 24], strides = [1, 1]} : vector<12x26xbf16> to vector<12x24xbf16>
    %c180 = arith.constant 180 : index
    %c0_38 = arith.constant 0 : index
    %43 = vector.load %arg7[%c180, %c0_38] : memref<216x24xbf16, #tpu.memory_space<vmem>>, vector<12x24xbf16>
    tpu.vector_store %arg7[%c180, %c0_38], %42 {strides = array<i32>} : memref<216x24xbf16, #tpu.memory_space<vmem>>, vector<12x24xbf16>,
    %44 = vector.extract_strided_slice %41 {offsets = [0, 1], sizes = [12, 24], strides = [1, 1]} : vector<12x26xbf16> to vector<12x24xbf16>
    %c192 = arith.constant 192 : index
    %c0_39 = arith.constant 0 : index
    %45 = vector.load %arg7[%c192, %c0_39] : memref<216x24xbf16, #tpu.memory_space<vmem>>, vector<12x24xbf16>
    tpu.vector_store %arg7[%c192, %c0_39], %44 {strides = array<i32>} : memref<216x24xbf16, #tpu.memory_space<vmem>>, vector<12x24xbf16>,
    %46 = vector.extract_strided_slice %41 {offsets = [0, 2], sizes = [12, 24], strides = [1, 1]} : vector<12x26xbf16> to vector<12x24xbf16>
    %c204 = arith.constant 204 : index
    %c0_40 = arith.constant 0 : index
    %47 = vector.load %arg7[%c204, %c0_40] : memref<216x24xbf16, #tpu.memory_space<vmem>>, vector<12x24xbf16>
    tpu.vector_store %arg7[%c204, %c0_40], %46 {strides = array<i32>} : memref<216x24xbf16, #tpu.memory_space<vmem>>, vector<12x24xbf16>,
    %c0_41 = arith.constant 0 : index
    %c0_42 = arith.constant 0 : index
    %48 = vector.load %arg4[%c0_41, %c0_42] : memref<12x216xbf16, #tpu.memory_space<vmem>>, vector<12x216xbf16>
    %c0_43 = arith.constant 0 : index
    %c0_44 = arith.constant 0 : index
    %49 = vector.load %arg7[%c0_43, %c0_44] : memref<216x24xbf16, #tpu.memory_space<vmem>>, vector<216x24xbf16>
    %cst = arith.constant dense<0.000000e+00> : vector<12x24xf32>
    %50 = tpu.matmul %48, %49, %cst {dimension_numbers = #tpu.dot_dimension_numbers<[1], [0], [0], [1], [0, 0, 1, 1], [], []>} : vector<12x216xbf16>, vector<216x24xbf16>, vector<12x24xf32> -> vector<12x24xf32>
    %c0_45 = arith.constant 0 : index
    %c0_46 = arith.constant 0 : index
    %51 = vector.load %arg5[%c0_45, %c0_46] : memref<12x1xf32, #tpu.memory_space<vmem>>, vector<12x1xf32>
    %52 = vector.broadcast %51 : vector<12x1xf32> to vector<12x24xf32>
    %53 = arith.addf %50, %52 : vector<12x24xf32>
    %cst_47 = arith.constant 0.000000e+00 : f32
    %54 = vector.broadcast %cst_47 : f32 to vector<12x24xf32>
    %55 = arith.maximumf %53, %54 : vector<12x24xf32>
    %56 = arith.truncf %55 : vector<12x24xf32> to vector<12x24xbf16>
    %c0_48 = arith.constant 0 : index
    %c0_49 = arith.constant 0 : index
    %c0_50 = arith.constant 0 : index
    %57 = vector.load %arg6[%c0_48, %c0_49, %c0_50] : memref<1x12x24xbf16, #tpu.memory_space<vmem>>, vector<1x12x24xbf16>
    %58 = vector.shape_cast %57 : vector<1x12x24xbf16> to vector<12x24xbf16>
    %59 = vector.shape_cast %56 : vector<12x24xbf16> to vector<1x12x24xbf16>
    tpu.vector_store %arg6[%c0_48, %c0_49, %c0_50], %59 {strides = array<i32>} : memref<1x12x24xbf16, #tpu.memory_space<vmem>>, vector<1x12x24xbf16>,
    return
  }
  func.func @transform_0(%arg0: i32, %arg1: i32) -> (i32, i32, i32, i32) {
    %c0_i32 = arith.constant 0 : i32
    %c0_i32_0 = arith.constant 0 : i32
    %c0_i32_1 = arith.constant 0 : i32
    return %arg0, %arg1, %c0_i32, %c0_i32_0 : i32, i32, i32, i32
  }
  func.func @transform_1(%arg0: i32, %arg1: i32) -> (i32, i32, i32, i32) {
    %c0_i32 = arith.constant 0 : i32
    %c0_i32_0 = arith.constant 0 : i32
    %c0_i32_1 = arith.constant 0 : i32
    return %arg0, %arg1, %c0_i32, %c0_i32_0 : i32, i32, i32, i32
  }
  func.func @transform_2(%arg0: i32, %arg1: i32) -> (i32, i32) {
    %c0_i32 = arith.constant 0 : i32
    %c0_i32_0 = arith.constant 0 : i32
    %c0_i32_1 = arith.constant 0 : i32
    return %c0_i32, %c0_i32_0 : i32, i32
  }
  func.func @transform_3(%arg0: i32, %arg1: i32) -> (i32, i32) {
    %c0_i32 = arith.constant 0 : i32
    %c0_i32_0 = arith.constant 0 : i32
    %c0_i32_1 = arith.constant 0 : i32
    return %c0_i32, %c0_i32_0 : i32, i32
  }
  func.func @transform_4(%arg0: i32, %arg1: i32) -> (i32, i32, i32) {
    %c0_i32 = arith.constant 0 : i32
    %c0_i32_0 = arith.constant 0 : i32
    return %arg0, %c0_i32, %arg1 : i32, i32, i32
  }
}

module attributes {stable_mosaic.version = 11 : i64} {
  func.func @kernel(%arg0: i32, %arg1: i32, %arg2: memref<1x1x12x102xbf16, #tpu.memory_space<vmem>>, %arg3: memref<1x1x12x102xbf16, #tpu.memory_space<vmem>>, %arg4: memref<12x216xbf16, #tpu.memory_space<vmem>>, %arg5: memref<12x1xf32, #tpu.memory_space<vmem>>, %arg6: memref<1x12x80xbf16, #tpu.memory_space<vmem>>, %arg7: memref<216x80xbf16, #tpu.memory_space<vmem>>) attributes {dimension_semantics = [#tpu.dimension_semantics<parallel>, #tpu.dimension_semantics<parallel>], iteration_bounds = array<i64: 2, 1>, scalar_prefetch = 0 : i64, scratch_operands = 1 : i64, tpu.core_type = #tpu.core_type<tc>, window_params = [{transform_indices = @transform_0, window_bounds = array<i64: 1, 1, 12, 102>}, {transform_indices = @transform_1, window_bounds = array<i64: 1, 1, 12, 102>}, {pipeline_mode = #tpu.pipeline_mode<synchronous>, transform_indices = @transform_2, window_bounds = array<i64: 12, 216>}, {pipeline_mode = #tpu.pipeline_mode<synchronous>, transform_indices = @transform_3, window_bounds = array<i64: 12, 1>}, {transform_indices = @transform_4, window_bounds = array<i64: 1, 12, 80>}]} {
    %c0 = arith.constant 0 : index
    %c0_0 = arith.constant 0 : index
    %c0_1 = arith.constant 0 : index
    %c0_2 = arith.constant 0 : index
    %0 = vector.load %arg2[%c0, %c0_0, %c0_1, %c0_2] : memref<1x1x12x102xbf16, #tpu.memory_space<vmem>>, vector<1x1x12x82xbf16>
    %1 = vector.shape_cast %0 : vector<1x1x12x82xbf16> to vector<12x82xbf16>
    %2 = vector.extract_strided_slice %1 {offsets = [0, 0], sizes = [12, 80], strides = [1, 1]} : vector<12x82xbf16> to vector<12x80xbf16>
    %c0_3 = arith.constant 0 : index
    %c0_4 = arith.constant 0 : index
    %3 = vector.load %arg7[%c0_3, %c0_4] : memref<216x80xbf16, #tpu.memory_space<vmem>>, vector<12x80xbf16>
    tpu.vector_store %arg7[%c0_3, %c0_4], %2 {strides = array<i32>} : memref<216x80xbf16, #tpu.memory_space<vmem>>, vector<12x80xbf16>,
    %4 = vector.extract_strided_slice %1 {offsets = [0, 1], sizes = [12, 80], strides = [1, 1]} : vector<12x82xbf16> to vector<12x80xbf16>
    %c12 = arith.constant 12 : index
    %c0_5 = arith.constant 0 : index
    %5 = vector.load %arg7[%c12, %c0_5] : memref<216x80xbf16, #tpu.memory_space<vmem>>, vector<12x80xbf16>
    tpu.vector_store %arg7[%c12, %c0_5], %4 {strides = array<i32>} : memref<216x80xbf16, #tpu.memory_space<vmem>>, vector<12x80xbf16>,
    %6 = vector.extract_strided_slice %1 {offsets = [0, 2], sizes = [12, 80], strides = [1, 1]} : vector<12x82xbf16> to vector<12x80xbf16>
    %c24 = arith.constant 24 : index
    %c0_6 = arith.constant 0 : index
    %7 = vector.load %arg7[%c24, %c0_6] : memref<216x80xbf16, #tpu.memory_space<vmem>>, vector<12x80xbf16>
    tpu.vector_store %arg7[%c24, %c0_6], %6 {strides = array<i32>} : memref<216x80xbf16, #tpu.memory_space<vmem>>, vector<12x80xbf16>,
    %c0_7 = arith.constant 0 : index
    %c0_8 = arith.constant 0 : index
    %c0_9 = arith.constant 0 : index
    %c10 = arith.constant 10 : index
    %8 = vector.load %arg2[%c0_7, %c0_8, %c0_9, %c10] : memref<1x1x12x102xbf16, #tpu.memory_space<vmem>>, vector<1x1x12x82xbf16>
    %9 = vector.shape_cast %8 : vector<1x1x12x82xbf16> to vector<12x82xbf16>
    %10 = vector.extract_strided_slice %9 {offsets = [0, 0], sizes = [12, 80], strides = [1, 1]} : vector<12x82xbf16> to vector<12x80xbf16>
    %c36 = arith.constant 36 : index
    %c0_10 = arith.constant 0 : index
    %11 = vector.load %arg7[%c36, %c0_10] : memref<216x80xbf16, #tpu.memory_space<vmem>>, vector<12x80xbf16>
    tpu.vector_store %arg7[%c36, %c0_10], %10 {strides = array<i32>} : memref<216x80xbf16, #tpu.memory_space<vmem>>, vector<12x80xbf16>,
    %12 = vector.extract_strided_slice %9 {offsets = [0, 1], sizes = [12, 80], strides = [1, 1]} : vector<12x82xbf16> to vector<12x80xbf16>
    %c48 = arith.constant 48 : index
    %c0_11 = arith.constant 0 : index
    %13 = vector.load %arg7[%c48, %c0_11] : memref<216x80xbf16, #tpu.memory_space<vmem>>, vector<12x80xbf16>
    tpu.vector_store %arg7[%c48, %c0_11], %12 {strides = array<i32>} : memref<216x80xbf16, #tpu.memory_space<vmem>>, vector<12x80xbf16>,
    %14 = vector.extract_strided_slice %9 {offsets = [0, 2], sizes = [12, 80], strides = [1, 1]} : vector<12x82xbf16> to vector<12x80xbf16>
    %c60 = arith.constant 60 : index
    %c0_12 = arith.constant 0 : index
    %15 = vector.load %arg7[%c60, %c0_12] : memref<216x80xbf16, #tpu.memory_space<vmem>>, vector<12x80xbf16>
    tpu.vector_store %arg7[%c60, %c0_12], %14 {strides = array<i32>} : memref<216x80xbf16, #tpu.memory_space<vmem>>, vector<12x80xbf16>,
    %c0_13 = arith.constant 0 : index
    %c0_14 = arith.constant 0 : index
    %c0_15 = arith.constant 0 : index
    %c20 = arith.constant 20 : index
    %16 = vector.load %arg2[%c0_13, %c0_14, %c0_15, %c20] : memref<1x1x12x102xbf16, #tpu.memory_space<vmem>>, vector<1x1x12x82xbf16>
    %17 = vector.shape_cast %16 : vector<1x1x12x82xbf16> to vector<12x82xbf16>
    %18 = vector.extract_strided_slice %17 {offsets = [0, 0], sizes = [12, 80], strides = [1, 1]} : vector<12x82xbf16> to vector<12x80xbf16>
    %c72 = arith.constant 72 : index
    %c0_16 = arith.constant 0 : index
    %19 = vector.load %arg7[%c72, %c0_16] : memref<216x80xbf16, #tpu.memory_space<vmem>>, vector<12x80xbf16>
    tpu.vector_store %arg7[%c72, %c0_16], %18 {strides = array<i32>} : memref<216x80xbf16, #tpu.memory_space<vmem>>, vector<12x80xbf16>,
    %20 = vector.extract_strided_slice %17 {offsets = [0, 1], sizes = [12, 80], strides = [1, 1]} : vector<12x82xbf16> to vector<12x80xbf16>
    %c84 = arith.constant 84 : index
    %c0_17 = arith.constant 0 : index
    %21 = vector.load %arg7[%c84, %c0_17] : memref<216x80xbf16, #tpu.memory_space<vmem>>, vector<12x80xbf16>
    tpu.vector_store %arg7[%c84, %c0_17], %20 {strides = array<i32>} : memref<216x80xbf16, #tpu.memory_space<vmem>>, vector<12x80xbf16>,
    %22 = vector.extract_strided_slice %17 {offsets = [0, 2], sizes = [12, 80], strides = [1, 1]} : vector<12x82xbf16> to vector<12x80xbf16>
    %c96 = arith.constant 96 : index
    %c0_18 = arith.constant 0 : index
    %23 = vector.load %arg7[%c96, %c0_18] : memref<216x80xbf16, #tpu.memory_space<vmem>>, vector<12x80xbf16>
    tpu.vector_store %arg7[%c96, %c0_18], %22 {strides = array<i32>} : memref<216x80xbf16, #tpu.memory_space<vmem>>, vector<12x80xbf16>,
    %c0_19 = arith.constant 0 : index
    %c0_20 = arith.constant 0 : index
    %c0_21 = arith.constant 0 : index
    %c0_22 = arith.constant 0 : index
    %24 = vector.load %arg3[%c0_19, %c0_20, %c0_21, %c0_22] : memref<1x1x12x102xbf16, #tpu.memory_space<vmem>>, vector<1x1x12x82xbf16>
    %25 = vector.shape_cast %24 : vector<1x1x12x82xbf16> to vector<12x82xbf16>
    %26 = vector.extract_strided_slice %25 {offsets = [0, 0], sizes = [12, 80], strides = [1, 1]} : vector<12x82xbf16> to vector<12x80xbf16>
    %c108 = arith.constant 108 : index
    %c0_23 = arith.constant 0 : index
    %27 = vector.load %arg7[%c108, %c0_23] : memref<216x80xbf16, #tpu.memory_space<vmem>>, vector<12x80xbf16>
    tpu.vector_store %arg7[%c108, %c0_23], %26 {strides = array<i32>} : memref<216x80xbf16, #tpu.memory_space<vmem>>, vector<12x80xbf16>,
    %28 = vector.extract_strided_slice %25 {offsets = [0, 1], sizes = [12, 80], strides = [1, 1]} : vector<12x82xbf16> to vector<12x80xbf16>
    %c120 = arith.constant 120 : index
    %c0_24 = arith.constant 0 : index
    %29 = vector.load %arg7[%c120, %c0_24] : memref<216x80xbf16, #tpu.memory_space<vmem>>, vector<12x80xbf16>
    tpu.vector_store %arg7[%c120, %c0_24], %28 {strides = array<i32>} : memref<216x80xbf16, #tpu.memory_space<vmem>>, vector<12x80xbf16>,
    %30 = vector.extract_strided_slice %25 {offsets = [0, 2], sizes = [12, 80], strides = [1, 1]} : vector<12x82xbf16> to vector<12x80xbf16>
    %c132 = arith.constant 132 : index
    %c0_25 = arith.constant 0 : index
    %31 = vector.load %arg7[%c132, %c0_25] : memref<216x80xbf16, #tpu.memory_space<vmem>>, vector<12x80xbf16>
    tpu.vector_store %arg7[%c132, %c0_25], %30 {strides = array<i32>} : memref<216x80xbf16, #tpu.memory_space<vmem>>, vector<12x80xbf16>,
    %c0_26 = arith.constant 0 : index
    %c0_27 = arith.constant 0 : index
    %c0_28 = arith.constant 0 : index
    %c10_29 = arith.constant 10 : index
    %32 = vector.load %arg3[%c0_26, %c0_27, %c0_28, %c10_29] : memref<1x1x12x102xbf16, #tpu.memory_space<vmem>>, vector<1x1x12x82xbf16>
    %33 = vector.shape_cast %32 : vector<1x1x12x82xbf16> to vector<12x82xbf16>
    %34 = vector.extract_strided_slice %33 {offsets = [0, 0], sizes = [12, 80], strides = [1, 1]} : vector<12x82xbf16> to vector<12x80xbf16>
    %c144 = arith.constant 144 : index
    %c0_30 = arith.constant 0 : index
    %35 = vector.load %arg7[%c144, %c0_30] : memref<216x80xbf16, #tpu.memory_space<vmem>>, vector<12x80xbf16>
    tpu.vector_store %arg7[%c144, %c0_30], %34 {strides = array<i32>} : memref<216x80xbf16, #tpu.memory_space<vmem>>, vector<12x80xbf16>,
    %36 = vector.extract_strided_slice %33 {offsets = [0, 1], sizes = [12, 80], strides = [1, 1]} : vector<12x82xbf16> to vector<12x80xbf16>
    %c156 = arith.constant 156 : index
    %c0_31 = arith.constant 0 : index
    %37 = vector.load %arg7[%c156, %c0_31] : memref<216x80xbf16, #tpu.memory_space<vmem>>, vector<12x80xbf16>
    tpu.vector_store %arg7[%c156, %c0_31], %36 {strides = array<i32>} : memref<216x80xbf16, #tpu.memory_space<vmem>>, vector<12x80xbf16>,
    %38 = vector.extract_strided_slice %33 {offsets = [0, 2], sizes = [12, 80], strides = [1, 1]} : vector<12x82xbf16> to vector<12x80xbf16>
    %c168 = arith.constant 168 : index
    %c0_32 = arith.constant 0 : index
    %39 = vector.load %arg7[%c168, %c0_32] : memref<216x80xbf16, #tpu.memory_space<vmem>>, vector<12x80xbf16>
    tpu.vector_store %arg7[%c168, %c0_32], %38 {strides = array<i32>} : memref<216x80xbf16, #tpu.memory_space<vmem>>, vector<12x80xbf16>,
    %c0_33 = arith.constant 0 : index
    %c0_34 = arith.constant 0 : index
    %c0_35 = arith.constant 0 : index
    %c20_36 = arith.constant 20 : index
    %40 = vector.load %arg3[%c0_33, %c0_34, %c0_35, %c20_36] : memref<1x1x12x102xbf16, #tpu.memory_space<vmem>>, vector<1x1x12x82xbf16>
    %41 = vector.shape_cast %40 : vector<1x1x12x82xbf16> to vector<12x82xbf16>
    %42 = vector.extract_strided_slice %41 {offsets = [0, 0], sizes = [12, 80], strides = [1, 1]} : vector<12x82xbf16> to vector<12x80xbf16>
    %c180 = arith.constant 180 : index
    %c0_37 = arith.constant 0 : index
    %43 = vector.load %arg7[%c180, %c0_37] : memref<216x80xbf16, #tpu.memory_space<vmem>>, vector<12x80xbf16>
    tpu.vector_store %arg7[%c180, %c0_37], %42 {strides = array<i32>} : memref<216x80xbf16, #tpu.memory_space<vmem>>, vector<12x80xbf16>,
    %44 = vector.extract_strided_slice %41 {offsets = [0, 1], sizes = [12, 80], strides = [1, 1]} : vector<12x82xbf16> to vector<12x80xbf16>
    %c192 = arith.constant 192 : index
    %c0_38 = arith.constant 0 : index
    %45 = vector.load %arg7[%c192, %c0_38] : memref<216x80xbf16, #tpu.memory_space<vmem>>, vector<12x80xbf16>
    tpu.vector_store %arg7[%c192, %c0_38], %44 {strides = array<i32>} : memref<216x80xbf16, #tpu.memory_space<vmem>>, vector<12x80xbf16>,
    %46 = vector.extract_strided_slice %41 {offsets = [0, 2], sizes = [12, 80], strides = [1, 1]} : vector<12x82xbf16> to vector<12x80xbf16>
    %c204 = arith.constant 204 : index
    %c0_39 = arith.constant 0 : index
    %47 = vector.load %arg7[%c204, %c0_39] : memref<216x80xbf16, #tpu.memory_space<vmem>>, vector<12x80xbf16>
    tpu.vector_store %arg7[%c204, %c0_39], %46 {strides = array<i32>} : memref<216x80xbf16, #tpu.memory_space<vmem>>, vector<12x80xbf16>,
    %c0_40 = arith.constant 0 : index
    %c0_41 = arith.constant 0 : index
    %48 = vector.load %arg4[%c0_40, %c0_41] : memref<12x216xbf16, #tpu.memory_space<vmem>>, vector<12x216xbf16>
    %c0_42 = arith.constant 0 : index
    %c0_43 = arith.constant 0 : index
    %49 = vector.load %arg7[%c0_42, %c0_43] : memref<216x80xbf16, #tpu.memory_space<vmem>>, vector<216x80xbf16>
    %cst = arith.constant dense<0.000000e+00> : vector<12x80xf32>
    %50 = tpu.matmul %48, %49, %cst {dimension_numbers = #tpu.dot_dimension_numbers<[1], [0], [0], [1], [0, 0, 1, 1], [], []>} : vector<12x216xbf16>, vector<216x80xbf16>, vector<12x80xf32> -> vector<12x80xf32>
    %c0_44 = arith.constant 0 : index
    %c0_45 = arith.constant 0 : index
    %51 = vector.load %arg5[%c0_44, %c0_45] : memref<12x1xf32, #tpu.memory_space<vmem>>, vector<12x1xf32>
    %52 = vector.broadcast %51 : vector<12x1xf32> to vector<12x80xf32>
    %53 = arith.addf %50, %52 : vector<12x80xf32>
    %cst_46 = arith.constant 0.000000e+00 : f32
    %54 = vector.broadcast %cst_46 : f32 to vector<12x80xf32>
    %55 = arith.maximumf %53, %54 : vector<12x80xf32>
    %56 = arith.truncf %55 : vector<12x80xf32> to vector<12x80xbf16>
    %c0_47 = arith.constant 0 : index
    %c0_48 = arith.constant 0 : index
    %c0_49 = arith.constant 0 : index
    %57 = vector.load %arg6[%c0_47, %c0_48, %c0_49] : memref<1x12x80xbf16, #tpu.memory_space<vmem>>, vector<1x12x80xbf16>
    %58 = vector.shape_cast %57 : vector<1x12x80xbf16> to vector<12x80xbf16>
    %59 = vector.shape_cast %56 : vector<12x80xbf16> to vector<1x12x80xbf16>
    tpu.vector_store %arg6[%c0_47, %c0_48, %c0_49], %59 {strides = array<i32>} : memref<1x12x80xbf16, #tpu.memory_space<vmem>>, vector<1x12x80xbf16>,
    return
  }
  func.func @transform_0(%arg0: i32, %arg1: i32) -> (i32, i32, i32, i32) {
    %c0_i32 = arith.constant 0 : i32
    %c0_i32_0 = arith.constant 0 : i32
    %c0_i32_1 = arith.constant 0 : i32
    return %arg0, %arg1, %c0_i32, %c0_i32_0 : i32, i32, i32, i32
  }
  func.func @transform_1(%arg0: i32, %arg1: i32) -> (i32, i32, i32, i32) {
    %c0_i32 = arith.constant 0 : i32
    %c0_i32_0 = arith.constant 0 : i32
    %c0_i32_1 = arith.constant 0 : i32
    return %arg0, %arg1, %c0_i32, %c0_i32_0 : i32, i32, i32, i32
  }
  func.func @transform_2(%arg0: i32, %arg1: i32) -> (i32, i32) {
    %c0_i32 = arith.constant 0 : i32
    %c0_i32_0 = arith.constant 0 : i32
    %c0_i32_1 = arith.constant 0 : i32
    return %c0_i32, %c0_i32_0 : i32, i32
  }
  func.func @transform_3(%arg0: i32, %arg1: i32) -> (i32, i32) {
    %c0_i32 = arith.constant 0 : i32
    %c0_i32_0 = arith.constant 0 : i32
    %c0_i32_1 = arith.constant 0 : i32
    return %c0_i32, %c0_i32_0 : i32, i32
  }
  func.func @transform_4(%arg0: i32, %arg1: i32) -> (i32, i32, i32) {
    %c0_i32 = arith.constant 0 : i32
    %c0_i32_0 = arith.constant 0 : i32
    return %arg0, %c0_i32, %arg1 : i32, i32, i32
  }
}

module attributes {stable_mosaic.version = 11 : i64} {
  func.func @kernel(%arg0: i32, %arg1: i32, %arg2: memref<1x1x12x326xbf16, #tpu.memory_space<vmem>>, %arg3: memref<1x1x12x326xbf16, #tpu.memory_space<vmem>>, %arg4: memref<4x216xbf16, #tpu.memory_space<vmem>>, %arg5: memref<4x1xf32, #tpu.memory_space<vmem>>, %arg6: memref<1x4x288xbf16, #tpu.memory_space<vmem>>, %arg7: memref<1x4x288xbf16, #tpu.memory_space<vmem>>, %arg8: memref<216x288xbf16, #tpu.memory_space<vmem>>) attributes {dimension_semantics = [#tpu.dimension_semantics<parallel>, #tpu.dimension_semantics<parallel>], iteration_bounds = array<i64: 2, 1>, scalar_prefetch = 0 : i64, scratch_operands = 1 : i64, tpu.core_type = #tpu.core_type<tc>, window_params = [{transform_indices = @transform_0, window_bounds = array<i64: 1, 1, 12, 326>}, {transform_indices = @transform_1, window_bounds = array<i64: 1, 1, 12, 326>}, {pipeline_mode = #tpu.pipeline_mode<synchronous>, transform_indices = @transform_2, window_bounds = array<i64: 4, 216>}, {pipeline_mode = #tpu.pipeline_mode<synchronous>, transform_indices = @transform_3, window_bounds = array<i64: 4, 1>}, {transform_indices = @transform_4, window_bounds = array<i64: 1, 4, 288>}, {transform_indices = @transform_5, window_bounds = array<i64: 1, 4, 288>}]} {
    %c0 = arith.constant 0 : index
    %c0_0 = arith.constant 0 : index
    %c0_1 = arith.constant 0 : index
    %c0_2 = arith.constant 0 : index
    %0 = vector.load %arg2[%c0, %c0_0, %c0_1, %c0_2] : memref<1x1x12x326xbf16, #tpu.memory_space<vmem>>, vector<1x1x12x290xbf16>
    %1 = vector.shape_cast %0 : vector<1x1x12x290xbf16> to vector<12x290xbf16>
    %2 = vector.extract_strided_slice %1 {offsets = [0, 0], sizes = [12, 288], strides = [1, 1]} : vector<12x290xbf16> to vector<12x288xbf16>
    %c0_3 = arith.constant 0 : index
    %c0_4 = arith.constant 0 : index
    %3 = vector.load %arg8[%c0_3, %c0_4] : memref<216x288xbf16, #tpu.memory_space<vmem>>, vector<12x288xbf16>
    tpu.vector_store %arg8[%c0_3, %c0_4], %2 {strides = array<i32>} : memref<216x288xbf16, #tpu.memory_space<vmem>>, vector<12x288xbf16>,
    %4 = vector.extract_strided_slice %1 {offsets = [0, 1], sizes = [12, 288], strides = [1, 1]} : vector<12x290xbf16> to vector<12x288xbf16>
    %c12 = arith.constant 12 : index
    %c0_5 = arith.constant 0 : index
    %5 = vector.load %arg8[%c12, %c0_5] : memref<216x288xbf16, #tpu.memory_space<vmem>>, vector<12x288xbf16>
    tpu.vector_store %arg8[%c12, %c0_5], %4 {strides = array<i32>} : memref<216x288xbf16, #tpu.memory_space<vmem>>, vector<12x288xbf16>,
    %6 = vector.extract_strided_slice %1 {offsets = [0, 2], sizes = [12, 288], strides = [1, 1]} : vector<12x290xbf16> to vector<12x288xbf16>
    %c24 = arith.constant 24 : index
    %c0_6 = arith.constant 0 : index
    %7 = vector.load %arg8[%c24, %c0_6] : memref<216x288xbf16, #tpu.memory_space<vmem>>, vector<12x288xbf16>
    tpu.vector_store %arg8[%c24, %c0_6], %6 {strides = array<i32>} : memref<216x288xbf16, #tpu.memory_space<vmem>>, vector<12x288xbf16>,
    %c0_7 = arith.constant 0 : index
    %c0_8 = arith.constant 0 : index
    %c0_9 = arith.constant 0 : index
    %c18 = arith.constant 18 : index
    %8 = vector.load %arg2[%c0_7, %c0_8, %c0_9, %c18] : memref<1x1x12x326xbf16, #tpu.memory_space<vmem>>, vector<1x1x12x290xbf16>
    %9 = vector.shape_cast %8 : vector<1x1x12x290xbf16> to vector<12x290xbf16>
    %10 = vector.extract_strided_slice %9 {offsets = [0, 0], sizes = [12, 288], strides = [1, 1]} : vector<12x290xbf16> to vector<12x288xbf16>
    %c36 = arith.constant 36 : index
    %c0_10 = arith.constant 0 : index
    %11 = vector.load %arg8[%c36, %c0_10] : memref<216x288xbf16, #tpu.memory_space<vmem>>, vector<12x288xbf16>
    tpu.vector_store %arg8[%c36, %c0_10], %10 {strides = array<i32>} : memref<216x288xbf16, #tpu.memory_space<vmem>>, vector<12x288xbf16>,
    %12 = vector.extract_strided_slice %9 {offsets = [0, 1], sizes = [12, 288], strides = [1, 1]} : vector<12x290xbf16> to vector<12x288xbf16>
    %c48 = arith.constant 48 : index
    %c0_11 = arith.constant 0 : index
    %13 = vector.load %arg8[%c48, %c0_11] : memref<216x288xbf16, #tpu.memory_space<vmem>>, vector<12x288xbf16>
    tpu.vector_store %arg8[%c48, %c0_11], %12 {strides = array<i32>} : memref<216x288xbf16, #tpu.memory_space<vmem>>, vector<12x288xbf16>,
    %14 = vector.extract_strided_slice %9 {offsets = [0, 2], sizes = [12, 288], strides = [1, 1]} : vector<12x290xbf16> to vector<12x288xbf16>
    %c60 = arith.constant 60 : index
    %c0_12 = arith.constant 0 : index
    %15 = vector.load %arg8[%c60, %c0_12] : memref<216x288xbf16, #tpu.memory_space<vmem>>, vector<12x288xbf16>
    tpu.vector_store %arg8[%c60, %c0_12], %14 {strides = array<i32>} : memref<216x288xbf16, #tpu.memory_space<vmem>>, vector<12x288xbf16>,
    %c0_13 = arith.constant 0 : index
    %c0_14 = arith.constant 0 : index
    %c0_15 = arith.constant 0 : index
    %c36_16 = arith.constant 36 : index
    %16 = vector.load %arg2[%c0_13, %c0_14, %c0_15, %c36_16] : memref<1x1x12x326xbf16, #tpu.memory_space<vmem>>, vector<1x1x12x290xbf16>
    %17 = vector.shape_cast %16 : vector<1x1x12x290xbf16> to vector<12x290xbf16>
    %18 = vector.extract_strided_slice %17 {offsets = [0, 0], sizes = [12, 288], strides = [1, 1]} : vector<12x290xbf16> to vector<12x288xbf16>
    %c72 = arith.constant 72 : index
    %c0_17 = arith.constant 0 : index
    %19 = vector.load %arg8[%c72, %c0_17] : memref<216x288xbf16, #tpu.memory_space<vmem>>, vector<12x288xbf16>
    tpu.vector_store %arg8[%c72, %c0_17], %18 {strides = array<i32>} : memref<216x288xbf16, #tpu.memory_space<vmem>>, vector<12x288xbf16>,
    %20 = vector.extract_strided_slice %17 {offsets = [0, 1], sizes = [12, 288], strides = [1, 1]} : vector<12x290xbf16> to vector<12x288xbf16>
    %c84 = arith.constant 84 : index
    %c0_18 = arith.constant 0 : index
    %21 = vector.load %arg8[%c84, %c0_18] : memref<216x288xbf16, #tpu.memory_space<vmem>>, vector<12x288xbf16>
    tpu.vector_store %arg8[%c84, %c0_18], %20 {strides = array<i32>} : memref<216x288xbf16, #tpu.memory_space<vmem>>, vector<12x288xbf16>,
    %22 = vector.extract_strided_slice %17 {offsets = [0, 2], sizes = [12, 288], strides = [1, 1]} : vector<12x290xbf16> to vector<12x288xbf16>
    %c96 = arith.constant 96 : index
    %c0_19 = arith.constant 0 : index
    %23 = vector.load %arg8[%c96, %c0_19] : memref<216x288xbf16, #tpu.memory_space<vmem>>, vector<12x288xbf16>
    tpu.vector_store %arg8[%c96, %c0_19], %22 {strides = array<i32>} : memref<216x288xbf16, #tpu.memory_space<vmem>>, vector<12x288xbf16>,
    %c0_20 = arith.constant 0 : index
    %c0_21 = arith.constant 0 : index
    %c0_22 = arith.constant 0 : index
    %c0_23 = arith.constant 0 : index
    %24 = vector.load %arg3[%c0_20, %c0_21, %c0_22, %c0_23] : memref<1x1x12x326xbf16, #tpu.memory_space<vmem>>, vector<1x1x12x290xbf16>
    %25 = vector.shape_cast %24 : vector<1x1x12x290xbf16> to vector<12x290xbf16>
    %26 = vector.extract_strided_slice %25 {offsets = [0, 0], sizes = [12, 288], strides = [1, 1]} : vector<12x290xbf16> to vector<12x288xbf16>
    %c108 = arith.constant 108 : index
    %c0_24 = arith.constant 0 : index
    %27 = vector.load %arg8[%c108, %c0_24] : memref<216x288xbf16, #tpu.memory_space<vmem>>, vector<12x288xbf16>
    tpu.vector_store %arg8[%c108, %c0_24], %26 {strides = array<i32>} : memref<216x288xbf16, #tpu.memory_space<vmem>>, vector<12x288xbf16>,
    %28 = vector.extract_strided_slice %25 {offsets = [0, 1], sizes = [12, 288], strides = [1, 1]} : vector<12x290xbf16> to vector<12x288xbf16>
    %c120 = arith.constant 120 : index
    %c0_25 = arith.constant 0 : index
    %29 = vector.load %arg8[%c120, %c0_25] : memref<216x288xbf16, #tpu.memory_space<vmem>>, vector<12x288xbf16>
    tpu.vector_store %arg8[%c120, %c0_25], %28 {strides = array<i32>} : memref<216x288xbf16, #tpu.memory_space<vmem>>, vector<12x288xbf16>,
    %30 = vector.extract_strided_slice %25 {offsets = [0, 2], sizes = [12, 288], strides = [1, 1]} : vector<12x290xbf16> to vector<12x288xbf16>
    %c132 = arith.constant 132 : index
    %c0_26 = arith.constant 0 : index
    %31 = vector.load %arg8[%c132, %c0_26] : memref<216x288xbf16, #tpu.memory_space<vmem>>, vector<12x288xbf16>
    tpu.vector_store %arg8[%c132, %c0_26], %30 {strides = array<i32>} : memref<216x288xbf16, #tpu.memory_space<vmem>>, vector<12x288xbf16>,
    %c0_27 = arith.constant 0 : index
    %c0_28 = arith.constant 0 : index
    %c0_29 = arith.constant 0 : index
    %c18_30 = arith.constant 18 : index
    %32 = vector.load %arg3[%c0_27, %c0_28, %c0_29, %c18_30] : memref<1x1x12x326xbf16, #tpu.memory_space<vmem>>, vector<1x1x12x290xbf16>
    %33 = vector.shape_cast %32 : vector<1x1x12x290xbf16> to vector<12x290xbf16>
    %34 = vector.extract_strided_slice %33 {offsets = [0, 0], sizes = [12, 288], strides = [1, 1]} : vector<12x290xbf16> to vector<12x288xbf16>
    %c144 = arith.constant 144 : index
    %c0_31 = arith.constant 0 : index
    %35 = vector.load %arg8[%c144, %c0_31] : memref<216x288xbf16, #tpu.memory_space<vmem>>, vector<12x288xbf16>
    tpu.vector_store %arg8[%c144, %c0_31], %34 {strides = array<i32>} : memref<216x288xbf16, #tpu.memory_space<vmem>>, vector<12x288xbf16>,
    %36 = vector.extract_strided_slice %33 {offsets = [0, 1], sizes = [12, 288], strides = [1, 1]} : vector<12x290xbf16> to vector<12x288xbf16>
    %c156 = arith.constant 156 : index
    %c0_32 = arith.constant 0 : index
    %37 = vector.load %arg8[%c156, %c0_32] : memref<216x288xbf16, #tpu.memory_space<vmem>>, vector<12x288xbf16>
    tpu.vector_store %arg8[%c156, %c0_32], %36 {strides = array<i32>} : memref<216x288xbf16, #tpu.memory_space<vmem>>, vector<12x288xbf16>,
    %38 = vector.extract_strided_slice %33 {offsets = [0, 2], sizes = [12, 288], strides = [1, 1]} : vector<12x290xbf16> to vector<12x288xbf16>
    %c168 = arith.constant 168 : index
    %c0_33 = arith.constant 0 : index
    %39 = vector.load %arg8[%c168, %c0_33] : memref<216x288xbf16, #tpu.memory_space<vmem>>, vector<12x288xbf16>
    tpu.vector_store %arg8[%c168, %c0_33], %38 {strides = array<i32>} : memref<216x288xbf16, #tpu.memory_space<vmem>>, vector<12x288xbf16>,
    %c0_34 = arith.constant 0 : index
    %c0_35 = arith.constant 0 : index
    %c0_36 = arith.constant 0 : index
    %c36_37 = arith.constant 36 : index
    %40 = vector.load %arg3[%c0_34, %c0_35, %c0_36, %c36_37] : memref<1x1x12x326xbf16, #tpu.memory_space<vmem>>, vector<1x1x12x290xbf16>
    %41 = vector.shape_cast %40 : vector<1x1x12x290xbf16> to vector<12x290xbf16>
    %42 = vector.extract_strided_slice %41 {offsets = [0, 0], sizes = [12, 288], strides = [1, 1]} : vector<12x290xbf16> to vector<12x288xbf16>
    %c180 = arith.constant 180 : index
    %c0_38 = arith.constant 0 : index
    %43 = vector.load %arg8[%c180, %c0_38] : memref<216x288xbf16, #tpu.memory_space<vmem>>, vector<12x288xbf16>
    tpu.vector_store %arg8[%c180, %c0_38], %42 {strides = array<i32>} : memref<216x288xbf16, #tpu.memory_space<vmem>>, vector<12x288xbf16>,
    %44 = vector.extract_strided_slice %41 {offsets = [0, 1], sizes = [12, 288], strides = [1, 1]} : vector<12x290xbf16> to vector<12x288xbf16>
    %c192 = arith.constant 192 : index
    %c0_39 = arith.constant 0 : index
    %45 = vector.load %arg8[%c192, %c0_39] : memref<216x288xbf16, #tpu.memory_space<vmem>>, vector<12x288xbf16>
    tpu.vector_store %arg8[%c192, %c0_39], %44 {strides = array<i32>} : memref<216x288xbf16, #tpu.memory_space<vmem>>, vector<12x288xbf16>,
    %46 = vector.extract_strided_slice %41 {offsets = [0, 2], sizes = [12, 288], strides = [1, 1]} : vector<12x290xbf16> to vector<12x288xbf16>
    %c204 = arith.constant 204 : index
    %c0_40 = arith.constant 0 : index
    %47 = vector.load %arg8[%c204, %c0_40] : memref<216x288xbf16, #tpu.memory_space<vmem>>, vector<12x288xbf16>
    tpu.vector_store %arg8[%c204, %c0_40], %46 {strides = array<i32>} : memref<216x288xbf16, #tpu.memory_space<vmem>>, vector<12x288xbf16>,
    %c0_41 = arith.constant 0 : index
    %c0_42 = arith.constant 0 : index
    %48 = vector.load %arg4[%c0_41, %c0_42] : memref<4x216xbf16, #tpu.memory_space<vmem>>, vector<4x216xbf16>
    %c0_43 = arith.constant 0 : index
    %c0_44 = arith.constant 0 : index
    %49 = vector.load %arg8[%c0_43, %c0_44] : memref<216x288xbf16, #tpu.memory_space<vmem>>, vector<216x288xbf16>
    %cst = arith.constant dense<0.000000e+00> : vector<4x288xf32>
    %50 = tpu.matmul %48, %49, %cst {dimension_numbers = #tpu.dot_dimension_numbers<[1], [0], [0], [1], [0, 0, 1, 1], [], []>} : vector<4x216xbf16>, vector<216x288xbf16>, vector<4x288xf32> -> vector<4x288xf32>
    %c0_45 = arith.constant 0 : index
    %c0_46 = arith.constant 0 : index
    %51 = vector.load %arg5[%c0_45, %c0_46] : memref<4x1xf32, #tpu.memory_space<vmem>>, vector<4x1xf32>
    %52 = vector.broadcast %51 : vector<4x1xf32> to vector<4x288xf32>
    %53 = arith.addf %50, %52 : vector<4x288xf32>
    %cst_47 = arith.constant 0.000000e+00 : f32
    %54 = vector.broadcast %cst_47 : f32 to vector<4x288xf32>
    %55 = arith.maximumf %53, %54 : vector<4x288xf32>
    %c0_48 = arith.constant 0 : index
    %c0_49 = arith.constant 0 : index
    %c0_50 = arith.constant 0 : index
    %56 = vector.load %arg6[%c0_48, %c0_49, %c0_50] : memref<1x4x288xbf16, #tpu.memory_space<vmem>>, vector<1x4x288xbf16>
    %57 = vector.shape_cast %56 : vector<1x4x288xbf16> to vector<4x288xbf16>
    %58 = arith.extf %57 : vector<4x288xbf16> to vector<4x288xf32>
    %59 = arith.addf %55, %58 : vector<4x288xf32>
    %60 = arith.truncf %59 : vector<4x288xf32> to vector<4x288xbf16>
    %c0_51 = arith.constant 0 : index
    %c0_52 = arith.constant 0 : index
    %c0_53 = arith.constant 0 : index
    %61 = vector.load %arg7[%c0_51, %c0_52, %c0_53] : memref<1x4x288xbf16, #tpu.memory_space<vmem>>, vector<1x4x288xbf16>
    %62 = vector.shape_cast %61 : vector<1x4x288xbf16> to vector<4x288xbf16>
    %63 = vector.shape_cast %60 : vector<4x288xbf16> to vector<1x4x288xbf16>
    tpu.vector_store %arg7[%c0_51, %c0_52, %c0_53], %63 {strides = array<i32>} : memref<1x4x288xbf16, #tpu.memory_space<vmem>>, vector<1x4x288xbf16>,
    return
  }
  func.func @transform_0(%arg0: i32, %arg1: i32) -> (i32, i32, i32, i32) {
    %c0_i32 = arith.constant 0 : i32
    %c0_i32_0 = arith.constant 0 : i32
    %c0_i32_1 = arith.constant 0 : i32
    return %arg0, %arg1, %c0_i32, %c0_i32_0 : i32, i32, i32, i32
  }
  func.func @transform_1(%arg0: i32, %arg1: i32) -> (i32, i32, i32, i32) {
    %c0_i32 = arith.constant 0 : i32
    %c0_i32_0 = arith.constant 0 : i32
    %c0_i32_1 = arith.constant 0 : i32
    return %arg0, %arg1, %c0_i32, %c0_i32_0 : i32, i32, i32, i32
  }
  func.func @transform_2(%arg0: i32, %arg1: i32) -> (i32, i32) {
    %c0_i32 = arith.constant 0 : i32
    %c0_i32_0 = arith.constant 0 : i32
    %c0_i32_1 = arith.constant 0 : i32
    return %c0_i32, %c0_i32_0 : i32, i32
  }
  func.func @transform_3(%arg0: i32, %arg1: i32) -> (i32, i32) {
    %c0_i32 = arith.constant 0 : i32
    %c0_i32_0 = arith.constant 0 : i32
    %c0_i32_1 = arith.constant 0 : i32
    return %c0_i32, %c0_i32_0 : i32, i32
  }
  func.func @transform_4(%arg0: i32, %arg1: i32) -> (i32, i32, i32) {
    %c0_i32 = arith.constant 0 : i32
    %c0_i32_0 = arith.constant 0 : i32
    return %arg0, %c0_i32, %arg1 : i32, i32, i32
  }
  func.func @transform_5(%arg0: i32, %arg1: i32) -> (i32, i32, i32) {
    %c0_i32 = arith.constant 0 : i32
    %c0_i32_0 = arith.constant 0 : i32
    return %arg0, %c0_i32, %arg1 : i32, i32, i32
  }
}

</mosaic_0001>

<bundles_post_ra>
// kernel: rsu4_forward.8
= control target key start
LH: loop header
LB: loop body
LE: loop exit
PB: predicated region body
PF: predicated region fallthrough
CT: control target
= control target key end

     0   :  { %s812_s12 = smov 0   ;;  %s814_s13 = smov 0   ;;  %s896_s0 = inlined_call_operand.vmem [shape: bf16[2,1,4,326], index: 0, kind: input, shape index: {}]   ;;  %s897_s1 = inlined_call_operand.vmem [shape: bf16[4,36], index: 1, kind: input, shape index: {}]   ;;  %s898_s2 = inlined_call_operand.vmem [shape: f32[4,1], index: 2, kind: input, shape index: {}]   ;;  %s899_s3 = inlined_call_operand.vmem [shape: bf16[2,4,288], index: 3, kind: output, shape index: {}]  }
   0x1   :  { %s816_s14 = smov 0  }
   0x2 LB: > { %s25_s15 = sadd.s32 1, %s774_s13  ;;  %p672_p0 = scmp.ge.s32.totalorder %s778_s14, 1  ;;  %s778_s14 = sphi %s816_s14, %s13_s14   ;;  %s774_s13 = sphi %s814_s13, %s901_s13   ;;  %s770_s12 = sphi %s812_s12, %s900_s12  }
   0x3   : > { %p27_p1 = scmp.ge.s32.totalorder %s25_s15, 2  ;;  %p157_p2 = scmp.lt.s32.totalorder %s778_s14, 3 }
   0x5   : > { %s903_s15 = smov (%p27_p1, %s25_s15), 0  ;;  %p158_p3 = pnand %p672_p0, %p157_p2 }
   0x6   : > { %p189_p4 = scmp.lt.s32.totalorder (!%p158_p3), %s770_s12, 1  ;;  %v215_v0 = vlaneseq (!%p158_p3)  ;;  %v780_v1 = vmov (!%p158_p3), 1983009808   ;;  %vm229_vm0 = vcmask (!%p158_p3), 254976   ;;  %s781_s20 = smov (!%p158_p3), 126   ;;  %v783_v13 = vmov (!%p158_p3), 0.0  }
   0x7   : > { %161 = sbr.rel (%p158_p3) target bundleno = 406 (0x196), region = 32  ;;  %v213_v2 = vunpack.c.l.s4 (!%p158_p3), %v780_v1  ;;  %s782_s21 = smov (!%p158_p3), 127   ;;  %695 = vmatprep.subr.bf16.mxu1 (!%p158_p3), %v783_v13  ;;  %vm790_vm1 = vmmov (!%p158_p3), 0   ;;  %v791_v25 = vmov (!%p158_p3), 0   ;;  %v406_v26 = vld [vmem:[%s898_s2] sm:$0xf] (!%p158_p3) }
   0x8   : > { %v216_v3 = vshrl.u32 (!%p158_p3), %v215_v0, 7  ;;  %s784_s22 = smov (!%p158_p3), 110   ;;  %s785_s23 = smov (!%p158_p3), 109   ;;  %701 = vmatprep.mubr.msk.bf16.mxu1 (!%p158_p3), %vm790_vm1, %v783_v13  ;;  %498 = vmatprep.mubr.bf16.mxu0 (!%p158_p3), %v791_v25  ;;  %vm252_vm2 = vcmask (!%p158_p3), 257026   ;;  %vm245_vm3 = vcmask (!%p158_p3), 1043456   ;;  %vm247_vm4 = vcmask (!%p158_p3), 1039360  }
   0x9   : > { %v214_v4 = vunpack.c.0.s8 (!%p158_p3), %v213_v2  ;;  %s786_s24 = smov (!%p158_p3), 108   ;;  %s787_s25 = smov (!%p158_p3), 92   ;;  %742 = vset.pattern.permute.xlu0 (!%p158_p3), %v791_v25  ;;  %vm261_vm5 = vcmask (!%p158_p3), 1031168   ;;  %vm291_vm6 = vcmask (!%p158_p3), 900096   ;;  %vm312_vm7 = vcmask (!%p158_p3), 891904  }
   0xa   : > { %s788_s26 = smov (!%p158_p3), 91   ;;  %s789_s27 = smov (!%p158_p3), 90   ;;  %vm325_vm8 = vcmask (!%p158_p3), 883712   ;;  %vm355_vm9 = vcmask (!%p158_p3), 752640   ;;  %vm376_vm10 = vcmask (!%p158_p3), 744448   ;;  %vm389_vm11 = vcmask (!%p158_p3), 736256  }
   0xb   : > { %v833_v5 = vsub.s32 (!%p158_p3), %v214_v4, %v216_v3  ;;  %vm456_vm12 = vcmask (!%p158_p3), 1041408   ;;  %vm452_vm13 = vcmask (!%p158_p3), 293888   ;;  %vm573_vm14 = vcmask (!%p158_p3), 1043458  }
   0xc   : > { %vm574_vm15 = vmor (!%p158_p3), %vm573_vm14, %vm456_vm12 }
   0xe   : > { %s905_s12 = smov (!%p189_p4, %s770_s12), 1 }
   0xf   : > { %s705_s16 = smul.u32 6, %s905_s12 }
  0x11   : > { %s197_s19 = scalar_lea.vmem %s896_s0, %s705_s16  ;;  %s206_s7 = scalar_lea.vmem %s899_s3, %s705_s16 }
  0x12   : > { %v209_v6 = vld [vmem:[%s197_s19] sm:$0x3f] }
  0x13   : > { %v267_v7 = vld [vmem:[%s197_s19] sm:$0x3f]  ;;  %v218_v8 = vrot.slane %v209_v6, %v833_v5  ;;  %675 = vst.sshfl [vmem:[#allocation2] sm:$0xf pattern:$0x76325410] %v209_v6  ;;  %v211_v9 = vcombine.high %v209_v6, %v209_v6  ;;  %v231_v11 = vcombine.low %v209_v6, %v209_v6 }
  0x14   : > { %v283_v10 = vrot.slane %v267_v7, %v833_v5  ;;  %v269_v15 = vcombine.low %v267_v7, %v267_v7  ;;  %v297_v16 = vcombine.high %v267_v7, %v267_v7  ;;  %v331_v19 = vld [vmem:[%s197_s19] sm:$0x3f] }
  0x15   : > { %254 = vrot.lane.b32.xlu1 %v218_v8, %s781_s20  ;;  %241 = vrot.lane.b32.xlu0 %v218_v8, %s782_s21  ;;  %v225_v12 = vrot.slane %v211_v9, %v833_v5  ;;  %v238_v14 = vrot.slane %v231_v11, %v833_v5  ;;  %v333_v20 = vcombine.high %v331_v19, %v331_v19 }
  0x16   : > { %v276_v17 = vrot.slane %v269_v15, %v833_v5  ;;  %v304_v18 = vrot.slane %v297_v16, %v833_v5  ;;  %v340_v21 = vrot.slane %v331_v19, %v833_v5  ;;  %v361_v23 = vcombine.low %v331_v19, %v331_v19 }
  0x17   : > { %230 = vst.msk [vmem:[#allocation2 + $0x8] sm:$0x3] %vm229_vm0, %v225_v12  ;;  %v347_v22 = vrot.slane %v333_v20, %v833_v5 }
  0x18   : > { %v368_v24 = vrot.slane %v361_v23, %v833_v5 }
  0x19   : > { %286 = vrot.lane.b32.xlu1 %v283_v10, %s784_s22  ;;  %305 = vrot.lane.b32.xlu0 %v283_v10, %s785_s23 }
  0x1d   : > { %239 = vrot.lane.b32.xlu0 %v238_v14, %s782_s21  ;;  %256 = vrot.lane.b32.xlu1 %v225_v12, %s781_s20 }
  0x21   : > { %284 = vrot.lane.b32.xlu0 %v276_v17, %s784_s22  ;;  %307 = vrot.lane.b32.xlu1 %v304_v18, %s785_s23 }
  0x25   : > { %318 = vrot.lane.b32.xlu0 %v276_v17, %s786_s24  ;;  %320 = vrot.lane.b32.xlu1 %v283_v10, %s786_s24 }
  0x29   : > { %348 = vrot.lane.b32.xlu0 %v340_v21, %s787_s25  ;;  %350 = vrot.lane.b32.xlu1 %v347_v22, %s787_s25 }
  0x2d   : > { %369 = vrot.lane.b32.xlu0 %v368_v24, %s788_s26  ;;  %371 = vrot.lane.b32.xlu1 %v340_v21, %s788_s26 }
  0x31   : > { %382 = vrot.lane.b32.xlu0 %v340_v21, %s789_s27  ;;  %384 = vrot.lane.b32.xlu1 %v347_v22, %s789_s27  ;;  %v395_v22 = vld [vmem:[%s897_s1] sm:$0x3] }
  0x35   : > { %409 = vperm.xlu0 %742, %v406_v26  }
  0x87   : > { %v255_v27 = vpop.permute.xlu1 %254  ;;  %v242_v28 = vpop.permute.xlu0 %241 }
  0x88   : > { %253 = vst.msk [vmem:[#allocation2 + $0x8] sm:$0xc] %vm252_vm2, %v242_v28  ;;  %v258_v33 = vrot.slane %v255_v27, 4  ;;  %v244_v34 = vrot.slane %v242_v28, 4 }
  0x8b   : > { %v287_v29 = vpop.permute.xlu1 %286  ;;  %v306_v30 = vpop.permute.xlu0 %305 }
  0x8c   : > { %296 = vst.msk [vmem:[#allocation2 + $0x14] sm:$0xc] %vm252_vm2, %v287_v29  ;;  %v289_v43 = vrot.slane %v287_v29, 4  ;;  %v309_v44 = vrot.slane %v306_v30, 4 }
  0x8f   : > { %v240_v31 = vpop.permute.xlu0 %239  ;;  %v257_v32 = vpop.permute.xlu1 %256 }
  0x90   : > { %v243_v35 = vrot.slane %v240_v31, 4  ;;  %v259_v36 = vrot.slane %v257_v32, 4  ;;  %266 = vst.msk [vmem:[#allocation2 + $0x14] sm:$0x3] %vm229_vm0, %v257_v32 }
  0x92   : > { %v246_v37 = vsel %vm245_vm3, %v243_v35, %v244_v34  ;;  %v260_v38 = vsel %vm245_vm3, %v258_v33, %v259_v36 }
  0x93   : > { %v248_v39 = vsel %vm247_vm4, %v240_v31, %v246_v37  ;;  %v262_v40 = vsel %vm261_vm5, %v255_v27, %v260_v38  ;;  %v285_v41 = vpop.permute.xlu0 %284  ;;  %v308_v42 = vpop.permute.xlu1 %307 }
  0x94   : > { %251 = vst [vmem:[#allocation2] sm:$0xcc] %v248_v39  ;;  %265 = vst [vmem:[#allocation2 + $0xc] sm:$0x33] %v262_v40  ;;  %v288_v45 = vrot.slane %v285_v41, 4  ;;  %v310_v46 = vrot.slane %v308_v42, 4 }
  0x95   : > { %317 = vst.msk [vmem:[#allocation2 + $0x20] sm:$0x3] %vm229_vm0, %v308_v42 }
  0x96   : > { %v290_v47 = vsel %vm245_vm3, %v288_v45, %v289_v43  ;;  %v311_v48 = vsel %vm245_vm3, %v309_v44, %v310_v46 }
  0x97   : > { %v292_v49 = vsel %vm291_vm6, %v285_v41, %v290_v47  ;;  %v313_v50 = vsel %vm312_vm7, %v306_v30, %v311_v48  ;;  %v319_v51 = vpop.permute.xlu0 %318  ;;  %v321_v52 = vpop.permute.xlu1 %320  ;;  %v745_v53 = vld [vmem:[#allocation2 + $0x8] ss:$12 sps:$4 sm:$0xff]  }
  0x98   : > { %295 = vst [vmem:[#allocation2 + $0xc] sm:$0xcc] %v292_v49  ;;  %316 = vst [vmem:[#allocation2 + $0x18] sm:$0x33] %v313_v50  ;;  %v322_v54 = vrot.slane %v319_v51, 4  ;;  %v323_v55 = vrot.slane %v321_v52, 4  ;;  %696 = vmatpush3.bf16.msra.mxu1 %v745_v53 }
  0x99   : > { %330 = vst.msk [vmem:[#allocation2 + $0x20] sm:$0xc] %vm252_vm2, %v321_v52  ;;  %697 = vmatprep.subr.bf16.mxu1 %v783_v13 }
  0x9a   : > { %v324_v56 = vsel %vm245_vm3, %v322_v54, %v323_v55 }
  0x9b   : > { %v326_v57 = vsel %vm325_vm8, %v319_v51, %v324_v56  ;;  %v349_v58 = vpop.permute.xlu0 %348  ;;  %v351_v59 = vpop.permute.xlu1 %350 }
  0x9c   : > { %329 = vst [vmem:[#allocation2 + $0x18] sm:$0xcc] %v326_v57  ;;  %v352_v60 = vrot.slane %v349_v58, 4  ;;  %v353_v61 = vrot.slane %v351_v59, 4  ;;  %360 = vst.msk [vmem:[#allocation2 + $0x2c] sm:$0x3] %vm229_vm0, %v351_v59 }
  0x9e   : > { %v354_v62 = vsel %vm245_vm3, %v352_v60, %v353_v61 }
  0x9f   : > { %v356_v63 = vsel %vm355_vm9, %v349_v58, %v354_v62  ;;  %v370_v0 = vpop.permute.xlu0 %369  ;;  %v372_v1 = vpop.permute.xlu1 %371  ;;  %v746_v2 = vld [vmem:[#allocation2 + $0x4] ss:$12 sps:$4 sm:$0xff]   ;;  %v748_v3 = vld [vmem:[#allocation2] ss:$12 sps:$4 sm:$0xff]  }
  0xa0   : > { %359 = vst [vmem:[#allocation2 + $0x24] sm:$0x33] %v356_v63  ;;  %v373_v4 = vrot.slane %v370_v0, 4  ;;  %v374_v6 = vrot.slane %v372_v1, 4  ;;  %381 = vst.msk [vmem:[#allocation2 + $0x2c] sm:$0xc] %vm252_vm2, %v372_v1  ;;  %466 = vmatprep.subr.bf16.mxu0 %v746_v2 }
  0xa1   : > { %467 = vmatpush1.bf16.msra.mxu0 %v748_v3 }
  0xa2   : > { %v375_v7 = vsel %vm245_vm3, %v373_v4, %v374_v6 }
  0xa3   : > { %v377_v8 = vsel %vm376_vm10, %v370_v0, %v375_v7  ;;  %v383_v9 = vpop.permute.xlu0 %382  ;;  %v385_v10 = vpop.permute.xlu1 %384 }
  0xa4   : > { %380 = vst [vmem:[#allocation2 + $0x24] sm:$0xcc] %v377_v8  ;;  %v386_v11 = vrot.slane %v383_v9, 4  ;;  %v387_v12 = vrot.slane %v385_v10, 4  ;;  %394 = vst.msk [vmem:[#allocation2 + $0x38] sm:$0x3] %vm229_vm0, %v385_v10 }
  0xa5   : > { %vm575_vm0 = vcmask 259076  }
  0xa6   : > { %v388_v14 = vsel %vm245_vm3, %v386_v11, %v387_v12  ;;  %vm576_vm1 = vmor %vm575_vm0, %vm574_vm15 }
  0xa7   : > { %v390_v15 = vsel %vm389_vm11, %v383_v9, %v388_v14  ;;  %v749_v16 = vld [vmem:[#allocation2 + $0x20] ss:$12 sps:$4 sm:$0xff]  }
  0xa8   : > { %393 = vst [vmem:[#allocation2 + $0x30] sm:$0x33] %v390_v15  ;;  %698 = vmatpush3.bf16.msra.mxu1 %v749_v16 }
  0xa9   : > { %699 = vmatprep.subr.bf16.mxu1 %v783_v13 }
  0xab   : > { %v750_v17 = vld [vmem:[#allocation2 + $0x1c] ss:$12 sps:$4 sm:$0xff]   ;;  %v752_v18 = vld [vmem:[#allocation2 + $0x18] ss:$12 sps:$4 sm:$0xff]  }
  0xac   : > { %v753_v19 = vld [vmem:[#allocation2 + $0x38] ss:$0 sps:$4 sm:$0x33]   ;;  %468 = vmatprep.subr.bf16.mxu0 %v750_v17 }
  0xad   : > { %469 = vmatpush1.bf16.msra.mxu0 %v752_v18  ;;  %v464_v20 = vsel %vm456_vm12, %v753_v19, 0 }
  0xae   : > { %700 = vmatpush3.bf16.msra.mxu1 %v464_v20 }
  0xaf   : > { %v404_v21 = vld [vmem:[#allocation2 + $0x30] sm:$0x33] }
  0xb0   : > { %v683_v23 = vcombine.high %v404_v21, %v404_v21  ;;  %v682_v24 = vcombine.low %v404_v21, %v404_v21 }
  0xb1   : > { %702 = vmatmul.mubr.msk.bf16.vlgmr.msra.gmra.mrb[0].mxu1 %vm452_vm13, %v395_v22 }
  0xb2   : > { %685 = vmatprep.subr.msk.bf16.mxu0 %vm456_vm12, %v683_v23  ;;  %v458_v13 = vsel %vm456_vm12, %v682_v24, 0 }
  0xb3   : > { %471 = vmatpush1.bf16.msra.mxu0 %v458_v13 }
  0xb4   : > { %v410_v25 = vpop.permute.xlu0 %409 }
  0xb6   : > { %686 = vmatmul.mubr.msk.bf16.vlgmr.msra.gmra.mrb[0].mxu0 %vm452_vm13, %v395_v22 }
 0x184   : > { %v541_v26 = vpop.f32.mrb[0].mxu1 }
 0x185   : > { %v703_v27 = vpop.f32.mrb[1].mxu1  ;;  %v542_v28 = vadd.f32 %v541_v26, %v410_v25 }
 0x186   : > { %v544_v29 = vpop.f32.mrb[2].mxu1 }
 0x187   : > { %v549_v30 = vmax.f32 %v542_v28, 0.0  ;;  %v704_v31 = vpop.f32.mrb[3].mxu1 }
 0x189   : > { %v500_v32 = vpop.f32.mrb[0].mxu0  ;;  %v552_v35 = vpack.c.bf16 %v549_v30, %v549_v30 }
 0x18a   : > { %v501_v33 = vadd.f32 %v500_v32, %v410_v25  ;;  %v502_v34 = vpop.f32.mrb[1].mxu0 }
 0x18b   : > { %v503_v36 = vadd.f32 %v502_v34, %v410_v25  ;;  %v504_v37 = vpop.f32.mrb[2].mxu0  ;;  %v570_v41 = vrot.slane %v552_v35, %v833_v5 }
 0x18c   : > { %v547_v38 = vmax.f32 %v501_v33, 0.0  ;;  %v505_v39 = vpop.f32.mrb[3].mxu0 }
 0x18d   : > { %v548_v40 = vmax.f32 %v503_v36, 0.0 }
 0x18f   : > { %v688_v42 = vpack.c.bf16 %v548_v40, %v547_v38 }
 0x191   : > { %v563_v43 = vrot.slane %v688_v42, %v833_v5 }
 0x193   : > { %v571_v44 = vcombine.low %v563_v43, %v570_v41 }
 0x195   : > { %577 = vst.msk [vmem:[%s206_s7] sm:$0x3f] %vm576_vm1, %v571_v44 }
 0x196 PF: > { %s13_s14 = sadd.s32 1, %s778_s14   ;;  %s900_s12 = smov %s774_s13 }
 0x197   : > { %p10_p5 = scmp.ge.s32.totalorder %s13_s14, 4   ;;  %s901_s13 = smov %s903_s15 }
 0x199   :  { %12 = sbr.rel (!%p10_p5) target bundleno = 2 (0x2), region = 62 }

// kernel: rsu4_forward.9
= control target key start
LH: loop header
LB: loop body
LE: loop exit
PB: predicated region body
PF: predicated region fallthrough
CT: control target
= control target key end

     0   :  { %s838_s12 = smov 0   ;;  %s840_s13 = smov 0   ;;  %s906_s0 = inlined_call_operand.vmem [shape: bf16[2,1,4,326], index: 0, kind: input, shape index: {}]   ;;  %s907_s1 = inlined_call_operand.vmem [shape: bf16[12,36], index: 1, kind: input, shape index: {}]   ;;  %s908_s2 = inlined_call_operand.vmem [shape: f32[12,1], index: 2, kind: input, shape index: {}]   ;;  %s909_s3 = inlined_call_operand.vmem [shape: bf16[2,12,288], index: 3, kind: output, shape index: {}]  }
   0x1   :  { %s842_s14 = smov 0  }
   0x2 LB: > { %s25_s15 = sadd.s32 1, %s800_s13  ;;  %p687_p0 = scmp.ge.s32.totalorder %s804_s14, 1  ;;  %s804_s14 = sphi %s842_s14, %s13_s14   ;;  %s800_s13 = sphi %s840_s13, %s911_s13   ;;  %s796_s12 = sphi %s838_s12, %s910_s12  }
   0x3   : > { %p27_p1 = scmp.ge.s32.totalorder %s25_s15, 2  ;;  %p157_p2 = scmp.lt.s32.totalorder %s804_s14, 3 }
   0x5   : > { %s913_s15 = smov (%p27_p1, %s25_s15), 0  ;;  %p158_p3 = pnand %p687_p0, %p157_p2 }
   0x6   : > { %p189_p4 = scmp.lt.s32.totalorder (!%p158_p3), %s796_s12, 1  ;;  %v215_v0 = vlaneseq (!%p158_p3)  ;;  %v806_v1 = vmov (!%p158_p3), 1983009808   ;;  %vm229_vm0 = vcmask (!%p158_p3), 254976   ;;  %s807_s20 = smov (!%p158_p3), 126   ;;  %v809_v13 = vmov (!%p158_p3), 0.0  }
   0x7   : > { %161 = sbr.rel (%p158_p3) target bundleno = 404 (0x194), region = 32  ;;  %v213_v2 = vunpack.c.l.s4 (!%p158_p3), %v806_v1  ;;  %s808_s21 = smov (!%p158_p3), 127   ;;  %718 = vmatprep.subr.bf16.mxu1 (!%p158_p3), %v809_v13  ;;  %vm816_vm1 = vmmov (!%p158_p3), 0   ;;  %v817_v25 = vmov (!%p158_p3), 0   ;;  %v407_v26 = vld [vmem:[%s908_s2] sm:$0xff] (!%p158_p3)  ;;  %vm252_vm2 = vcmask (!%p158_p3), 257026  }
   0x8   : > { %v216_v3 = vshrl.u32 (!%p158_p3), %v215_v0, 7  ;;  %s810_s22 = smov (!%p158_p3), 110   ;;  %s811_s23 = smov (!%p158_p3), 109   ;;  %724 = vmatprep.mubr.msk.bf16.mxu1 (!%p158_p3), %vm816_vm1, %v809_v13  ;;  %510 = vmatprep.mubr.bf16.mxu0 (!%p158_p3), %v817_v25  ;;  %v408_v27 = vld [vmem:[%s908_s2 + $0x8] sm:$0xf] (!%p158_p3)  ;;  %vm245_vm3 = vcmask (!%p158_p3), 1043456  }
   0x9   : > { %v214_v4 = vunpack.c.0.s8 (!%p158_p3), %v213_v2  ;;  %s812_s24 = smov (!%p158_p3), 108   ;;  %s813_s25 = smov (!%p158_p3), 92   ;;  %766 = vset.pattern.permute.xlu0 (!%p158_p3), %v817_v25  ;;  %767 = vset.pattern.permute.xlu1 (!%p158_p3), %v817_v25  ;;  %vm247_vm4 = vcmask (!%p158_p3), 1039360   ;;  %vm261_vm5 = vcmask (!%p158_p3), 1031168   ;;  %vm291_vm6 = vcmask (!%p158_p3), 900096  }
   0xa   : > { %s814_s26 = smov (!%p158_p3), 91   ;;  %s815_s27 = smov (!%p158_p3), 90   ;;  %vm312_vm7 = vcmask (!%p158_p3), 891904   ;;  %vm325_vm8 = vcmask (!%p158_p3), 883712   ;;  %vm355_vm9 = vcmask (!%p158_p3), 752640   ;;  %vm376_vm10 = vcmask (!%p158_p3), 744448  }
   0xb   : > { %v217_v5 = vsub.s32 (!%p158_p3), %v214_v4, %v216_v3  ;;  %vm389_vm11 = vcmask (!%p158_p3), 736256   ;;  %vm468_vm12 = vcmask (!%p158_p3), 1041408   ;;  %vm464_vm13 = vcmask (!%p158_p3), 293888  }
   0xc   : > { %vm589_vm14 = vcmask (!%p158_p3), 257024  }
   0xe   : > { %s915_s12 = smov (!%p189_p4, %s796_s12), 1 }
   0xf   : > { %s728_s16 = smul.u32 6, %s915_s12 }
  0x10   : > { %s729_s7 = smul.u32 24, %s915_s12 }
  0x11   : > { %s197_s19 = scalar_lea.vmem %s906_s0, %s728_s16 }
  0x12   : > { %v209_v6 = vld [vmem:[%s197_s19] sm:$0x3f]  ;;  %s206_s10 = scalar_lea.vmem %s909_s3, %s729_s7 }
  0x13   : > { %v267_v7 = vld [vmem:[%s197_s19] sm:$0x3f]  ;;  %v218_v8 = vrot.slane %v209_v6, %v217_v5  ;;  %690 = vst.sshfl [vmem:[#allocation2] sm:$0xf pattern:$0x76325410] %v209_v6  ;;  %v211_v9 = vcombine.high %v209_v6, %v209_v6  ;;  %v231_v11 = vcombine.low %v209_v6, %v209_v6 }
  0x14   : > { %v283_v10 = vrot.slane %v267_v7, %v217_v5  ;;  %v269_v15 = vcombine.low %v267_v7, %v267_v7  ;;  %v297_v16 = vcombine.high %v267_v7, %v267_v7  ;;  %v331_v19 = vld [vmem:[%s197_s19] sm:$0x3f] }
  0x15   : > { %254 = vrot.lane.b32.xlu1 %v218_v8, %s807_s20  ;;  %241 = vrot.lane.b32.xlu0 %v218_v8, %s808_s21  ;;  %v225_v12 = vrot.slane %v211_v9, %v217_v5  ;;  %v238_v14 = vrot.slane %v231_v11, %v217_v5  ;;  %v333_v20 = vcombine.high %v331_v19, %v331_v19 }
  0x16   : > { %v276_v17 = vrot.slane %v269_v15, %v217_v5  ;;  %v304_v18 = vrot.slane %v297_v16, %v217_v5  ;;  %v340_v21 = vrot.slane %v331_v19, %v217_v5  ;;  %v361_v23 = vcombine.low %v331_v19, %v331_v19 }
  0x17   : > { %230 = vst.msk [vmem:[#allocation2 + $0x8] sm:$0x3] %vm229_vm0, %v225_v12  ;;  %v347_v22 = vrot.slane %v333_v20, %v217_v5 }
  0x18   : > { %v368_v24 = vrot.slane %v361_v23, %v217_v5 }
  0x19   : > { %286 = vrot.lane.b32.xlu1 %v283_v10, %s810_s22  ;;  %305 = vrot.lane.b32.xlu0 %v283_v10, %s811_s23 }
  0x1d   : > { %239 = vrot.lane.b32.xlu0 %v238_v14, %s808_s21  ;;  %256 = vrot.lane.b32.xlu1 %v225_v12, %s807_s20 }
  0x21   : > { %284 = vrot.lane.b32.xlu0 %v276_v17, %s810_s22  ;;  %307 = vrot.lane.b32.xlu1 %v304_v18, %s811_s23 }
  0x25   : > { %318 = vrot.lane.b32.xlu0 %v276_v17, %s812_s24  ;;  %320 = vrot.lane.b32.xlu1 %v283_v10, %s812_s24 }
  0x29   : > { %348 = vrot.lane.b32.xlu0 %v340_v21, %s813_s25  ;;  %350 = vrot.lane.b32.xlu1 %v347_v22, %s813_s25 }
  0x2d   : > { %369 = vrot.lane.b32.xlu0 %v368_v24, %s814_s26  ;;  %371 = vrot.lane.b32.xlu1 %v340_v21, %s814_s26 }
  0x31   : > { %382 = vrot.lane.b32.xlu0 %v340_v21, %s815_s27  ;;  %384 = vrot.lane.b32.xlu1 %v347_v22, %s815_s27  ;;  %v781_v21 = vld [vmem:[%s907_s1] sm:$0x3f]  }
  0x35   : > { %411 = vperm.xlu0 %766, %v407_v26   ;;  %416 = vperm.xlu1 %767, %v408_v27  }
  0x87   : > { %v255_v28 = vpop.permute.xlu1 %254  ;;  %v242_v29 = vpop.permute.xlu0 %241 }
  0x88   : > { %253 = vst.msk [vmem:[#allocation2 + $0x8] sm:$0xc] %vm252_vm2, %v242_v29  ;;  %v258_v34 = vrot.slane %v255_v28, 4  ;;  %v244_v35 = vrot.slane %v242_v29, 4 }
  0x8b   : > { %v287_v30 = vpop.permute.xlu1 %286  ;;  %v306_v31 = vpop.permute.xlu0 %305 }
  0x8c   : > { %296 = vst.msk [vmem:[#allocation2 + $0x14] sm:$0xc] %vm252_vm2, %v287_v30  ;;  %v289_v44 = vrot.slane %v287_v30, 4  ;;  %v309_v45 = vrot.slane %v306_v31, 4 }
  0x8f   : > { %v240_v32 = vpop.permute.xlu0 %239  ;;  %v257_v33 = vpop.permute.xlu1 %256 }
  0x90   : > { %v243_v36 = vrot.slane %v240_v32, 4  ;;  %v259_v37 = vrot.slane %v257_v33, 4  ;;  %266 = vst.msk [vmem:[#allocation2 + $0x14] sm:$0x3] %vm229_vm0, %v257_v33 }
  0x92   : > { %v246_v38 = vsel %vm245_vm3, %v243_v36, %v244_v35  ;;  %v260_v39 = vsel %vm245_vm3, %v258_v34, %v259_v37 }
  0x93   : > { %v248_v40 = vsel %vm247_vm4, %v240_v32, %v246_v38  ;;  %v262_v41 = vsel %vm261_vm5, %v255_v28, %v260_v39  ;;  %v285_v42 = vpop.permute.xlu0 %284  ;;  %v308_v43 = vpop.permute.xlu1 %307 }
  0x94   : > { %251 = vst [vmem:[#allocation2] sm:$0xcc] %v248_v40  ;;  %265 = vst [vmem:[#allocation2 + $0xc] sm:$0x33] %v262_v41  ;;  %v288_v46 = vrot.slane %v285_v42, 4  ;;  %v310_v47 = vrot.slane %v308_v43, 4 }
  0x95   : > { %317 = vst.msk [vmem:[#allocation2 + $0x20] sm:$0x3] %vm229_vm0, %v308_v43 }
  0x96   : > { %v290_v48 = vsel %vm245_vm3, %v288_v46, %v289_v44  ;;  %v311_v49 = vsel %vm245_vm3, %v309_v45, %v310_v47 }
  0x97   : > { %v292_v50 = vsel %vm291_vm6, %v285_v42, %v290_v48  ;;  %v313_v51 = vsel %vm312_vm7, %v306_v31, %v311_v49  ;;  %v319_v52 = vpop.permute.xlu0 %318  ;;  %v321_v53 = vpop.permute.xlu1 %320  ;;  %v770_v54 = vld [vmem:[#allocation2 + $0x8] ss:$12 sps:$4 sm:$0xff]  }
  0x98   : > { %295 = vst [vmem:[#allocation2 + $0xc] sm:$0xcc] %v292_v50  ;;  %316 = vst [vmem:[#allocation2 + $0x18] sm:$0x33] %v313_v51  ;;  %v322_v55 = vrot.slane %v319_v52, 4  ;;  %v323_v56 = vrot.slane %v321_v53, 4  ;;  %719 = vmatpush3.bf16.msra.mxu1 %v770_v54 }
  0x99   : > { %330 = vst.msk [vmem:[#allocation2 + $0x20] sm:$0xc] %vm252_vm2, %v321_v53  ;;  %720 = vmatprep.subr.bf16.mxu1 %v809_v13 }
  0x9a   : > { %v324_v57 = vsel %vm245_vm3, %v322_v55, %v323_v56 }
  0x9b   : > { %v326_v58 = vsel %vm325_vm8, %v319_v52, %v324_v57  ;;  %v349_v59 = vpop.permute.xlu0 %348  ;;  %v351_v60 = vpop.permute.xlu1 %350 }
  0x9c   : > { %329 = vst [vmem:[#allocation2 + $0x18] sm:$0xcc] %v326_v58  ;;  %v352_v61 = vrot.slane %v349_v59, 4  ;;  %v353_v62 = vrot.slane %v351_v60, 4  ;;  %360 = vst.msk [vmem:[#allocation2 + $0x2c] sm:$0x3] %vm229_vm0, %v351_v60 }
  0x9e   : > { %v354_v63 = vsel %vm245_vm3, %v352_v61, %v353_v62 }
  0x9f   : > { %v356_v0 = vsel %vm355_vm9, %v349_v59, %v354_v63  ;;  %v370_v1 = vpop.permute.xlu0 %369  ;;  %v372_v2 = vpop.permute.xlu1 %371  ;;  %v771_v3 = vld [vmem:[#allocation2 + $0x4] ss:$12 sps:$4 sm:$0xff]   ;;  %v773_v4 = vld [vmem:[#allocation2] ss:$12 sps:$4 sm:$0xff]  }
  0xa0   : > { %359 = vst [vmem:[#allocation2 + $0x24] sm:$0x33] %v356_v0  ;;  %v373_v5 = vrot.slane %v370_v1, 4  ;;  %v374_v6 = vrot.slane %v372_v2, 4  ;;  %381 = vst.msk [vmem:[#allocation2 + $0x2c] sm:$0xc] %vm252_vm2, %v372_v2  ;;  %478 = vmatprep.subr.bf16.mxu0 %v771_v3 }
  0xa1   : > { %479 = vmatpush1.bf16.msra.mxu0 %v773_v4 }
  0xa2   : > { %v375_v7 = vsel %vm245_vm3, %v373_v5, %v374_v6 }
  0xa3   : > { %v377_v8 = vsel %vm376_vm10, %v370_v1, %v375_v7  ;;  %v383_v9 = vpop.permute.xlu0 %382  ;;  %v385_v10 = vpop.permute.xlu1 %384 }
  0xa4   : > { %380 = vst [vmem:[#allocation2 + $0x24] sm:$0xcc] %v377_v8  ;;  %v386_v11 = vrot.slane %v383_v9, 4  ;;  %v387_v12 = vrot.slane %v385_v10, 4  ;;  %394 = vst.msk [vmem:[#allocation2 + $0x38] sm:$0x3] %vm229_vm0, %v385_v10 }
  0xa6   : > { %v388_v14 = vsel %vm245_vm3, %v386_v11, %v387_v12 }
  0xa7   : > { %v390_v15 = vsel %vm389_vm11, %v383_v9, %v388_v14  ;;  %v774_v16 = vld [vmem:[#allocation2 + $0x20] ss:$12 sps:$4 sm:$0xff]  }
  0xa8   : > { %393 = vst [vmem:[#allocation2 + $0x30] sm:$0x33] %v390_v15  ;;  %721 = vmatpush3.bf16.msra.mxu1 %v774_v16 }
  0xa9   : > { %722 = vmatprep.subr.bf16.mxu1 %v809_v13 }
  0xab   : > { %v775_v17 = vld [vmem:[#allocation2 + $0x1c] ss:$12 sps:$4 sm:$0xff]   ;;  %v777_v18 = vld [vmem:[#allocation2 + $0x18] ss:$12 sps:$4 sm:$0xff]  }
  0xac   : > { %v778_v19 = vld [vmem:[#allocation2 + $0x38] ss:$0 sps:$4 sm:$0x33]   ;;  %480 = vmatprep.subr.bf16.mxu0 %v775_v17 }
  0xad   : > { %481 = vmatpush1.bf16.msra.mxu0 %v777_v18  ;;  %v476_v20 = vsel %vm468_vm12, %v778_v19, 0 }
  0xae   : > { %723 = vmatpush3.bf16.msra.mxu1 %v476_v20 }
  0xaf   : > { %v405_v22 = vld [vmem:[#allocation2 + $0x30] sm:$0x33] }
  0xb0   : > { %v699_v23 = vcombine.high %v405_v22, %v405_v22  ;;  %v698_v24 = vcombine.low %v405_v22, %v405_v22 }
  0xb1   : > { %725 = vmatmul.mubr.msk.bf16.vlgmr.msra.gmra.mrb[0].mxu1 %vm464_vm13, %v781_v21 }
  0xb2   : > { %701 = vmatprep.subr.msk.bf16.mxu0 %vm468_vm12, %v699_v23  ;;  %v470_v25 = vsel %vm468_vm12, %v698_v24, 0 }
  0xb3   : > { %483 = vmatpush1.bf16.msra.mxu0 %v470_v25 }
  0xb4   : > { %v412_v13 = vpop.permute.xlu0 %411  ;;  %v417_v27 = vpop.permute.xlu1 %416 }
  0xb6   : > { %702 = vmatmul.mubr.msk.bf16.vlgmr.msra.gmra.mrb[0].mxu0 %vm464_vm13, %v781_v21 }
 0x184   : > { %v555_v26 = vpop.f32.mrb[0].mxu1 }
 0x185   : > { %v726_v28 = vpop.f32.mrb[1].mxu1  ;;  %v556_v29 = vadd.f32 %v555_v26, %v412_v13 }
 0x186   : > { %v558_v30 = vpop.f32.mrb[2].mxu1 }
 0x187   : > { %v564_v31 = vmax.f32 %v556_v29, 0.0  ;;  %v559_v32 = vadd.f32 %v558_v30, %v417_v27  ;;  %v727_v33 = vpop.f32.mrb[3].mxu1 }
 0x189   : > { %v512_v34 = vpop.f32.mrb[0].mxu0  ;;  %v711_v35 = vpack.c.bf16 %v564_v31, %v564_v31  ;;  %v567_v38 = vmax.f32 %v559_v32, 0.0 }
 0x18a   : > { %v513_v36 = vadd.f32 %v512_v34, %v412_v13  ;;  %v514_v37 = vpop.f32.mrb[1].mxu0 }
 0x18b   : > { %v515_v39 = vadd.f32 %v514_v37, %v412_v13  ;;  %v516_v40 = vpop.f32.mrb[2].mxu0  ;;  %590 = vst.msk [vmem:[%s206_s10 + $0x8] sm:$0xf] %vm589_vm14, %v711_v35  ;;  %v713_v42 = vpack.c.bf16 %v567_v38, %v567_v38 }
 0x18c   : > { %v562_v41 = vmax.f32 %v513_v36, 0.0  ;;  %v517_v43 = vadd.f32 %v516_v40, %v417_v27  ;;  %v518_v44 = vpop.f32.mrb[3].mxu0 }
 0x18d   : > { %v563_v45 = vmax.f32 %v515_v39, 0.0  ;;  %v519_v46 = vadd.f32 %v518_v44, %v417_v27  ;;  %592 = vst.msk [vmem:[%s206_s10 + $0x14] sm:$0x3] %vm229_vm0, %v713_v42 }
 0x18e   : > { %v565_v47 = vmax.f32 %v517_v43, 0.0 }
 0x18f   : > { %v710_v48 = vpack.c.bf16 %v563_v45, %v562_v41  ;;  %v566_v49 = vmax.f32 %v519_v46, 0.0 }
 0x191   : > { %588 = vst [vmem:[%s206_s10] sm:$0xff] %v710_v48  ;;  %v712_v50 = vpack.c.bf16 %v566_v49, %v565_v47 }
 0x193   : > { %591 = vst [vmem:[%s206_s10 + $0xc] sm:$0x33] %v712_v50 }
 0x194 PF: > { %s13_s14 = sadd.s32 1, %s804_s14   ;;  %s910_s12 = smov %s800_s13 }
 0x195   : > { %p10_p5 = scmp.ge.s32.totalorder %s13_s14, 4   ;;  %s911_s13 = smov %s913_s15 }
 0x197   :  { %12 = sbr.rel (!%p10_p5) target bundleno = 2 (0x2), region = 62 }

// kernel: rsu4_forward.10
= control target key start
LH: loop header
LB: loop body
LE: loop exit
PB: predicated region body
PF: predicated region fallthrough
CT: control target
= control target key end

     0   :  { %s675_s12 = smov 0   ;;  %s677_s13 = smov 0   ;;  %s770_s0 = inlined_call_operand.vmem [shape: bf16[2,1,12,102], index: 0, kind: input, shape index: {}]   ;;  %s771_s1 = inlined_call_operand.vmem [shape: bf16[12,108], index: 1, kind: input, shape index: {}]   ;;  %s772_s2 = inlined_call_operand.vmem [shape: f32[12,1], index: 2, kind: input, shape index: {}]   ;;  %s773_s3 = inlined_call_operand.vmem [shape: bf16[2,12,80], index: 3, kind: output, shape index: {}]  }
   0x1   :  { %s679_s14 = smov 0  }
   0x2 LB: > { %s25_s15 = sadd.s32 1, %s638_s13  ;;  %p527_p0 = scmp.ge.s32.totalorder %s642_s14, 1  ;;  %s642_s14 = sphi %s679_s14, %s13_s14   ;;  %s638_s13 = sphi %s677_s13, %s777_s13   ;;  %s634_s12 = sphi %s675_s12, %s776_s12  }
   0x3   : > { %p27_p1 = scmp.ge.s32.totalorder %s25_s15, 2  ;;  %p157_p2 = scmp.lt.s32.totalorder %s642_s14, 3 }
   0x5   : > { %s779_s15 = smov (%p27_p1, %s25_s15), 0  ;;  %p158_p3 = pnand %p527_p0, %p157_p2 }
   0x6   : > { %p188_p4 = scmp.lt.s32.totalorder (!%p158_p3), %s634_s12, 1  ;;  %vm208_vm0 = vcmask (!%p158_p3), 650240   ;;  %vm210_vm1 = vcmask (!%p158_p3), 648192   ;;  %v644_v0 = vmov (!%p158_p3), 0.0   ;;  %s645_s20 = smov (!%p158_p3), 126   ;;  %vm214_vm2 = vcmask (!%p158_p3), 1041408  }
   0x7   : > { %161 = sbr.rel (%p158_p3) target bundleno = 396 (0x18c), region = 32  ;;  %557 = vmatprep.subr.bf16.mxu0 (!%p158_p3), %v644_v0  ;;  %vm215_vm3 = vcmask (!%p158_p3), 1045508   ;;  %s646_s21 = smov (!%p158_p3), 127   ;;  %vm653_vm5 = vmmov (!%p158_p3), 0   ;;  %v319_v20 = vld [vmem:[%s772_s2 + $0x8] sm:$0xf] (!%p158_p3) }
   0x8   : > { %vm710_vm4 = vmor (!%p158_p3), %vm214_vm2, %vm215_vm3  ;;  %s647_s22 = smov (!%p158_p3), 118   ;;  %s648_s23 = smov (!%p158_p3), 117   ;;  %571 = vmatprep.mubr.msk.bf16.mxu0 (!%p158_p3), %vm653_vm5, %v644_v0  ;;  %v654_v21 = vmov (!%p158_p3), 0   ;;  %v318_v22 = vld [vmem:[%s772_s2] sm:$0xff] (!%p158_p3)  ;;  %vm227_vm6 = vcmask (!%p158_p3), 650242   ;;  %vm380_vm7 = vcmask (!%p158_p3), 1045504  }
   0x9   : > { %s649_s24 = smov (!%p158_p3), 116   ;;  %s650_s25 = smov (!%p158_p3), 108   ;;  %610 = vset.pattern.permute.xlu0 (!%p158_p3), %v654_v21  ;;  %611 = vset.pattern.permute.xlu1 (!%p158_p3), %v654_v21  ;;  %v619_v47 = vld [vmem:[%s771_s1] sm:$0x3f] (!%p158_p3)   ;;  %vm376_vm8 = vcmask (!%p158_p3), 883712  }
   0xa   : > { %s651_s26 = smov (!%p158_p3), 107   ;;  %s652_s27 = smov (!%p158_p3), 106  }
   0xe   : > { %s781_s12 = smov (!%p188_p4, %s634_s12), 1 }
   0xf   : > { %s545_s16 = sshll.u32 %s781_s12, 3 }
  0x10   : > { %s702_s19 = scalar_lea.vmem %s770_s0, %s545_s16  ;;  %s204_s9 = scalar_lea.vmem %s773_s3, %s545_s16 }
  0x11   : > { %v206_v1 = vld [vmem:[%s702_s19] sm:$0xf]  ;;  %v207_v2 = vld [vmem:[%s702_s19 + $0x4] sm:$0x3] }
  0x12   : > { %v238_v3 = vld [vmem:[%s702_s19] sm:$0xf]  ;;  %230 = vrot.lane.b32.xlu1 %v206_v1, %s645_s20  ;;  %209 = vst.msk [vmem:[#allocation2] sm:$0xf] %vm208_vm0, %v206_v1  ;;  %v217_v4 = vrot.slane %v206_v1, 6  ;;  %v219_v8 = vrot.slane %v207_v2, 6 }
  0x13   : > { %211 = vst.msk [vmem:[#allocation2 + $0x4] sm:$0x3] %vm210_vm1, %v207_v2  ;;  %v242_v5 = vrot.slane %v238_v3, 6  ;;  %v239_v6 = vld [vmem:[%s702_s19 + $0x4] sm:$0x3] }
  0x14   : > { %221 = vrot.lane.b32.xlu0 %v217_v4, %s646_s21  ;;  %v218_v7 = vrot.slane %v217_v4, 4  ;;  %v244_v10 = vrot.slane %v239_v6, 6  ;;  %v270_v14 = vld [vmem:[%s702_s19] sm:$0xf]  ;;  %v271_v16 = vld [vmem:[%s702_s19 + $0x4] sm:$0x3] }
  0x15   : > { %v243_v11 = vrot.slane %v242_v5, 4  ;;  %v282_v15 = vrot.slane %v270_v14, 6  ;;  %v284_v17 = vrot.slane %v271_v16, 6 }
  0x16   : > { %232 = vrot.lane.b32.xlu1 %v207_v2, %s645_s20  ;;  %v220_v12 = vsel %vm710_vm4, %v218_v7, %v219_v8 }
  0x17   : > { %v245_v13 = vsel %vm710_vm4, %v243_v11, %v244_v10  ;;  %v283_v18 = vrot.slane %v282_v15, 4 }
  0x18   : > { %246 = vrot.lane.b32.xlu0 %v242_v5, %s647_s22 }
  0x19   : > { %v285_v19 = vsel %vm710_vm4, %v283_v18, %v284_v17 }
  0x1a   : > { %256 = vrot.lane.b32.xlu1 %v239_v6, %s648_s23 }
  0x1c   : > { %223 = vrot.lane.b32.xlu0 %v220_v12, %s646_s21 }
  0x1e   : > { %248 = vrot.lane.b32.xlu1 %v245_v13, %s647_s22 }
  0x20   : > { %254 = vrot.lane.b32.xlu0 %v238_v3, %s648_s23 }
  0x22   : > { %264 = vrot.lane.b32.xlu1 %v245_v13, %s649_s24 }
  0x24   : > { %262 = vrot.lane.b32.xlu0 %v242_v5, %s649_s24 }
  0x26   : > { %276 = vrot.lane.b32.xlu1 %v271_v16, %s650_s25 }
  0x28   : > { %274 = vrot.lane.b32.xlu0 %v270_v14, %s650_s25 }
  0x2a   : > { %288 = vrot.lane.b32.xlu1 %v285_v19, %s651_s26 }
  0x2c   : > { %286 = vrot.lane.b32.xlu0 %v282_v15, %s651_s26 }
  0x2e   : > { %296 = vrot.lane.b32.xlu1 %v271_v16, %s652_s27 }
  0x30   : > { %294 = vrot.lane.b32.xlu0 %v270_v14, %s652_s27 }
  0x32   : > { %327 = vperm.xlu1 %611, %v319_v20  }
  0x34   : > { %322 = vperm.xlu0 %610, %v318_v22  }
  0x84   : > { %v231_v23 = vpop.permute.xlu1 %230 }
  0x85   : > { %236 = vst.msk [vmem:[#allocation2 + $0xc] sm:$0xf] %vm208_vm0, %v231_v23 }
  0x86   : > { %v222_v24 = vpop.permute.xlu0 %221 }
  0x87   : > { %228 = vst.msk [vmem:[#allocation2 + $0x4] sm:$0xc] %vm227_vm6, %v222_v24 }
  0x88   : > { %v233_v25 = vpop.permute.xlu1 %232 }
  0x89   : > { %237 = vst.msk [vmem:[#allocation2 + $0x10] sm:$0x3] %vm210_vm1, %v233_v25 }
  0x8a   : > { %v247_v26 = vpop.permute.xlu0 %246 }
  0x8b   : > { %252 = vst.msk [vmem:[#allocation2 + $0x10] sm:$0xc] %vm227_vm6, %v247_v26 }
  0x8c   : > { %v257_v27 = vpop.permute.xlu1 %256 }
  0x8d   : > { %261 = vst.msk [vmem:[#allocation2 + $0x1c] sm:$0x3] %vm210_vm1, %v257_v27 }
  0x8e   : > { %v224_v28 = vpop.permute.xlu0 %223  ;;  %v612_v29 = vld [vmem:[#allocation2] sm:$0xff]  }
  0x8f   : > { %229 = vst.msk [vmem:[#allocation2 + $0x8] sm:$0xf] %vm208_vm0, %v224_v28  ;;  %558 = vmatpush3.bf16.msra.mxu0 %v612_v29 }
  0x90   : > { %v249_v30 = vpop.permute.xlu1 %248  ;;  %559 = vmatprep.subr.bf16.mxu0 %v644_v0 }
  0x91   : > { %253 = vst.msk [vmem:[#allocation2 + $0x14] sm:$0xf] %vm208_vm0, %v249_v30 }
  0x92   : > { %v255_v31 = vpop.permute.xlu0 %254 }
  0x93   : > { %260 = vst.msk [vmem:[#allocation2 + $0x18] sm:$0xf] %vm208_vm0, %v255_v31 }
  0x94   : > { %v265_v32 = vpop.permute.xlu1 %264 }
  0x95   : > { %269 = vst.msk [vmem:[#allocation2 + $0x20] sm:$0xf] %vm208_vm0, %v265_v32 }
  0x96   : > { %v263_v33 = vpop.permute.xlu0 %262  ;;  %v613_v34 = vld [vmem:[#allocation2 + $0x8] sm:$0xff]  }
  0x97   : > { %268 = vst.msk [vmem:[#allocation2 + $0x1c] sm:$0xc] %vm227_vm6, %v263_v33  ;;  %560 = vmatpush3.bf16.msra.mxu0 %v613_v34 }
  0x98   : > { %v277_v35 = vpop.permute.xlu1 %276  ;;  %561 = vmatprep.subr.bf16.mxu0 %v644_v0  ;;  %v614_v37 = vld [vmem:[#allocation2 + $0x10] sm:$0xff]  }
  0x99   : > { %281 = vst.msk [vmem:[#allocation2 + $0x28] sm:$0x3] %vm210_vm1, %v277_v35 }
  0x9a   : > { %v275_v36 = vpop.permute.xlu0 %274 }
  0x9b   : > { %280 = vst.msk [vmem:[#allocation2 + $0x24] sm:$0xf] %vm208_vm0, %v275_v36  ;;  %562 = vmatpush3.bf16.msra.mxu0 %v614_v37 }
  0x9c   : > { %v289_v38 = vpop.permute.xlu1 %288  ;;  %563 = vmatprep.subr.bf16.mxu0 %v644_v0 }
  0x9d   : > { %293 = vst.msk [vmem:[#allocation2 + $0x2c] sm:$0xf] %vm208_vm0, %v289_v38 }
  0x9e   : > { %v287_v39 = vpop.permute.xlu0 %286  ;;  %v615_v40 = vld [vmem:[#allocation2 + $0x18] sm:$0xff]  }
  0x9f   : > { %292 = vst.msk [vmem:[#allocation2 + $0x28] sm:$0xc] %vm227_vm6, %v287_v39  ;;  %564 = vmatpush3.bf16.msra.mxu0 %v615_v40 }
  0xa0   : > { %v297_v41 = vpop.permute.xlu1 %296  ;;  %565 = vmatprep.subr.bf16.mxu0 %v644_v0 }
  0xa1   : > { %301 = vst.msk [vmem:[#allocation2 + $0x34] sm:$0x3] %vm210_vm1, %v297_v41 }
  0xa2   : > { %v295_v42 = vpop.permute.xlu0 %294  ;;  %v616_v43 = vld [vmem:[#allocation2 + $0x20] sm:$0xff]  }
  0xa3   : > { %300 = vst.msk [vmem:[#allocation2 + $0x30] sm:$0xf] %vm208_vm0, %v295_v42  ;;  %566 = vmatpush3.bf16.msra.mxu0 %v616_v43 }
  0xa4   : > { %567 = vmatprep.subr.bf16.mxu0 %v644_v0 }
  0xa6   : > { %v617_v44 = vld [vmem:[#allocation2 + $0x28] sm:$0xff]  }
  0xa7   : > { %568 = vmatpush3.bf16.msra.mxu0 %v617_v44 }
  0xa8   : > { %569 = vmatprep.subr.bf16.mxu0 %v644_v0 }
  0xaa   : > { %v618_v45 = vld [vmem:[#allocation2 + $0x30] sm:$0x3f]  }
  0xab   : > { %v382_v46 = vsel %vm380_vm7, %v618_v45, 0 }
  0xac   : > { %570 = vmatpush3.bf16.msra.mxu0 %v382_v46 }
  0xaf   : > { %572 = vmatmul.mubr.msk.bf16.vlgmr.msra.gmra.mrb[0].mxu0 %vm376_vm8, %v619_v47 }
  0xb1   : > { %v328_v50 = vpop.permute.xlu1 %327 }
  0xb3   : > { %v323_v48 = vpop.permute.xlu0 %322 }
 0x182   : > { %v418_v49 = vpop.f32.mrb[0].mxu0 }
 0x183   : > { %v419_v51 = vadd.f32 %v418_v49, %v323_v48  ;;  %v573_v52 = vpop.f32.mrb[1].mxu0 }
 0x184   : > { %v421_v53 = vpop.f32.mrb[2].mxu0 }
 0x185   : > { %v425_v54 = vmax.f32 %v419_v51, 0.0  ;;  %v422_v55 = vadd.f32 %v421_v53, %v328_v50  ;;  %v574_v56 = vpop.f32.mrb[3].mxu0 }
 0x187   : > { %v547_v57 = vpack.c.bf16 %v425_v54, %v425_v54  ;;  %v426_v58 = vmax.f32 %v422_v55, 0.0 }
 0x189   : > { %435 = vst.msk [vmem:[%s204_s9] sm:$0xf] %vm208_vm0, %v547_v57  ;;  %v548_v59 = vpack.c.bf16 %v426_v58, %v426_v58 }
 0x18b   : > { %436 = vst.msk [vmem:[%s204_s9 + $0x4] sm:$0x3] %vm210_vm1, %v548_v59 }
 0x18c PF: > { %s13_s14 = sadd.s32 1, %s642_s14   ;;  %s776_s12 = smov %s638_s13 }
 0x18d   : > { %p10_p5 = scmp.ge.s32.totalorder %s13_s14, 4   ;;  %s777_s13 = smov %s779_s15 }
 0x18f   :  { %12 = sbr.rel (!%p10_p5) target bundleno = 2 (0x2), region = 62 }

// kernel: rsu4_forward.11
= control target key start
LH: loop header
LB: loop body
LE: loop exit
PB: predicated region body
PF: predicated region fallthrough
CT: control target
= control target key end

     0   :  { %s675_s12 = smov 0   ;;  %s677_s13 = smov 0   ;;  %s770_s0 = inlined_call_operand.vmem [shape: bf16[2,1,12,38], index: 0, kind: input, shape index: {}]   ;;  %s771_s1 = inlined_call_operand.vmem [shape: bf16[12,108], index: 1, kind: input, shape index: {}]   ;;  %s772_s2 = inlined_call_operand.vmem [shape: f32[12,1], index: 2, kind: input, shape index: {}]   ;;  %s773_s3 = inlined_call_operand.vmem [shape: bf16[2,12,24], index: 3, kind: output, shape index: {}]  }
   0x1   :  { %s679_s14 = smov 0  }
   0x2 LB: > { %s25_s15 = sadd.s32 1, %s638_s13  ;;  %p527_p0 = scmp.ge.s32.totalorder %s642_s14, 1  ;;  %s642_s14 = sphi %s679_s14, %s13_s14   ;;  %s638_s13 = sphi %s677_s13, %s777_s13   ;;  %s634_s12 = sphi %s675_s12, %s776_s12  }
   0x3   : > { %p27_p1 = scmp.ge.s32.totalorder %s25_s15, 2  ;;  %p157_p2 = scmp.lt.s32.totalorder %s642_s14, 3 }
   0x5   : > { %s779_s15 = smov (%p27_p1, %s25_s15), 0  ;;  %p158_p3 = pnand %p527_p0, %p157_p2 }
   0x6   : > { %p188_p4 = scmp.lt.s32.totalorder (!%p158_p3), %s634_s12, 1  ;;  %vm208_vm0 = vcmask (!%p158_p3), 191488   ;;  %vm210_vm1 = vcmask (!%p158_p3), 189440   ;;  %v644_v0 = vmov (!%p158_p3), 0.0   ;;  %s645_s20 = smov (!%p158_p3), 126   ;;  %vm214_vm2 = vcmask (!%p158_p3), 1041408  }
   0x7   : > { %161 = sbr.rel (%p158_p3) target bundleno = 396 (0x18c), region = 32  ;;  %557 = vmatprep.subr.bf16.mxu0 (!%p158_p3), %v644_v0  ;;  %vm215_vm3 = vcmask (!%p158_p3), 1045508   ;;  %s646_s21 = smov (!%p158_p3), 127   ;;  %vm653_vm5 = vmmov (!%p158_p3), 0   ;;  %v319_v20 = vld [vmem:[%s772_s2 + $0x8] sm:$0xf] (!%p158_p3) }
   0x8   : > { %vm710_vm4 = vmor (!%p158_p3), %vm214_vm2, %vm215_vm3  ;;  %s647_s22 = smov (!%p158_p3), 122   ;;  %s648_s23 = smov (!%p158_p3), 121   ;;  %571 = vmatprep.mubr.msk.bf16.mxu0 (!%p158_p3), %vm653_vm5, %v644_v0  ;;  %v654_v21 = vmov (!%p158_p3), 0   ;;  %v318_v22 = vld [vmem:[%s772_s2] sm:$0xff] (!%p158_p3)  ;;  %vm227_vm6 = vcmask (!%p158_p3), 191490   ;;  %vm380_vm7 = vcmask (!%p158_p3), 1045504  }
   0x9   : > { %s649_s24 = smov (!%p158_p3), 120   ;;  %s650_s25 = smov (!%p158_p3), 116   ;;  %610 = vset.pattern.permute.xlu0 (!%p158_p3), %v654_v21  ;;  %611 = vset.pattern.permute.xlu1 (!%p158_p3), %v654_v21  ;;  %v619_v47 = vld [vmem:[%s771_s1] sm:$0x3f] (!%p158_p3)   ;;  %vm376_vm8 = vcmask (!%p158_p3), 883712  }
   0xa   : > { %s651_s26 = smov (!%p158_p3), 115   ;;  %s652_s27 = smov (!%p158_p3), 114  }
   0xe   : > { %s781_s12 = smov (!%p188_p4, %s634_s12), 1 }
   0xf   : > { %s545_s16 = sshll.u32 %s781_s12, 3 }
  0x10   : > { %s702_s19 = scalar_lea.vmem %s770_s0, %s545_s16  ;;  %s204_s9 = scalar_lea.vmem %s773_s3, %s545_s16 }
  0x11   : > { %v206_v1 = vld [vmem:[%s702_s19] sm:$0xf]  ;;  %v207_v2 = vld [vmem:[%s702_s19 + $0x4] sm:$0x3] }
  0x12   : > { %v238_v3 = vld [vmem:[%s702_s19] sm:$0xf]  ;;  %230 = vrot.lane.b32.xlu1 %v206_v1, %s645_s20  ;;  %209 = vst.msk [vmem:[#allocation2] sm:$0xf] %vm208_vm0, %v206_v1  ;;  %v217_v4 = vrot.slane %v206_v1, 6  ;;  %v219_v8 = vrot.slane %v207_v2, 6 }
  0x13   : > { %211 = vst.msk [vmem:[#allocation2 + $0x4] sm:$0x3] %vm210_vm1, %v207_v2  ;;  %v242_v5 = vrot.slane %v238_v3, 6  ;;  %v239_v6 = vld [vmem:[%s702_s19 + $0x4] sm:$0x3] }
  0x14   : > { %221 = vrot.lane.b32.xlu0 %v217_v4, %s646_s21  ;;  %v218_v7 = vrot.slane %v217_v4, 4  ;;  %v244_v10 = vrot.slane %v239_v6, 6  ;;  %v270_v14 = vld [vmem:[%s702_s19] sm:$0xf]  ;;  %v271_v16 = vld [vmem:[%s702_s19 + $0x4] sm:$0x3] }
  0x15   : > { %v243_v11 = vrot.slane %v242_v5, 4  ;;  %v282_v15 = vrot.slane %v270_v14, 6  ;;  %v284_v17 = vrot.slane %v271_v16, 6 }
  0x16   : > { %232 = vrot.lane.b32.xlu1 %v207_v2, %s645_s20  ;;  %v220_v12 = vsel %vm710_vm4, %v218_v7, %v219_v8 }
  0x17   : > { %v245_v13 = vsel %vm710_vm4, %v243_v11, %v244_v10  ;;  %v283_v18 = vrot.slane %v282_v15, 4 }
  0x18   : > { %246 = vrot.lane.b32.xlu0 %v242_v5, %s647_s22 }
  0x19   : > { %v285_v19 = vsel %vm710_vm4, %v283_v18, %v284_v17 }
  0x1a   : > { %256 = vrot.lane.b32.xlu1 %v239_v6, %s648_s23 }
  0x1c   : > { %223 = vrot.lane.b32.xlu0 %v220_v12, %s646_s21 }
  0x1e   : > { %248 = vrot.lane.b32.xlu1 %v245_v13, %s647_s22 }
  0x20   : > { %254 = vrot.lane.b32.xlu0 %v238_v3, %s648_s23 }
  0x22   : > { %264 = vrot.lane.b32.xlu1 %v245_v13, %s649_s24 }
  0x24   : > { %262 = vrot.lane.b32.xlu0 %v242_v5, %s649_s24 }
  0x26   : > { %276 = vrot.lane.b32.xlu1 %v271_v16, %s650_s25 }
  0x28   : > { %274 = vrot.lane.b32.xlu0 %v270_v14, %s650_s25 }
  0x2a   : > { %288 = vrot.lane.b32.xlu1 %v285_v19, %s651_s26 }
  0x2c   : > { %286 = vrot.lane.b32.xlu0 %v282_v15, %s651_s26 }
  0x2e   : > { %296 = vrot.lane.b32.xlu1 %v271_v16, %s652_s27 }
  0x30   : > { %294 = vrot.lane.b32.xlu0 %v270_v14, %s652_s27 }
  0x32   : > { %327 = vperm.xlu1 %611, %v319_v20  }
  0x34   : > { %322 = vperm.xlu0 %610, %v318_v22  }
  0x84   : > { %v231_v23 = vpop.permute.xlu1 %230 }
  0x85   : > { %236 = vst.msk [vmem:[#allocation2 + $0xc] sm:$0xf] %vm208_vm0, %v231_v23 }
  0x86   : > { %v222_v24 = vpop.permute.xlu0 %221 }
  0x87   : > { %228 = vst.msk [vmem:[#allocation2 + $0x4] sm:$0xc] %vm227_vm6, %v222_v24 }
  0x88   : > { %v233_v25 = vpop.permute.xlu1 %232 }
  0x89   : > { %237 = vst.msk [vmem:[#allocation2 + $0x10] sm:$0x3] %vm210_vm1, %v233_v25 }
  0x8a   : > { %v247_v26 = vpop.permute.xlu0 %246 }
  0x8b   : > { %252 = vst.msk [vmem:[#allocation2 + $0x10] sm:$0xc] %vm227_vm6, %v247_v26 }
  0x8c   : > { %v257_v27 = vpop.permute.xlu1 %256 }
  0x8d   : > { %261 = vst.msk [vmem:[#allocation2 + $0x1c] sm:$0x3] %vm210_vm1, %v257_v27 }
  0x8e   : > { %v224_v28 = vpop.permute.xlu0 %223  ;;  %v612_v29 = vld [vmem:[#allocation2] sm:$0xff]  }
  0x8f   : > { %229 = vst.msk [vmem:[#allocation2 + $0x8] sm:$0xf] %vm208_vm0, %v224_v28  ;;  %558 = vmatpush3.bf16.msra.mxu0 %v612_v29 }
  0x90   : > { %v249_v30 = vpop.permute.xlu1 %248  ;;  %559 = vmatprep.subr.bf16.mxu0 %v644_v0 }
  0x91   : > { %253 = vst.msk [vmem:[#allocation2 + $0x14] sm:$0xf] %vm208_vm0, %v249_v30 }
  0x92   : > { %v255_v31 = vpop.permute.xlu0 %254 }
  0x93   : > { %260 = vst.msk [vmem:[#allocation2 + $0x18] sm:$0xf] %vm208_vm0, %v255_v31 }
  0x94   : > { %v265_v32 = vpop.permute.xlu1 %264 }
  0x95   : > { %269 = vst.msk [vmem:[#allocation2 + $0x20] sm:$0xf] %vm208_vm0, %v265_v32 }
  0x96   : > { %v263_v33 = vpop.permute.xlu0 %262  ;;  %v613_v34 = vld [vmem:[#allocation2 + $0x8] sm:$0xff]  }
  0x97   : > { %268 = vst.msk [vmem:[#allocation2 + $0x1c] sm:$0xc] %vm227_vm6, %v263_v33  ;;  %560 = vmatpush3.bf16.msra.mxu0 %v613_v34 }
  0x98   : > { %v277_v35 = vpop.permute.xlu1 %276  ;;  %561 = vmatprep.subr.bf16.mxu0 %v644_v0  ;;  %v614_v37 = vld [vmem:[#allocation2 + $0x10] sm:$0xff]  }
  0x99   : > { %281 = vst.msk [vmem:[#allocation2 + $0x28] sm:$0x3] %vm210_vm1, %v277_v35 }
  0x9a   : > { %v275_v36 = vpop.permute.xlu0 %274 }
  0x9b   : > { %280 = vst.msk [vmem:[#allocation2 + $0x24] sm:$0xf] %vm208_vm0, %v275_v36  ;;  %562 = vmatpush3.bf16.msra.mxu0 %v614_v37 }
  0x9c   : > { %v289_v38 = vpop.permute.xlu1 %288  ;;  %563 = vmatprep.subr.bf16.mxu0 %v644_v0 }
  0x9d   : > { %293 = vst.msk [vmem:[#allocation2 + $0x2c] sm:$0xf] %vm208_vm0, %v289_v38 }
  0x9e   : > { %v287_v39 = vpop.permute.xlu0 %286  ;;  %v615_v40 = vld [vmem:[#allocation2 + $0x18] sm:$0xff]  }
  0x9f   : > { %292 = vst.msk [vmem:[#allocation2 + $0x28] sm:$0xc] %vm227_vm6, %v287_v39  ;;  %564 = vmatpush3.bf16.msra.mxu0 %v615_v40 }
  0xa0   : > { %v297_v41 = vpop.permute.xlu1 %296  ;;  %565 = vmatprep.subr.bf16.mxu0 %v644_v0 }
  0xa1   : > { %301 = vst.msk [vmem:[#allocation2 + $0x34] sm:$0x3] %vm210_vm1, %v297_v41 }
  0xa2   : > { %v295_v42 = vpop.permute.xlu0 %294  ;;  %v616_v43 = vld [vmem:[#allocation2 + $0x20] sm:$0xff]  }
  0xa3   : > { %300 = vst.msk [vmem:[#allocation2 + $0x30] sm:$0xf] %vm208_vm0, %v295_v42  ;;  %566 = vmatpush3.bf16.msra.mxu0 %v616_v43 }
  0xa4   : > { %567 = vmatprep.subr.bf16.mxu0 %v644_v0 }
  0xa6   : > { %v617_v44 = vld [vmem:[#allocation2 + $0x28] sm:$0xff]  }
  0xa7   : > { %568 = vmatpush3.bf16.msra.mxu0 %v617_v44 }
  0xa8   : > { %569 = vmatprep.subr.bf16.mxu0 %v644_v0 }
  0xaa   : > { %v618_v45 = vld [vmem:[#allocation2 + $0x30] sm:$0x3f]  }
  0xab   : > { %v382_v46 = vsel %vm380_vm7, %v618_v45, 0 }
  0xac   : > { %570 = vmatpush3.bf16.msra.mxu0 %v382_v46 }
  0xaf   : > { %572 = vmatmul.mubr.msk.bf16.vlgmr.msra.gmra.mrb[0].mxu0 %vm376_vm8, %v619_v47 }
  0xb1   : > { %v328_v50 = vpop.permute.xlu1 %327 }
  0xb3   : > { %v323_v48 = vpop.permute.xlu0 %322 }
 0x182   : > { %v418_v49 = vpop.f32.mrb[0].mxu0 }
 0x183   : > { %v419_v51 = vadd.f32 %v418_v49, %v323_v48  ;;  %v573_v52 = vpop.f32.mrb[1].mxu0 }
 0x184   : > { %v421_v53 = vpop.f32.mrb[2].mxu0 }
 0x185   : > { %v425_v54 = vmax.f32 %v419_v51, 0.0  ;;  %v422_v55 = vadd.f32 %v421_v53, %v328_v50  ;;  %v574_v56 = vpop.f32.mrb[3].mxu0 }
 0x187   : > { %v547_v57 = vpack.c.bf16 %v425_v54, %v425_v54  ;;  %v426_v58 = vmax.f32 %v422_v55, 0.0 }
 0x189   : > { %435 = vst.msk [vmem:[%s204_s9] sm:$0xf] %vm208_vm0, %v547_v57  ;;  %v548_v59 = vpack.c.bf16 %v426_v58, %v426_v58 }
 0x18b   : > { %436 = vst.msk [vmem:[%s204_s9 + $0x4] sm:$0x3] %vm210_vm1, %v548_v59 }
 0x18c PF: > { %s13_s14 = sadd.s32 1, %s642_s14   ;;  %s776_s12 = smov %s638_s13 }
 0x18d   : > { %p10_p5 = scmp.ge.s32.totalorder %s13_s14, 4   ;;  %s777_s13 = smov %s779_s15 }
 0x18f   :  { %12 = sbr.rel (!%p10_p5) target bundleno = 2 (0x2), region = 62 }

// kernel: rsu4_forward.12
= control target key start
LH: loop header
LB: loop body
LE: loop exit
PB: predicated region body
PF: predicated region fallthrough
CT: control target
= control target key end

     0   :  { %s675_s12 = smov 0   ;;  %s677_s13 = smov 0   ;;  %s770_s0 = inlined_call_operand.vmem [shape: bf16[2,1,12,68], index: 0, kind: input, shape index: {}]   ;;  %s771_s1 = inlined_call_operand.vmem [shape: bf16[12,108], index: 1, kind: input, shape index: {}]   ;;  %s772_s2 = inlined_call_operand.vmem [shape: f32[12,1], index: 2, kind: input, shape index: {}]   ;;  %s773_s3 = inlined_call_operand.vmem [shape: bf16[2,12,32], index: 3, kind: output, shape index: {}]  }
   0x1   :  { %s679_s14 = smov 0  }
   0x2 LB: > { %s25_s15 = sadd.s32 1, %s638_s13  ;;  %p527_p0 = scmp.ge.s32.totalorder %s642_s14, 1  ;;  %s642_s14 = sphi %s679_s14, %s13_s14   ;;  %s638_s13 = sphi %s677_s13, %s777_s13   ;;  %s634_s12 = sphi %s675_s12, %s776_s12  }
   0x3   : > { %p27_p1 = scmp.ge.s32.totalorder %s25_s15, 2  ;;  %p157_p2 = scmp.lt.s32.totalorder %s642_s14, 3 }
   0x5   : > { %s779_s15 = smov (%p27_p1, %s25_s15), 0  ;;  %p158_p3 = pnand %p527_p0, %p157_p2 }
   0x6   : > { %p188_p4 = scmp.lt.s32.totalorder (!%p158_p3), %s634_s12, 1  ;;  %vm208_vm0 = vcmask (!%p158_p3), 257024   ;;  %vm210_vm1 = vcmask (!%p158_p3), 254976   ;;  %v644_v0 = vmov (!%p158_p3), 0.0   ;;  %s645_s20 = smov (!%p158_p3), 124   ;;  %vm214_vm2 = vcmask (!%p158_p3), 1041408  }
   0x7   : > { %161 = sbr.rel (%p158_p3) target bundleno = 396 (0x18c), region = 32  ;;  %557 = vmatprep.subr.bf16.mxu0 (!%p158_p3), %v644_v0  ;;  %vm215_vm3 = vcmask (!%p158_p3), 1045508   ;;  %s646_s21 = smov (!%p158_p3), 126   ;;  %vm653_vm5 = vmmov (!%p158_p3), 0   ;;  %v319_v20 = vld [vmem:[%s772_s2 + $0x8] sm:$0xf] (!%p158_p3) }
   0x8   : > { %vm710_vm4 = vmor (!%p158_p3), %vm214_vm2, %vm215_vm3  ;;  %s647_s22 = smov (!%p158_p3), 112   ;;  %s648_s23 = smov (!%p158_p3), 110   ;;  %571 = vmatprep.mubr.msk.bf16.mxu0 (!%p158_p3), %vm653_vm5, %v644_v0  ;;  %v654_v21 = vmov (!%p158_p3), 0   ;;  %v318_v22 = vld [vmem:[%s772_s2] sm:$0xff] (!%p158_p3)  ;;  %vm227_vm6 = vcmask (!%p158_p3), 257026   ;;  %vm380_vm7 = vcmask (!%p158_p3), 1045504  }
   0x9   : > { %s649_s24 = smov (!%p158_p3), 108   ;;  %s650_s25 = smov (!%p158_p3), 96   ;;  %610 = vset.pattern.permute.xlu0 (!%p158_p3), %v654_v21  ;;  %611 = vset.pattern.permute.xlu1 (!%p158_p3), %v654_v21  ;;  %v619_v47 = vld [vmem:[%s771_s1] sm:$0x3f] (!%p158_p3)   ;;  %vm376_vm8 = vcmask (!%p158_p3), 883712  }
   0xa   : > { %s651_s26 = smov (!%p158_p3), 94   ;;  %s652_s27 = smov (!%p158_p3), 92  }
   0xe   : > { %s781_s12 = smov (!%p188_p4, %s634_s12), 1 }
   0xf   : > { %s545_s16 = sshll.u32 %s781_s12, 3 }
  0x10   : > { %s702_s19 = scalar_lea.vmem %s770_s0, %s545_s16  ;;  %s204_s9 = scalar_lea.vmem %s773_s3, %s545_s16 }
  0x11   : > { %v206_v1 = vld [vmem:[%s702_s19] sm:$0xf]  ;;  %v207_v2 = vld [vmem:[%s702_s19 + $0x4] sm:$0x3] }
  0x12   : > { %v238_v3 = vld [vmem:[%s702_s19] sm:$0xf]  ;;  %230 = vrot.lane.b32.xlu1 %v206_v1, %s645_s20  ;;  %209 = vst.msk [vmem:[#allocation2] sm:$0xf] %vm208_vm0, %v206_v1  ;;  %v217_v4 = vrot.slane %v206_v1, 6  ;;  %v219_v8 = vrot.slane %v207_v2, 6 }
  0x13   : > { %211 = vst.msk [vmem:[#allocation2 + $0x4] sm:$0x3] %vm210_vm1, %v207_v2  ;;  %v242_v5 = vrot.slane %v238_v3, 6  ;;  %v239_v6 = vld [vmem:[%s702_s19 + $0x4] sm:$0x3] }
  0x14   : > { %221 = vrot.lane.b32.xlu0 %v217_v4, %s646_s21  ;;  %v218_v7 = vrot.slane %v217_v4, 4  ;;  %v244_v10 = vrot.slane %v239_v6, 6  ;;  %v270_v14 = vld [vmem:[%s702_s19] sm:$0xf]  ;;  %v271_v16 = vld [vmem:[%s702_s19 + $0x4] sm:$0x3] }
  0x15   : > { %v243_v11 = vrot.slane %v242_v5, 4  ;;  %v282_v15 = vrot.slane %v270_v14, 6  ;;  %v284_v17 = vrot.slane %v271_v16, 6 }
  0x16   : > { %232 = vrot.lane.b32.xlu1 %v207_v2, %s645_s20  ;;  %v220_v12 = vsel %vm710_vm4, %v218_v7, %v219_v8 }
  0x17   : > { %v245_v13 = vsel %vm710_vm4, %v243_v11, %v244_v10  ;;  %v283_v18 = vrot.slane %v282_v15, 4 }
  0x18   : > { %246 = vrot.lane.b32.xlu0 %v242_v5, %s647_s22 }
  0x19   : > { %v285_v19 = vsel %vm710_vm4, %v283_v18, %v284_v17 }
  0x1a   : > { %256 = vrot.lane.b32.xlu1 %v239_v6, %s648_s23 }
  0x1c   : > { %223 = vrot.lane.b32.xlu0 %v220_v12, %s646_s21 }
  0x1e   : > { %248 = vrot.lane.b32.xlu1 %v245_v13, %s647_s22 }
  0x20   : > { %254 = vrot.lane.b32.xlu0 %v238_v3, %s648_s23 }
  0x22   : > { %264 = vrot.lane.b32.xlu1 %v245_v13, %s649_s24 }
  0x24   : > { %262 = vrot.lane.b32.xlu0 %v242_v5, %s649_s24 }
  0x26   : > { %276 = vrot.lane.b32.xlu1 %v271_v16, %s650_s25 }
  0x28   : > { %274 = vrot.lane.b32.xlu0 %v270_v14, %s650_s25 }
  0x2a   : > { %288 = vrot.lane.b32.xlu1 %v285_v19, %s651_s26 }
  0x2c   : > { %286 = vrot.lane.b32.xlu0 %v282_v15, %s651_s26 }
  0x2e   : > { %296 = vrot.lane.b32.xlu1 %v271_v16, %s652_s27 }
  0x30   : > { %294 = vrot.lane.b32.xlu0 %v270_v14, %s652_s27 }
  0x32   : > { %327 = vperm.xlu1 %611, %v319_v20  }
  0x34   : > { %322 = vperm.xlu0 %610, %v318_v22  }
  0x84   : > { %v231_v23 = vpop.permute.xlu1 %230 }
  0x85   : > { %236 = vst.msk [vmem:[#allocation2 + $0xc] sm:$0xf] %vm208_vm0, %v231_v23 }
  0x86   : > { %v222_v24 = vpop.permute.xlu0 %221 }
  0x87   : > { %228 = vst.msk [vmem:[#allocation2 + $0x4] sm:$0xc] %vm227_vm6, %v222_v24 }
  0x88   : > { %v233_v25 = vpop.permute.xlu1 %232 }
  0x89   : > { %237 = vst.msk [vmem:[#allocation2 + $0x10] sm:$0x3] %vm210_vm1, %v233_v25 }
  0x8a   : > { %v247_v26 = vpop.permute.xlu0 %246 }
  0x8b   : > { %252 = vst.msk [vmem:[#allocation2 + $0x10] sm:$0xc] %vm227_vm6, %v247_v26 }
  0x8c   : > { %v257_v27 = vpop.permute.xlu1 %256 }
  0x8d   : > { %261 = vst.msk [vmem:[#allocation2 + $0x1c] sm:$0x3] %vm210_vm1, %v257_v27 }
  0x8e   : > { %v224_v28 = vpop.permute.xlu0 %223  ;;  %v612_v29 = vld [vmem:[#allocation2] sm:$0xff]  }
  0x8f   : > { %229 = vst.msk [vmem:[#allocation2 + $0x8] sm:$0xf] %vm208_vm0, %v224_v28  ;;  %558 = vmatpush3.bf16.msra.mxu0 %v612_v29 }
  0x90   : > { %v249_v30 = vpop.permute.xlu1 %248  ;;  %559 = vmatprep.subr.bf16.mxu0 %v644_v0 }
  0x91   : > { %253 = vst.msk [vmem:[#allocation2 + $0x14] sm:$0xf] %vm208_vm0, %v249_v30 }
  0x92   : > { %v255_v31 = vpop.permute.xlu0 %254 }
  0x93   : > { %260 = vst.msk [vmem:[#allocation2 + $0x18] sm:$0xf] %vm208_vm0, %v255_v31 }
  0x94   : > { %v265_v32 = vpop.permute.xlu1 %264 }
  0x95   : > { %269 = vst.msk [vmem:[#allocation2 + $0x20] sm:$0xf] %vm208_vm0, %v265_v32 }
  0x96   : > { %v263_v33 = vpop.permute.xlu0 %262  ;;  %v613_v34 = vld [vmem:[#allocation2 + $0x8] sm:$0xff]  }
  0x97   : > { %268 = vst.msk [vmem:[#allocation2 + $0x1c] sm:$0xc] %vm227_vm6, %v263_v33  ;;  %560 = vmatpush3.bf16.msra.mxu0 %v613_v34 }
  0x98   : > { %v277_v35 = vpop.permute.xlu1 %276  ;;  %561 = vmatprep.subr.bf16.mxu0 %v644_v0  ;;  %v614_v37 = vld [vmem:[#allocation2 + $0x10] sm:$0xff]  }
  0x99   : > { %281 = vst.msk [vmem:[#allocation2 + $0x28] sm:$0x3] %vm210_vm1, %v277_v35 }
  0x9a   : > { %v275_v36 = vpop.permute.xlu0 %274 }
  0x9b   : > { %280 = vst.msk [vmem:[#allocation2 + $0x24] sm:$0xf] %vm208_vm0, %v275_v36  ;;  %562 = vmatpush3.bf16.msra.mxu0 %v614_v37 }
  0x9c   : > { %v289_v38 = vpop.permute.xlu1 %288  ;;  %563 = vmatprep.subr.bf16.mxu0 %v644_v0 }
  0x9d   : > { %293 = vst.msk [vmem:[#allocation2 + $0x2c] sm:$0xf] %vm208_vm0, %v289_v38 }
  0x9e   : > { %v287_v39 = vpop.permute.xlu0 %286  ;;  %v615_v40 = vld [vmem:[#allocation2 + $0x18] sm:$0xff]  }
  0x9f   : > { %292 = vst.msk [vmem:[#allocation2 + $0x28] sm:$0xc] %vm227_vm6, %v287_v39  ;;  %564 = vmatpush3.bf16.msra.mxu0 %v615_v40 }
  0xa0   : > { %v297_v41 = vpop.permute.xlu1 %296  ;;  %565 = vmatprep.subr.bf16.mxu0 %v644_v0 }
  0xa1   : > { %301 = vst.msk [vmem:[#allocation2 + $0x34] sm:$0x3] %vm210_vm1, %v297_v41 }
  0xa2   : > { %v295_v42 = vpop.permute.xlu0 %294  ;;  %v616_v43 = vld [vmem:[#allocation2 + $0x20] sm:$0xff]  }
  0xa3   : > { %300 = vst.msk [vmem:[#allocation2 + $0x30] sm:$0xf] %vm208_vm0, %v295_v42  ;;  %566 = vmatpush3.bf16.msra.mxu0 %v616_v43 }
  0xa4   : > { %567 = vmatprep.subr.bf16.mxu0 %v644_v0 }
  0xa6   : > { %v617_v44 = vld [vmem:[#allocation2 + $0x28] sm:$0xff]  }
  0xa7   : > { %568 = vmatpush3.bf16.msra.mxu0 %v617_v44 }
  0xa8   : > { %569 = vmatprep.subr.bf16.mxu0 %v644_v0 }
  0xaa   : > { %v618_v45 = vld [vmem:[#allocation2 + $0x30] sm:$0x3f]  }
  0xab   : > { %v382_v46 = vsel %vm380_vm7, %v618_v45, 0 }
  0xac   : > { %570 = vmatpush3.bf16.msra.mxu0 %v382_v46 }
  0xaf   : > { %572 = vmatmul.mubr.msk.bf16.vlgmr.msra.gmra.mrb[0].mxu0 %vm376_vm8, %v619_v47 }
  0xb1   : > { %v328_v50 = vpop.permute.xlu1 %327 }
  0xb3   : > { %v323_v48 = vpop.permute.xlu0 %322 }
 0x182   : > { %v418_v49 = vpop.f32.mrb[0].mxu0 }
 0x183   : > { %v419_v51 = vadd.f32 %v418_v49, %v323_v48  ;;  %v573_v52 = vpop.f32.mrb[1].mxu0 }
 0x184   : > { %v421_v53 = vpop.f32.mrb[2].mxu0 }
 0x185   : > { %v425_v54 = vmax.f32 %v419_v51, 0.0  ;;  %v422_v55 = vadd.f32 %v421_v53, %v328_v50  ;;  %v574_v56 = vpop.f32.mrb[3].mxu0 }
 0x187   : > { %v547_v57 = vpack.c.bf16 %v425_v54, %v425_v54  ;;  %v426_v58 = vmax.f32 %v422_v55, 0.0 }
 0x189   : > { %435 = vst.msk [vmem:[%s204_s9] sm:$0xf] %vm208_vm0, %v547_v57  ;;  %v548_v59 = vpack.c.bf16 %v426_v58, %v426_v58 }
 0x18b   : > { %436 = vst.msk [vmem:[%s204_s9 + $0x4] sm:$0x3] %vm210_vm1, %v548_v59 }
 0x18c PF: > { %s13_s14 = sadd.s32 1, %s642_s14   ;;  %s776_s12 = smov %s638_s13 }
 0x18d   : > { %p10_p5 = scmp.ge.s32.totalorder %s13_s14, 4   ;;  %s777_s13 = smov %s779_s15 }
 0x18f   :  { %12 = sbr.rel (!%p10_p5) target bundleno = 2 (0x2), region = 62 }

// kernel: rsu4_forward.13
= control target key start
LH: loop header
LB: loop body
LE: loop exit
PB: predicated region body
PF: predicated region fallthrough
CT: control target
= control target key end

     0   :  { %s901_s15 = smov 0   ;;  %s903_s16 = smov 0   ;;  %s1068_s0 = inlined_call_operand.vmem [shape: bf16[2,1,12,38], index: 0, kind: input, shape index: {}]   ;;  %s1069_s1 = inlined_call_operand.vmem [shape: bf16[2,1,12,38], index: 1, kind: input, shape index: {}]   ;;  %s1070_s2 = inlined_call_operand.vmem [shape: bf16[12,216], index: 2, kind: input, shape index: {}]   ;;  %s1071_s3 = inlined_call_operand.vmem [shape: f32[12,1], index: 3, kind: input, shape index: {}]   ;;  %s1072_s4 = inlined_call_operand.vmem [shape: bf16[2,12,24], index: 4, kind: output, shape index: {}]  }
   0x1   :  { %s905_s17 = smov 0  }
   0x2 LB: > { %s26_s18 = sadd.s32 1, %s861_s16  ;;  %p758_p0 = scmp.ge.s32.totalorder %s865_s17, 1  ;;  %s865_s17 = sphi %s905_s17, %s14_s17   ;;  %s861_s16 = sphi %s903_s16, %s1076_s16   ;;  %s857_s15 = sphi %s901_s15, %s1075_s15  }
   0x3   : > { %p28_p1 = scmp.ge.s32.totalorder %s26_s18, 2  ;;  %p198_p2 = scmp.lt.s32.totalorder %s865_s17, 3 }
   0x5   : > { %s1078_s18 = smov (%p28_p1, %s26_s18), 0  ;;  %p199_p3 = pnand %p758_p0, %p198_p2 }
   0x6   : > { %p240_p4 = scmp.lt.s32.totalorder (!%p199_p3), %s857_s15, 1  ;;  %vm271_vm0 = vcmask (!%p199_p3), 189440   ;;  %vm269_vm1 = vcmask (!%p199_p3), 191488   ;;  %v867_v3 = vmov (!%p199_p3), 0   ;;  %s868_s26 = smov (!%p199_p3), 121   ;;  %vm275_vm2 = vcmask (!%p199_p3), 1041408  }
   0x7   : > { %202 = sbr.rel (%p199_p3) target bundleno = 429 (0x1ad), region = 36  ;;  %594 = vmatprep.subr.bf16.mxu0 (!%p199_p3), %v867_v3  ;;  %824 = vset.pattern.permute.xlu0 (!%p199_p3), %v867_v3  ;;  %s869_s27 = smov (!%p199_p3), 126   ;;  %vm276_vm3 = vcmask (!%p199_p3), 1045508   ;;  %vm288_vm4 = vcmask (!%p199_p3), 191490   ;;  %vm586_vm6 = vcmask (!%p199_p3), 719872   ;;  %v484_v39 = vld [vmem:[%s1071_s3] sm:$0xff] (!%p199_p3) }
   0x8   : > { %825 = vset.pattern.permute.xlu1 (!%p199_p3), %v867_v3  ;;  %s870_s28 = smov (!%p199_p3), 127   ;;  %vm948_vm5 = vmor (!%p199_p3), %vm275_vm2, %vm276_vm3  ;;  %s871_s29 = smov (!%p199_p3), 122   ;;  %v842_v38 = vld [vmem:[%s1070_s2 + $0x4] ss:$8 sps:$4 sm:$0x3f] (!%p199_p3)   ;;  %vm590_vm7 = vcmask (!%p199_p3), 1043456  }
   0x9   : > { %s872_s30 = smov (!%p199_p3), 120   ;;  %s873_s5 = smov (!%p199_p3), 116   ;;  %781 = vmatprep.mubr.msk.bf16.mxu0 (!%p199_p3), %vm586_vm6, %v842_v38  ;;  %v485_v40 = vld [vmem:[%s1071_s3 + $0x8] sm:$0xf] (!%p199_p3) }
   0xa   : > { %s874_s6 = smov (!%p199_p3), 115   ;;  %s875_s7 = smov (!%p199_p3), 114  }
   0xe   : > { %s1080_s15 = smov (!%p240_p4, %s857_s15), 1 }
   0xf   : > { %s919_s19 = sshll.u32 %s1080_s15, 3 }
  0x10   : > { %s925_s22 = scalar_lea.vmem %s1068_s0, %s919_s19  ;;  %s934_s25 = scalar_lea.vmem %s1069_s1, %s919_s19 }
  0x11   : > { %v299_v0 = vld [vmem:[%s925_s22] sm:$0xf]  ;;  %v268_v2 = vld [vmem:[%s925_s22 + $0x4] sm:$0x3] }
  0x12   : > { %v267_v1 = vld [vmem:[%s925_s22] sm:$0xf]  ;;  %315 = vrot.lane.b32.xlu0 %v299_v0, %s868_s26  ;;  %272 = vst.msk [vmem:[#allocation2 + $0x4] sm:$0x3] %vm271_vm0, %v268_v2  ;;  %v303_v5 = vrot.slane %v299_v0, 6  ;;  %v280_v12 = vrot.slane %v268_v2, 6 }
  0x13   : > { %291 = vrot.lane.b32.xlu1 %v267_v1, %s869_s27  ;;  %270 = vst.msk [vmem:[#allocation2] sm:$0xf] %vm269_vm1, %v267_v1  ;;  %v278_v4 = vrot.slane %v267_v1, 6  ;;  %v300_v6 = vld [vmem:[%s925_s22 + $0x4] sm:$0x3] }
  0x14   : > { %v364_v7 = vld [vmem:[%s934_s25 + $0x4] sm:$0x3]  ;;  %v363_v8 = vld [vmem:[%s934_s25] sm:$0xf]  ;;  %v304_v11 = vrot.slane %v303_v5, 4  ;;  %v305_v14 = vrot.slane %v300_v6, 6 }
  0x15   : > { %v369_v9 = vrot.slane %v364_v7, 6  ;;  %v367_v10 = vrot.slane %v363_v8, 6  ;;  %v279_v13 = vrot.slane %v278_v4, 4  ;;  %v331_v20 = vld [vmem:[%s925_s22] sm:$0xf] }
  0x16   : > { %282 = vrot.lane.b32.xlu0 %v278_v4, %s870_s28  ;;  %v306_v18 = vsel %vm948_vm5, %v304_v11, %v305_v14  ;;  %v343_v21 = vrot.slane %v331_v20, 6  ;;  %v332_v22 = vld [vmem:[%s925_s22 + $0x4] sm:$0x3]  ;;  %v391_v26 = vld [vmem:[%s934_s25] sm:$0xf]  ;;  %s265_s22 = scalar_lea.vmem %s1072_s4, %s919_s19 }
  0x17   : > { %293 = vrot.lane.b32.xlu1 %v268_v2, %s869_s27  ;;  %373 = vst.msk [vmem:[#allocation2 + $0x34] sm:$0xc] %vm288_vm4, %v367_v10  ;;  %v368_v16 = vrot.slane %v367_v10, 4  ;;  %v281_v19 = vsel %vm948_vm5, %v279_v13, %v280_v12  ;;  %v345_v23 = vrot.slane %v332_v22, 6  ;;  %v403_v27 = vrot.slane %v391_v26, 6 }
  0x18   : > { %v344_v24 = vrot.slane %v343_v21, 4  ;;  %v392_v28 = vld [vmem:[%s934_s25 + $0x4] sm:$0x3]  ;;  %v423_v31 = vld [vmem:[%s934_s25] sm:$0xf] }
  0x19   : > { %v370_v17 = vsel %vm948_vm5, %v368_v16, %v369_v9  ;;  %v405_v29 = vrot.slane %v392_v28, 6  ;;  %v404_v30 = vrot.slane %v403_v27, 4  ;;  %v427_v33 = vrot.slane %v423_v31, 6  ;;  %v424_v34 = vld [vmem:[%s934_s25 + $0x4] sm:$0x3] }
  0x1a   : > { %307 = vrot.lane.b32.xlu0 %v303_v5, %s871_s29  ;;  %374 = vst.msk [vmem:[#allocation2 + $0x38] sm:$0xf] %vm269_vm1, %v370_v17  ;;  %v346_v25 = vsel %vm948_vm5, %v344_v24, %v345_v23  ;;  %v429_v36 = vrot.slane %v424_v34, 6 }
  0x1b   : > { %317 = vrot.lane.b32.xlu1 %v300_v6, %s868_s26  ;;  %v406_v32 = vsel %vm948_vm5, %v404_v30, %v405_v29  ;;  %v428_v35 = vrot.slane %v427_v33, 4 }
  0x1d   : > { %v430_v37 = vsel %vm948_vm5, %v428_v35, %v429_v36 }
  0x1e   : > { %284 = vrot.lane.b32.xlu0 %v281_v19, %s870_s28 }
  0x1f   : > { %309 = vrot.lane.b32.xlu1 %v306_v18, %s871_s29 }
  0x22   : > { %323 = vrot.lane.b32.xlu0 %v303_v5, %s872_s30 }
  0x23   : > { %325 = vrot.lane.b32.xlu1 %v306_v18, %s872_s30 }
  0x26   : > { %335 = vrot.lane.b32.xlu0 %v331_v20, %s873_s5 }
  0x27   : > { %337 = vrot.lane.b32.xlu1 %v332_v22, %s873_s5 }
  0x2a   : > { %347 = vrot.lane.b32.xlu0 %v343_v21, %s874_s6 }
  0x2b   : > { %349 = vrot.lane.b32.xlu1 %v346_v25, %s874_s6  ;;  %v840_v25 = vld [vmem:[%s1070_s2] ss:$8 sps:$4 sm:$0x3f]  }
  0x2e   : > { %355 = vrot.lane.b32.xlu0 %v331_v20, %s875_s7 }
  0x2f   : > { %357 = vrot.lane.b32.xlu1 %v332_v22, %s875_s7 }
  0x32   : > { %375 = vrot.lane.b32.xlu0 %v363_v8, %s870_s28 }
  0x33   : > { %377 = vrot.lane.b32.xlu1 %v364_v7, %s870_s28 }
  0x36   : > { %383 = vrot.lane.b32.xlu0 %v367_v10, %s869_s27 }
  0x37   : > { %385 = vrot.lane.b32.xlu1 %v370_v17, %s869_s27 }
  0x3a   : > { %395 = vrot.lane.b32.xlu0 %v391_v26, %s871_s29 }
  0x3b   : > { %397 = vrot.lane.b32.xlu1 %v392_v28, %s871_s29 }
  0x3e   : > { %407 = vrot.lane.b32.xlu0 %v403_v27, %s868_s26 }
  0x3f   : > { %409 = vrot.lane.b32.xlu1 %v406_v32, %s868_s26 }
  0x42   : > { %415 = vrot.lane.b32.xlu0 %v391_v26, %s872_s30 }
  0x43   : > { %417 = vrot.lane.b32.xlu1 %v392_v28, %s872_s30 }
  0x46   : > { %431 = vrot.lane.b32.xlu0 %v427_v33, %s873_s5 }
  0x47   : > { %433 = vrot.lane.b32.xlu1 %v430_v37, %s873_s5 }
  0x4a   : > { %439 = vrot.lane.b32.xlu0 %v423_v31, %s874_s6 }
  0x4b   : > { %441 = vrot.lane.b32.xlu1 %v424_v34, %s874_s6 }
  0x4e   : > { %447 = vrot.lane.b32.xlu0 %v427_v33, %s875_s7 }
  0x4f   : > { %449 = vrot.lane.b32.xlu1 %v430_v37, %s875_s7 }
  0x52   : > { %488 = vperm.xlu0 %824, %v484_v39  }
  0x53   : > { %493 = vperm.xlu1 %825, %v485_v40  }
  0x84   : > { %v316_v41 = vpop.permute.xlu0 %315 }
  0x85   : > { %v292_v42 = vpop.permute.xlu1 %291  ;;  %321 = vst.msk [vmem:[#allocation2 + $0x18] sm:$0xf] %vm269_vm1, %v316_v41 }
  0x86   : > { %297 = vst.msk [vmem:[#allocation2 + $0xc] sm:$0xf] %vm269_vm1, %v292_v42 }
  0x88   : > { %v283_v44 = vpop.permute.xlu0 %282 }
  0x89   : > { %v294_v43 = vpop.permute.xlu1 %293  ;;  %289 = vst.msk [vmem:[#allocation2 + $0x4] sm:$0xc] %vm288_vm4, %v283_v44 }
  0x8a   : > { %298 = vst.msk [vmem:[#allocation2 + $0x10] sm:$0x3] %vm271_vm0, %v294_v43 }
  0x8c   : > { %v308_v46 = vpop.permute.xlu0 %307 }
  0x8d   : > { %v318_v45 = vpop.permute.xlu1 %317  ;;  %313 = vst.msk [vmem:[#allocation2 + $0x10] sm:$0xc] %vm288_vm4, %v308_v46 }
  0x8e   : > { %322 = vst.msk [vmem:[#allocation2 + $0x1c] sm:$0x3] %vm271_vm0, %v318_v45 }
  0x90   : > { %v285_v48 = vpop.permute.xlu0 %284  ;;  %v826_v49 = vld [vmem:[#allocation2] sm:$0xff]  }
  0x91   : > { %v310_v47 = vpop.permute.xlu1 %309  ;;  %290 = vst.msk [vmem:[#allocation2 + $0x8] sm:$0xf] %vm269_vm1, %v285_v48  ;;  %595 = vmatpush1.bf16.msra.mxu0 %v826_v49 }
  0x92   : > { %314 = vst.msk [vmem:[#allocation2 + $0x14] sm:$0xf] %vm269_vm1, %v310_v47  ;;  %596 = vmatprep.subr.bf16.mxu0 %v867_v3 }
  0x94   : > { %v324_v51 = vpop.permute.xlu0 %323 }
  0x95   : > { %v326_v50 = vpop.permute.xlu1 %325  ;;  %329 = vst.msk [vmem:[#allocation2 + $0x1c] sm:$0xc] %vm288_vm4, %v324_v51 }
  0x96   : > { %330 = vst.msk [vmem:[#allocation2 + $0x20] sm:$0xf] %vm269_vm1, %v326_v50 }
  0x98   : > { %v336_v53 = vpop.permute.xlu0 %335  ;;  %v827_v54 = vld [vmem:[#allocation2 + $0x8] sm:$0xff]  }
  0x99   : > { %v338_v52 = vpop.permute.xlu1 %337  ;;  %341 = vst.msk [vmem:[#allocation2 + $0x24] sm:$0xf] %vm269_vm1, %v336_v53  ;;  %597 = vmatpush1.bf16.msra.mxu0 %v827_v54  ;;  %v828_v57 = vld [vmem:[#allocation2 + $0x10] sm:$0xff]  }
  0x9a   : > { %342 = vst.msk [vmem:[#allocation2 + $0x28] sm:$0x3] %vm271_vm0, %v338_v52  ;;  %598 = vmatprep.subr.bf16.mxu0 %v867_v3 }
  0x9c   : > { %v348_v56 = vpop.permute.xlu0 %347  ;;  %v829_v60 = vld [vmem:[#allocation2 + $0x18] sm:$0xff]  }
  0x9d   : > { %v350_v55 = vpop.permute.xlu1 %349  ;;  %353 = vst.msk [vmem:[#allocation2 + $0x28] sm:$0xc] %vm288_vm4, %v348_v56  ;;  %599 = vmatpush1.bf16.msra.mxu0 %v828_v57 }
  0x9e   : > { %354 = vst.msk [vmem:[#allocation2 + $0x2c] sm:$0xf] %vm269_vm1, %v350_v55  ;;  %600 = vmatprep.subr.bf16.mxu0 %v867_v3 }
  0xa0   : > { %v356_v59 = vpop.permute.xlu0 %355  ;;  %v830_v63 = vld [vmem:[#allocation2 + $0x20] sm:$0xff]  }
  0xa1   : > { %v358_v58 = vpop.permute.xlu1 %357  ;;  %361 = vst.msk [vmem:[#allocation2 + $0x30] sm:$0xf] %vm269_vm1, %v356_v59  ;;  %601 = vmatpush1.bf16.msra.mxu0 %v829_v60 }
  0xa2   : > { %362 = vst.msk [vmem:[#allocation2 + $0x34] sm:$0x3] %vm271_vm0, %v358_v58  ;;  %602 = vmatprep.subr.bf16.mxu0 %v867_v3 }
  0xa4   : > { %v376_v62 = vpop.permute.xlu0 %375 }
  0xa5   : > { %v378_v61 = vpop.permute.xlu1 %377  ;;  %381 = vst.msk [vmem:[#allocation2 + $0x3c] sm:$0xf] %vm269_vm1, %v376_v62  ;;  %603 = vmatpush1.bf16.msra.mxu0 %v830_v63  ;;  %v831_v2 = vld [vmem:[#allocation2 + $0x28] sm:$0xff]  }
  0xa6   : > { %382 = vst.msk [vmem:[#allocation2 + $0x40] sm:$0x3] %vm271_vm0, %v378_v61  ;;  %604 = vmatprep.subr.bf16.mxu0 %v867_v3 }
  0xa8   : > { %v384_v1 = vpop.permute.xlu0 %383 }
  0xa9   : > { %v386_v0 = vpop.permute.xlu1 %385  ;;  %389 = vst.msk [vmem:[#allocation2 + $0x40] sm:$0xc] %vm288_vm4, %v384_v1  ;;  %605 = vmatpush1.bf16.msra.mxu0 %v831_v2  ;;  %v832_v6 = vld [vmem:[#allocation2 + $0x30] sm:$0xff]  }
  0xaa   : > { %390 = vst.msk [vmem:[#allocation2 + $0x44] sm:$0xf] %vm269_vm1, %v386_v0  ;;  %606 = vmatprep.subr.bf16.mxu0 %v867_v3 }
  0xac   : > { %v396_v5 = vpop.permute.xlu0 %395  ;;  %v833_v9 = vld [vmem:[#allocation2 + $0x38] sm:$0xff]  }
  0xad   : > { %v398_v4 = vpop.permute.xlu1 %397  ;;  %401 = vst.msk [vmem:[#allocation2 + $0x48] sm:$0xf] %vm269_vm1, %v396_v5  ;;  %607 = vmatpush1.bf16.msra.mxu0 %v832_v6 }
  0xae   : > { %402 = vst.msk [vmem:[#allocation2 + $0x4c] sm:$0x3] %vm271_vm0, %v398_v4  ;;  %608 = vmatprep.subr.bf16.mxu0 %v867_v3 }
  0xb0   : > { %v408_v8 = vpop.permute.xlu0 %407 }
  0xb1   : > { %v410_v7 = vpop.permute.xlu1 %409  ;;  %413 = vst.msk [vmem:[#allocation2 + $0x4c] sm:$0xc] %vm288_vm4, %v408_v8  ;;  %609 = vmatpush1.bf16.msra.mxu0 %v833_v9  ;;  %v834_v12 = vld [vmem:[#allocation2 + $0x40] sm:$0xff]  }
  0xb2   : > { %414 = vst.msk [vmem:[#allocation2 + $0x50] sm:$0xf] %vm269_vm1, %v410_v7  ;;  %610 = vmatprep.subr.bf16.mxu0 %v867_v3 }
  0xb4   : > { %v416_v11 = vpop.permute.xlu0 %415 }
  0xb5   : > { %v418_v10 = vpop.permute.xlu1 %417  ;;  %421 = vst.msk [vmem:[#allocation2 + $0x54] sm:$0xf] %vm269_vm1, %v416_v11  ;;  %611 = vmatpush1.bf16.msra.mxu0 %v834_v12 }
  0xb6   : > { %422 = vst.msk [vmem:[#allocation2 + $0x58] sm:$0x3] %vm271_vm0, %v418_v10  ;;  %612 = vmatprep.subr.bf16.mxu0 %v867_v3 }
  0xb8   : > { %v432_v14 = vpop.permute.xlu0 %431  ;;  %v835_v15 = vld [vmem:[#allocation2 + $0x48] sm:$0xff]  }
  0xb9   : > { %v434_v13 = vpop.permute.xlu1 %433  ;;  %437 = vst.msk [vmem:[#allocation2 + $0x58] sm:$0xc] %vm288_vm4, %v432_v14  ;;  %613 = vmatpush1.bf16.msra.mxu0 %v835_v15 }
  0xba   : > { %438 = vst.msk [vmem:[#allocation2 + $0x5c] sm:$0xf] %vm269_vm1, %v434_v13  ;;  %614 = vmatprep.subr.bf16.mxu0 %v867_v3 }
  0xbc   : > { %v440_v16 = vpop.permute.xlu0 %439  ;;  %v836_v18 = vld [vmem:[#allocation2 + $0x50] sm:$0xff]  }
  0xbd   : > { %v442_v17 = vpop.permute.xlu1 %441  ;;  %445 = vst.msk [vmem:[#allocation2 + $0x60] sm:$0xf] %vm269_vm1, %v440_v16  ;;  %615 = vmatpush1.bf16.msra.mxu0 %v836_v18 }
  0xbe   : > { %446 = vst.msk [vmem:[#allocation2 + $0x64] sm:$0x3] %vm271_vm0, %v442_v17  ;;  %616 = vmatprep.subr.bf16.mxu0 %v867_v3 }
  0xc0   : > { %v448_v19 = vpop.permute.xlu0 %447 }
  0xc1   : > { %v450_v20 = vpop.permute.xlu1 %449  ;;  %v837_v21 = vld [vmem:[#allocation2 + $0x58] sm:$0xff]   ;;  %453 = vst.msk [vmem:[#allocation2 + $0x64] sm:$0xc] %vm288_vm4, %v448_v19 }
  0xc2   : > { %454 = vst.msk [vmem:[#allocation2 + $0x68] sm:$0xf] %vm269_vm1, %v450_v20  ;;  %617 = vmatpush1.bf16.msra.mxu0 %v837_v21 }
  0xc3   : > { %618 = vmatprep.subr.bf16.mxu0 %v867_v3 }
  0xc8   : > { %v838_v22 = vld [vmem:[#allocation2 + $0x60] sm:$0xff]  }
  0xc9   : > { %v839_v23 = vld [vmem:[#allocation2 + $0x68] ss:$0 sps:$4 sm:$0xff]   ;;  %619 = vmatpush1.bf16.msra.mxu0 %v838_v22 }
  0xca   : > { %620 = vmatprep.subr.bf16.mxu0 %v867_v3  ;;  %v592_v24 = vsel %vm590_vm7, %v839_v23, 0 }
  0xcd   : > { %621 = vmatpush1.bf16.msra.mxu0 %v592_v24 }
  0xd0   : > { %627 = vmatmul.mubr.bf16.vlgmr.msra.gmra.mrb[0].mxu0 %v840_v25 }
  0xd1   : > { %v489_v26 = vpop.permute.xlu0 %488 }
  0xd2   : > { %v494_v28 = vpop.permute.xlu1 %493 }
 0x1a3   : > { %v628_v27 = vpop.f32.mrb[0].mxu0 }
 0x1a4   : > { %v629_v29 = vadd.f32 %v628_v27, %v489_v26  ;;  %v630_v30 = vpop.f32.mrb[1].mxu0 }
 0x1a5   : > { %v631_v31 = vpop.f32.mrb[2].mxu0 }
 0x1a6   : > { %v635_v32 = vmax.f32 %v629_v29, 0.0  ;;  %v632_v33 = vadd.f32 %v631_v31, %v494_v28  ;;  %v633_v34 = vpop.f32.mrb[3].mxu0 }
 0x1a8   : > { %v789_v3 = vpack.c.bf16 %v635_v32, %v635_v32  ;;  %v636_v35 = vmax.f32 %v632_v33, 0.0 }
 0x1aa   : > { %645 = vst.msk [vmem:[%s265_s22] sm:$0xf] %vm269_vm1, %v789_v3  ;;  %v790_v36 = vpack.c.bf16 %v636_v35, %v636_v35 }
 0x1ac   : > { %646 = vst.msk [vmem:[%s265_s22 + $0x4] sm:$0x3] %vm271_vm0, %v790_v36 }
 0x1ad PF: > { %s14_s17 = sadd.s32 1, %s865_s17   ;;  %s1075_s15 = smov %s861_s16 }
 0x1ae   : > { %p11_p5 = scmp.ge.s32.totalorder %s14_s17, 4   ;;  %s1076_s16 = smov %s1078_s18 }
 0x1b0   :  { %13 = sbr.rel (!%p11_p5) target bundleno = 2 (0x2), region = 69 }

// kernel: rsu4_forward.14
= control target key start
LH: loop header
LB: loop body
LE: loop exit
PB: predicated region body
PF: predicated region fallthrough
CT: control target
= control target key end

     0   :  { %s901_s15 = smov 0   ;;  %s903_s16 = smov 0   ;;  %s1068_s0 = inlined_call_operand.vmem [shape: bf16[2,1,12,102], index: 0, kind: input, shape index: {}]   ;;  %s1069_s1 = inlined_call_operand.vmem [shape: bf16[2,1,12,102], index: 1, kind: input, shape index: {}]   ;;  %s1070_s2 = inlined_call_operand.vmem [shape: bf16[12,216], index: 2, kind: input, shape index: {}]   ;;  %s1071_s3 = inlined_call_operand.vmem [shape: f32[12,1], index: 3, kind: input, shape index: {}]   ;;  %s1072_s4 = inlined_call_operand.vmem [shape: bf16[2,12,80], index: 4, kind: output, shape index: {}]  }
   0x1   :  { %s905_s17 = smov 0  }
   0x2 LB: > { %s26_s18 = sadd.s32 1, %s861_s16  ;;  %p758_p0 = scmp.ge.s32.totalorder %s865_s17, 1  ;;  %s865_s17 = sphi %s905_s17, %s14_s17   ;;  %s861_s16 = sphi %s903_s16, %s1076_s16   ;;  %s857_s15 = sphi %s901_s15, %s1075_s15  }
   0x3   : > { %p28_p1 = scmp.ge.s32.totalorder %s26_s18, 2  ;;  %p198_p2 = scmp.lt.s32.totalorder %s865_s17, 3 }
   0x5   : > { %s1078_s18 = smov (%p28_p1, %s26_s18), 0  ;;  %p199_p3 = pnand %p758_p0, %p198_p2 }
   0x6   : > { %p240_p4 = scmp.lt.s32.totalorder (!%p199_p3), %s857_s15, 1  ;;  %vm271_vm0 = vcmask (!%p199_p3), 648192   ;;  %vm269_vm1 = vcmask (!%p199_p3), 650240   ;;  %v867_v3 = vmov (!%p199_p3), 0   ;;  %s868_s26 = smov (!%p199_p3), 117   ;;  %vm275_vm2 = vcmask (!%p199_p3), 1041408  }
   0x7   : > { %202 = sbr.rel (%p199_p3) target bundleno = 429 (0x1ad), region = 36  ;;  %594 = vmatprep.subr.bf16.mxu0 (!%p199_p3), %v867_v3  ;;  %824 = vset.pattern.permute.xlu0 (!%p199_p3), %v867_v3  ;;  %s869_s27 = smov (!%p199_p3), 126   ;;  %vm276_vm3 = vcmask (!%p199_p3), 1045508   ;;  %vm288_vm4 = vcmask (!%p199_p3), 650242   ;;  %vm586_vm6 = vcmask (!%p199_p3), 719872   ;;  %v484_v39 = vld [vmem:[%s1071_s3] sm:$0xff] (!%p199_p3) }
   0x8   : > { %825 = vset.pattern.permute.xlu1 (!%p199_p3), %v867_v3  ;;  %s870_s28 = smov (!%p199_p3), 127   ;;  %vm948_vm5 = vmor (!%p199_p3), %vm275_vm2, %vm276_vm3  ;;  %s871_s29 = smov (!%p199_p3), 118   ;;  %v842_v38 = vld [vmem:[%s1070_s2 + $0x4] ss:$8 sps:$4 sm:$0x3f] (!%p199_p3)   ;;  %vm590_vm7 = vcmask (!%p199_p3), 1043456  }
   0x9   : > { %s872_s30 = smov (!%p199_p3), 116   ;;  %s873_s5 = smov (!%p199_p3), 108   ;;  %781 = vmatprep.mubr.msk.bf16.mxu0 (!%p199_p3), %vm586_vm6, %v842_v38  ;;  %v485_v40 = vld [vmem:[%s1071_s3 + $0x8] sm:$0xf] (!%p199_p3) }
   0xa   : > { %s874_s6 = smov (!%p199_p3), 107   ;;  %s875_s7 = smov (!%p199_p3), 106  }
   0xe   : > { %s1080_s15 = smov (!%p240_p4, %s857_s15), 1 }
   0xf   : > { %s919_s19 = sshll.u32 %s1080_s15, 3 }
  0x10   : > { %s925_s22 = scalar_lea.vmem %s1068_s0, %s919_s19  ;;  %s934_s25 = scalar_lea.vmem %s1069_s1, %s919_s19 }
  0x11   : > { %v299_v0 = vld [vmem:[%s925_s22] sm:$0xf]  ;;  %v268_v2 = vld [vmem:[%s925_s22 + $0x4] sm:$0x3] }
  0x12   : > { %v267_v1 = vld [vmem:[%s925_s22] sm:$0xf]  ;;  %315 = vrot.lane.b32.xlu0 %v299_v0, %s868_s26  ;;  %272 = vst.msk [vmem:[#allocation2 + $0x4] sm:$0x3] %vm271_vm0, %v268_v2  ;;  %v303_v5 = vrot.slane %v299_v0, 6  ;;  %v280_v12 = vrot.slane %v268_v2, 6 }
  0x13   : > { %291 = vrot.lane.b32.xlu1 %v267_v1, %s869_s27  ;;  %270 = vst.msk [vmem:[#allocation2] sm:$0xf] %vm269_vm1, %v267_v1  ;;  %v278_v4 = vrot.slane %v267_v1, 6  ;;  %v300_v6 = vld [vmem:[%s925_s22 + $0x4] sm:$0x3] }
  0x14   : > { %v364_v7 = vld [vmem:[%s934_s25 + $0x4] sm:$0x3]  ;;  %v363_v8 = vld [vmem:[%s934_s25] sm:$0xf]  ;;  %v304_v11 = vrot.slane %v303_v5, 4  ;;  %v305_v14 = vrot.slane %v300_v6, 6 }
  0x15   : > { %v369_v9 = vrot.slane %v364_v7, 6  ;;  %v367_v10 = vrot.slane %v363_v8, 6  ;;  %v279_v13 = vrot.slane %v278_v4, 4  ;;  %v331_v20 = vld [vmem:[%s925_s22] sm:$0xf] }
  0x16   : > { %282 = vrot.lane.b32.xlu0 %v278_v4, %s870_s28  ;;  %v306_v18 = vsel %vm948_vm5, %v304_v11, %v305_v14  ;;  %v343_v21 = vrot.slane %v331_v20, 6  ;;  %v332_v22 = vld [vmem:[%s925_s22 + $0x4] sm:$0x3]  ;;  %v391_v26 = vld [vmem:[%s934_s25] sm:$0xf]  ;;  %s265_s22 = scalar_lea.vmem %s1072_s4, %s919_s19 }
  0x17   : > { %293 = vrot.lane.b32.xlu1 %v268_v2, %s869_s27  ;;  %373 = vst.msk [vmem:[#allocation2 + $0x34] sm:$0xc] %vm288_vm4, %v367_v10  ;;  %v368_v16 = vrot.slane %v367_v10, 4  ;;  %v281_v19 = vsel %vm948_vm5, %v279_v13, %v280_v12  ;;  %v345_v23 = vrot.slane %v332_v22, 6  ;;  %v403_v27 = vrot.slane %v391_v26, 6 }
  0x18   : > { %v344_v24 = vrot.slane %v343_v21, 4  ;;  %v392_v28 = vld [vmem:[%s934_s25 + $0x4] sm:$0x3]  ;;  %v423_v31 = vld [vmem:[%s934_s25] sm:$0xf] }
  0x19   : > { %v370_v17 = vsel %vm948_vm5, %v368_v16, %v369_v9  ;;  %v405_v29 = vrot.slane %v392_v28, 6  ;;  %v404_v30 = vrot.slane %v403_v27, 4  ;;  %v427_v33 = vrot.slane %v423_v31, 6  ;;  %v424_v34 = vld [vmem:[%s934_s25 + $0x4] sm:$0x3] }
  0x1a   : > { %307 = vrot.lane.b32.xlu0 %v303_v5, %s871_s29  ;;  %374 = vst.msk [vmem:[#allocation2 + $0x38] sm:$0xf] %vm269_vm1, %v370_v17  ;;  %v346_v25 = vsel %vm948_vm5, %v344_v24, %v345_v23  ;;  %v429_v36 = vrot.slane %v424_v34, 6 }
  0x1b   : > { %317 = vrot.lane.b32.xlu1 %v300_v6, %s868_s26  ;;  %v406_v32 = vsel %vm948_vm5, %v404_v30, %v405_v29  ;;  %v428_v35 = vrot.slane %v427_v33, 4 }
  0x1d   : > { %v430_v37 = vsel %vm948_vm5, %v428_v35, %v429_v36 }
  0x1e   : > { %284 = vrot.lane.b32.xlu0 %v281_v19, %s870_s28 }
  0x1f   : > { %309 = vrot.lane.b32.xlu1 %v306_v18, %s871_s29 }
  0x22   : > { %323 = vrot.lane.b32.xlu0 %v303_v5, %s872_s30 }
  0x23   : > { %325 = vrot.lane.b32.xlu1 %v306_v18, %s872_s30 }
  0x26   : > { %335 = vrot.lane.b32.xlu0 %v331_v20, %s873_s5 }
  0x27   : > { %337 = vrot.lane.b32.xlu1 %v332_v22, %s873_s5 }
  0x2a   : > { %347 = vrot.lane.b32.xlu0 %v343_v21, %s874_s6 }
  0x2b   : > { %349 = vrot.lane.b32.xlu1 %v346_v25, %s874_s6  ;;  %v840_v25 = vld [vmem:[%s1070_s2] ss:$8 sps:$4 sm:$0x3f]  }
  0x2e   : > { %355 = vrot.lane.b32.xlu0 %v331_v20, %s875_s7 }
  0x2f   : > { %357 = vrot.lane.b32.xlu1 %v332_v22, %s875_s7 }
  0x32   : > { %375 = vrot.lane.b32.xlu0 %v363_v8, %s870_s28 }
  0x33   : > { %377 = vrot.lane.b32.xlu1 %v364_v7, %s870_s28 }
  0x36   : > { %383 = vrot.lane.b32.xlu0 %v367_v10, %s869_s27 }
  0x37   : > { %385 = vrot.lane.b32.xlu1 %v370_v17, %s869_s27 }
  0x3a   : > { %395 = vrot.lane.b32.xlu0 %v391_v26, %s871_s29 }
  0x3b   : > { %397 = vrot.lane.b32.xlu1 %v392_v28, %s871_s29 }
  0x3e   : > { %407 = vrot.lane.b32.xlu0 %v403_v27, %s868_s26 }
  0x3f   : > { %409 = vrot.lane.b32.xlu1 %v406_v32, %s868_s26 }
  0x42   : > { %415 = vrot.lane.b32.xlu0 %v391_v26, %s872_s30 }
  0x43   : > { %417 = vrot.lane.b32.xlu1 %v392_v28, %s872_s30 }
  0x46   : > { %431 = vrot.lane.b32.xlu0 %v427_v33, %s873_s5 }
  0x47   : > { %433 = vrot.lane.b32.xlu1 %v430_v37, %s873_s5 }
  0x4a   : > { %439 = vrot.lane.b32.xlu0 %v423_v31, %s874_s6 }
  0x4b   : > { %441 = vrot.lane.b32.xlu1 %v424_v34, %s874_s6 }
  0x4e   : > { %447 = vrot.lane.b32.xlu0 %v427_v33, %s875_s7 }
  0x4f   : > { %449 = vrot.lane.b32.xlu1 %v430_v37, %s875_s7 }
  0x52   : > { %488 = vperm.xlu0 %824, %v484_v39  }
  0x53   : > { %493 = vperm.xlu1 %825, %v485_v40  }
  0x84   : > { %v316_v41 = vpop.permute.xlu0 %315 }
  0x85   : > { %v292_v42 = vpop.permute.xlu1 %291  ;;  %321 = vst.msk [vmem:[#allocation2 + $0x18] sm:$0xf] %vm269_vm1, %v316_v41 }
  0x86   : > { %297 = vst.msk [vmem:[#allocation2 + $0xc] sm:$0xf] %vm269_vm1, %v292_v42 }
  0x88   : > { %v283_v44 = vpop.permute.xlu0 %282 }
  0x89   : > { %v294_v43 = vpop.permute.xlu1 %293  ;;  %289 = vst.msk [vmem:[#allocation2 + $0x4] sm:$0xc] %vm288_vm4, %v283_v44 }
  0x8a   : > { %298 = vst.msk [vmem:[#allocation2 + $0x10] sm:$0x3] %vm271_vm0, %v294_v43 }
  0x8c   : > { %v308_v46 = vpop.permute.xlu0 %307 }
  0x8d   : > { %v318_v45 = vpop.permute.xlu1 %317  ;;  %313 = vst.msk [vmem:[#allocation2 + $0x10] sm:$0xc] %vm288_vm4, %v308_v46 }
  0x8e   : > { %322 = vst.msk [vmem:[#allocation2 + $0x1c] sm:$0x3] %vm271_vm0, %v318_v45 }
  0x90   : > { %v285_v48 = vpop.permute.xlu0 %284  ;;  %v826_v49 = vld [vmem:[#allocation2] sm:$0xff]  }
  0x91   : > { %v310_v47 = vpop.permute.xlu1 %309  ;;  %290 = vst.msk [vmem:[#allocation2 + $0x8] sm:$0xf] %vm269_vm1, %v285_v48  ;;  %595 = vmatpush1.bf16.msra.mxu0 %v826_v49 }
  0x92   : > { %314 = vst.msk [vmem:[#allocation2 + $0x14] sm:$0xf] %vm269_vm1, %v310_v47  ;;  %596 = vmatprep.subr.bf16.mxu0 %v867_v3 }
  0x94   : > { %v324_v51 = vpop.permute.xlu0 %323 }
  0x95   : > { %v326_v50 = vpop.permute.xlu1 %325  ;;  %329 = vst.msk [vmem:[#allocation2 + $0x1c] sm:$0xc] %vm288_vm4, %v324_v51 }
  0x96   : > { %330 = vst.msk [vmem:[#allocation2 + $0x20] sm:$0xf] %vm269_vm1, %v326_v50 }
  0x98   : > { %v336_v53 = vpop.permute.xlu0 %335  ;;  %v827_v54 = vld [vmem:[#allocation2 + $0x8] sm:$0xff]  }
  0x99   : > { %v338_v52 = vpop.permute.xlu1 %337  ;;  %341 = vst.msk [vmem:[#allocation2 + $0x24] sm:$0xf] %vm269_vm1, %v336_v53  ;;  %597 = vmatpush1.bf16.msra.mxu0 %v827_v54  ;;  %v828_v57 = vld [vmem:[#allocation2 + $0x10] sm:$0xff]  }
  0x9a   : > { %342 = vst.msk [vmem:[#allocation2 + $0x28] sm:$0x3] %vm271_vm0, %v338_v52  ;;  %598 = vmatprep.subr.bf16.mxu0 %v867_v3 }
  0x9c   : > { %v348_v56 = vpop.permute.xlu0 %347  ;;  %v829_v60 = vld [vmem:[#allocation2 + $0x18] sm:$0xff]  }
  0x9d   : > { %v350_v55 = vpop.permute.xlu1 %349  ;;  %353 = vst.msk [vmem:[#allocation2 + $0x28] sm:$0xc] %vm288_vm4, %v348_v56  ;;  %599 = vmatpush1.bf16.msra.mxu0 %v828_v57 }
  0x9e   : > { %354 = vst.msk [vmem:[#allocation2 + $0x2c] sm:$0xf] %vm269_vm1, %v350_v55  ;;  %600 = vmatprep.subr.bf16.mxu0 %v867_v3 }
  0xa0   : > { %v356_v59 = vpop.permute.xlu0 %355  ;;  %v830_v63 = vld [vmem:[#allocation2 + $0x20] sm:$0xff]  }
  0xa1   : > { %v358_v58 = vpop.permute.xlu1 %357  ;;  %361 = vst.msk [vmem:[#allocation2 + $0x30] sm:$0xf] %vm269_vm1, %v356_v59  ;;  %601 = vmatpush1.bf16.msra.mxu0 %v829_v60 }
  0xa2   : > { %362 = vst.msk [vmem:[#allocation2 + $0x34] sm:$0x3] %vm271_vm0, %v358_v58  ;;  %602 = vmatprep.subr.bf16.mxu0 %v867_v3 }
  0xa4   : > { %v376_v62 = vpop.permute.xlu0 %375 }
  0xa5   : > { %v378_v61 = vpop.permute.xlu1 %377  ;;  %381 = vst.msk [vmem:[#allocation2 + $0x3c] sm:$0xf] %vm269_vm1, %v376_v62  ;;  %603 = vmatpush1.bf16.msra.mxu0 %v830_v63  ;;  %v831_v2 = vld [vmem:[#allocation2 + $0x28] sm:$0xff]  }
  0xa6   : > { %382 = vst.msk [vmem:[#allocation2 + $0x40] sm:$0x3] %vm271_vm0, %v378_v61  ;;  %604 = vmatprep.subr.bf16.mxu0 %v867_v3 }
  0xa8   : > { %v384_v1 = vpop.permute.xlu0 %383 }
  0xa9   : > { %v386_v0 = vpop.permute.xlu1 %385  ;;  %389 = vst.msk [vmem:[#allocation2 + $0x40] sm:$0xc] %vm288_vm4, %v384_v1  ;;  %605 = vmatpush1.bf16.msra.mxu0 %v831_v2  ;;  %v832_v6 = vld [vmem:[#allocation2 + $0x30] sm:$0xff]  }
  0xaa   : > { %390 = vst.msk [vmem:[#allocation2 + $0x44] sm:$0xf] %vm269_vm1, %v386_v0  ;;  %606 = vmatprep.subr.bf16.mxu0 %v867_v3 }
  0xac   : > { %v396_v5 = vpop.permute.xlu0 %395  ;;  %v833_v9 = vld [vmem:[#allocation2 + $0x38] sm:$0xff]  }
  0xad   : > { %v398_v4 = vpop.permute.xlu1 %397  ;;  %401 = vst.msk [vmem:[#allocation2 + $0x48] sm:$0xf] %vm269_vm1, %v396_v5  ;;  %607 = vmatpush1.bf16.msra.mxu0 %v832_v6 }
  0xae   : > { %402 = vst.msk [vmem:[#allocation2 + $0x4c] sm:$0x3] %vm271_vm0, %v398_v4  ;;  %608 = vmatprep.subr.bf16.mxu0 %v867_v3 }
  0xb0   : > { %v408_v8 = vpop.permute.xlu0 %407 }
  0xb1   : > { %v410_v7 = vpop.permute.xlu1 %409  ;;  %413 = vst.msk [vmem:[#allocation2 + $0x4c] sm:$0xc] %vm288_vm4, %v408_v8  ;;  %609 = vmatpush1.bf16.msra.mxu0 %v833_v9  ;;  %v834_v12 = vld [vmem:[#allocation2 + $0x40] sm:$0xff]  }
  0xb2   : > { %414 = vst.msk [vmem:[#allocation2 + $0x50] sm:$0xf] %vm269_vm1, %v410_v7  ;;  %610 = vmatprep.subr.bf16.mxu0 %v867_v3 }
  0xb4   : > { %v416_v11 = vpop.permute.xlu0 %415 }
  0xb5   : > { %v418_v10 = vpop.permute.xlu1 %417  ;;  %421 = vst.msk [vmem:[#allocation2 + $0x54] sm:$0xf] %vm269_vm1, %v416_v11  ;;  %611 = vmatpush1.bf16.msra.mxu0 %v834_v12 }
  0xb6   : > { %422 = vst.msk [vmem:[#allocation2 + $0x58] sm:$0x3] %vm271_vm0, %v418_v10  ;;  %612 = vmatprep.subr.bf16.mxu0 %v867_v3 }
  0xb8   : > { %v432_v14 = vpop.permute.xlu0 %431  ;;  %v835_v15 = vld [vmem:[#allocation2 + $0x48] sm:$0xff]  }
  0xb9   : > { %v434_v13 = vpop.permute.xlu1 %433  ;;  %437 = vst.msk [vmem:[#allocation2 + $0x58] sm:$0xc] %vm288_vm4, %v432_v14  ;;  %613 = vmatpush1.bf16.msra.mxu0 %v835_v15 }
  0xba   : > { %438 = vst.msk [vmem:[#allocation2 + $0x5c] sm:$0xf] %vm269_vm1, %v434_v13  ;;  %614 = vmatprep.subr.bf16.mxu0 %v867_v3 }
  0xbc   : > { %v440_v16 = vpop.permute.xlu0 %439  ;;  %v836_v18 = vld [vmem:[#allocation2 + $0x50] sm:$0xff]  }
  0xbd   : > { %v442_v17 = vpop.permute.xlu1 %441  ;;  %445 = vst.msk [vmem:[#allocation2 + $0x60] sm:$0xf] %vm269_vm1, %v440_v16  ;;  %615 = vmatpush1.bf16.msra.mxu0 %v836_v18 }
  0xbe   : > { %446 = vst.msk [vmem:[#allocation2 + $0x64] sm:$0x3] %vm271_vm0, %v442_v17  ;;  %616 = vmatprep.subr.bf16.mxu0 %v867_v3 }
  0xc0   : > { %v448_v19 = vpop.permute.xlu0 %447 }
  0xc1   : > { %v450_v20 = vpop.permute.xlu1 %449  ;;  %v837_v21 = vld [vmem:[#allocation2 + $0x58] sm:$0xff]   ;;  %453 = vst.msk [vmem:[#allocation2 + $0x64] sm:$0xc] %vm288_vm4, %v448_v19 }
  0xc2   : > { %454 = vst.msk [vmem:[#allocation2 + $0x68] sm:$0xf] %vm269_vm1, %v450_v20  ;;  %617 = vmatpush1.bf16.msra.mxu0 %v837_v21 }
  0xc3   : > { %618 = vmatprep.subr.bf16.mxu0 %v867_v3 }
  0xc8   : > { %v838_v22 = vld [vmem:[#allocation2 + $0x60] sm:$0xff]  }
  0xc9   : > { %v839_v23 = vld [vmem:[#allocation2 + $0x68] ss:$0 sps:$4 sm:$0xff]   ;;  %619 = vmatpush1.bf16.msra.mxu0 %v838_v22 }
  0xca   : > { %620 = vmatprep.subr.bf16.mxu0 %v867_v3  ;;  %v592_v24 = vsel %vm590_vm7, %v839_v23, 0 }
  0xcd   : > { %621 = vmatpush1.bf16.msra.mxu0 %v592_v24 }
  0xd0   : > { %627 = vmatmul.mubr.bf16.vlgmr.msra.gmra.mrb[0].mxu0 %v840_v25 }
  0xd1   : > { %v489_v26 = vpop.permute.xlu0 %488 }
  0xd2   : > { %v494_v28 = vpop.permute.xlu1 %493 }
 0x1a3   : > { %v628_v27 = vpop.f32.mrb[0].mxu0 }
 0x1a4   : > { %v629_v29 = vadd.f32 %v628_v27, %v489_v26  ;;  %v630_v30 = vpop.f32.mrb[1].mxu0 }
 0x1a5   : > { %v631_v31 = vpop.f32.mrb[2].mxu0 }
 0x1a6   : > { %v635_v32 = vmax.f32 %v629_v29, 0.0  ;;  %v632_v33 = vadd.f32 %v631_v31, %v494_v28  ;;  %v633_v34 = vpop.f32.mrb[3].mxu0 }
 0x1a8   : > { %v789_v3 = vpack.c.bf16 %v635_v32, %v635_v32  ;;  %v636_v35 = vmax.f32 %v632_v33, 0.0 }
 0x1aa   : > { %645 = vst.msk [vmem:[%s265_s22] sm:$0xf] %vm269_vm1, %v789_v3  ;;  %v790_v36 = vpack.c.bf16 %v636_v35, %v636_v35 }
 0x1ac   : > { %646 = vst.msk [vmem:[%s265_s22 + $0x4] sm:$0x3] %vm271_vm0, %v790_v36 }
 0x1ad PF: > { %s14_s17 = sadd.s32 1, %s865_s17   ;;  %s1075_s15 = smov %s861_s16 }
 0x1ae   : > { %p11_p5 = scmp.ge.s32.totalorder %s14_s17, 4   ;;  %s1076_s16 = smov %s1078_s18 }
 0x1b0   :  { %13 = sbr.rel (!%p11_p5) target bundleno = 2 (0x2), region = 69 }

// kernel: rsu4_forward.15
= control target key start
LH: loop header
LB: loop body
LE: loop exit
PB: predicated region body
PF: predicated region fallthrough
CT: control target
= control target key end

     0   :  { %s1565_s18 = smov 0   ;;  %s1567_s19 = smov 0   ;;  %s1976_s0 = inlined_call_operand.vmem [shape: bf16[2,1,12,326], index: 0, kind: input, shape index: {}]   ;;  %s1977_s1 = inlined_call_operand.vmem [shape: bf16[2,1,12,326], index: 1, kind: input, shape index: {}]   ;;  %s1978_s2 = inlined_call_operand.vmem [shape: bf16[4,216], index: 2, kind: input, shape index: {}]   ;;  %s1979_s3 = inlined_call_operand.vmem [shape: f32[4,1], index: 3, kind: input, shape index: {}]   ;;  %s1980_s4 = inlined_call_operand.vmem [shape: bf16[2,4,288], index: 4, kind: input, shape index: {}]   ;;  %s1981_s5 = inlined_call_operand.vmem [shape: bf16[2,4,288], index: 5, kind: output, shape index: {}]  }
   0x1   :  { %s1569_s20 = smov 0  }
   0x2 LB: > { %s27_s21 = sadd.s32 1, %s1519_s19  ;;  %p1396_p0 = scmp.ge.s32.totalorder %s1523_s20, 1  ;;  %s1523_s20 = sphi %s1569_s20, %s15_s20   ;;  %s1519_s19 = sphi %s1567_s19, %s1985_s19   ;;  %s1515_s18 = sphi %s1565_s18, %s1984_s18  }
   0x3   : > { %p29_p1 = scmp.ge.s32.totalorder %s27_s21, 2  ;;  %p240_p2 = scmp.lt.s32.totalorder %s1523_s20, 3 }
   0x5   : > { %s1987_s21 = smov (%p29_p1, %s27_s21), 0  ;;  %p241_p3 = pnand %p1396_p0, %p240_p2 }
   0x6   : > { %p294_p4 = scmp.lt.s32.totalorder (!%p241_p3), %s1515_s18, 1  ;;  %vm338_vm0 = vcmask (!%p241_p3), 257024   ;;  %vm341_vm1 = vcmask (!%p241_p3), 254976   ;;  %vm347_vm2 = vcmask (!%p241_p3), 1041408   ;;  %vm348_vm3 = vcmask (!%p241_p3), 1045508   ;;  %s1525_s29 = smov (!%p241_p3), 126  }
   0x7   : > { %244 = sbr.rel (%p241_p3) target bundleno = 502 (0x1f6), region = 40  ;;  %vm1620_vm4 = vmor (!%p241_p3), %vm347_vm2, %vm348_vm3  ;;  %s1526_s30 = smov (!%p241_p3), 127   ;;  %vm381_vm5 = vcmask (!%p241_p3), 257026   ;;  %v1527_v50 = vmov (!%p241_p3), 0   ;;  %vm370_vm6 = vcmask (!%p241_p3), 1043456   ;;  %vm398_vm7 = vcmask (!%p241_p3), 1031168  }
   0x8   : > { %1182 = vmatprep.subr.bf16.mxu1 (!%p241_p3), %v1527_v50  ;;  %1486 = vset.pattern.permute.xlu0 (!%p241_p3), %v1527_v50  ;;  %s1528_s6 = smov (!%p241_p3), 110   ;;  %s1529_s7 = smov (!%p241_p3), 109   ;;  %vm372_vm8 = vcmask (!%p241_p3), 1039360   ;;  %vm1127_vm9 = vcmask (!%p241_p3), 719872   ;;  %vm439_vm10 = vcmask (!%p241_p3), 900096   ;;  %vm464_vm11 = vcmask (!%p241_p3), 891904  }
   0x9   : > { %s1530_s8 = smov (!%p241_p3), 108   ;;  %s1531_s9 = smov (!%p241_p3), 92   ;;  %vm489_vm12 = vcmask (!%p241_p3), 883712   ;;  %vm522_vm13 = vcmask (!%p241_p3), 752640   ;;  %vm555_vm14 = vcmask (!%p241_p3), 744448   ;;  %vm580_vm15 = vcmask (!%p241_p3), 736256  }
   0xa   : > { %s1532_s10 = smov (!%p241_p3), 91   ;;  %s1533_s11 = smov (!%p241_p3), 90   ;;  %vm1260_vm3 = vcmask (!%p241_p3), 259076  }
   0xe   : > { %s1989_s18 = smov (!%p294_p4, %s1515_s18), 1 }
   0xf   : > { %s1450_s22 = smul.u32 24, %s1989_s18 }
  0x10   : > { %s1451_s16 = smul.u32 6, %s1989_s18 }
  0x11   : > { %s1589_s25 = scalar_lea.vmem %s1976_s0, %s1450_s22  ;;  %s1594_s28 = scalar_lea.vmem %s1977_s1, %s1450_s22 }
  0x12   : > { %v334_v0 = vld [vmem:[%s1589_s25 + $0x8] sm:$0xf]  ;;  %v1598_v1 = vld [vmem:[%s1589_s25] sm:$0xff]  ;;  %v336_v2 = vld [vmem:[%s1589_s25 + $0x14] sm:$0x3]  ;;  %s320_s23 = scalar_lea.vmem %s1980_s4, %s1451_s16  ;;  %s330_s26 = scalar_lea.vmem %s1981_s5, %s1451_s16 }
  0x13   : > { %387 = vrot.lane.b32.xlu1 %v334_v0, %s1525_s29  ;;  %339 = vst.msk [vmem:[#allocation2 + $0x8] sm:$0xf] %vm338_vm0, %v334_v0  ;;  %385 = vrot.lane.b32.xlu0 %v1598_v1, %s1525_s29  ;;  %v1607_v3 = vrot.slane %v1598_v1, 6  ;;  %v335_v4 = vld [vmem:[%s1589_s25 + $0xc] sm:$0x33]  ;;  %v1611_v5 = vld [vmem:[%s1594_s28] sm:$0xff] }
  0x14   : > { %342 = vst.msk [vmem:[#allocation2 + $0x14] sm:$0x3] %vm341_vm1, %v336_v2  ;;  %v351_v6 = vrot.slane %v334_v0, 6  ;;  %340 = vst [vmem:[#allocation2 + $0xc] sm:$0x33] %v335_v4  ;;  %v353_v7 = vrot.slane %v335_v4, 6 }
  0x15   : > { %v1614_v8 = vrot.slane %v1611_v5, 6  ;;  %v1617_v9 = vrot.slane %v1607_v3, 4  ;;  %v411_v11 = vld [vmem:[%s1589_s25 + $0x8] sm:$0xf]  ;;  %v356_v14 = vrot.slane %v336_v2, 6 }
  0x16   : > { %v1630_v12 = vld [vmem:[%s1594_s28 + $0x8] sm:$0xf]  ;;  %v355_v15 = vrot.slane %v351_v6, 4  ;;  %v1640_v18 = vld [vmem:[%s1594_s28 + $0xc] sm:$0x33]  ;;  %v419_v19 = vrot.slane %v411_v11, 6 }
  0x17   : > { %612 = vst [vmem:[#allocation2 + $0x9c] sm:$0xcc] %v1614_v8  ;;  %391 = vrot.lane.b32.xlu1 %v336_v2, %s1525_s29  ;;  %358 = vrot.lane.b32.xlu0 %v1607_v3, %s1526_s30  ;;  %v602_v13 = vrot.slane %v1614_v8, 4  ;;  %v354_v16 = vsel %vm1620_vm4, %v1617_v9, %v353_v7  ;;  %v1637_v17 = vrot.slane %v1630_v12, 6  ;;  %v603_v20 = vrot.slane %v1640_v18, 6 }
  0x18   : > { %v1644_v21 = vld [vmem:[%s1594_s28 + $0x14] sm:$0x3]  ;;  %v1651_v24 = vld [vmem:[%s1594_s28 + $0x8] sm:$0xf]  ;;  %v1654_v25 = vld [vmem:[%s1594_s28 + $0xc] sm:$0x33]  ;;  %v357_v33 = vsel %vm1620_vm4, %v355_v15, %v356_v14 }
  0x19   : > { %613 = vst.msk [vmem:[#allocation2 + $0xa4] sm:$0xc] %vm381_vm5, %v1637_v17  ;;  %v606_v22 = vrot.slane %v1644_v21, 6  ;;  %v605_v23 = vrot.slane %v1637_v17, 4  ;;  %v412_v26 = vld [vmem:[%s1589_s25 + $0xc] sm:$0x33]  ;;  %v1662_v28 = vsel %vm1620_vm4, %v602_v13, %v603_v20 }
  0x1a   : > { %v413_v27 = vld [vmem:[%s1589_s25 + $0x14] sm:$0x3]  ;;  %v699_v29 = vrot.slane %v1654_v25, 6  ;;  %v697_v31 = vrot.slane %v1651_v24, 6  ;;  %v1670_v32 = vld [vmem:[%s1594_s28 + $0x8] sm:$0xf] }
  0x1b   : > { %360 = vrot.lane.b32.xlu0 %v351_v6, %s1526_s30  ;;  %362 = vrot.lane.b32.xlu1 %v354_v16, %s1526_s30  ;;  %v1666_v30 = vld [vmem:[%s1594_s28 + $0x14] sm:$0x3]  ;;  %v1676_v34 = vsel %vm1620_vm4, %v605_v23, %v606_v22  ;;  %v1680_v36 = vrot.slane %v1670_v32, 6  ;;  %v1683_v37 = vld [vmem:[%s1594_s28 + $0xc] sm:$0x33]  ;;  %v421_v46 = vrot.slane %v412_v26, 6 }
  0x1c   : > { %v702_v35 = vrot.slane %v1666_v30, 6  ;;  %v1686_v38 = vld [vmem:[%s1594_s28 + $0x14] sm:$0x3]  ;;  %615 = vst.msk [vmem:[#allocation2 + $0xb0] sm:$0xf] %vm338_vm0, %v1676_v34  ;;  %v701_v39 = vrot.slane %v697_v31, 4  ;;  %v1694_v40 = vsel %vm1620_vm4, %v602_v13, %v699_v29 }
  0x1d   : > { %v763_v41 = vrot.slane %v1683_v37, 6  ;;  %v766_v42 = vrot.slane %v1686_v38, 6  ;;  %v765_v43 = vrot.slane %v1680_v36, 4  ;;  %v423_v47 = vrot.slane %v419_v19, 4  ;;  %v502_v53 = vld [vmem:[%s1589_s25 + $0x8] sm:$0xf] }
  0x1e   : > { %v1703_v44 = vsel %vm1620_vm4, %v701_v39, %v702_v35  ;;  %v424_v48 = vrot.slane %v413_v27, 6  ;;  %v422_v51 = vsel %vm1620_vm4, %v1617_v9, %v421_v46  ;;  %v503_v54 = vld [vmem:[%s1589_s25 + $0xc] sm:$0x33]  ;;  %v504_v55 = vld [vmem:[%s1589_s25 + $0x14] sm:$0x3]  ;;  %v535_v56 = vrot.slane %v502_v53, 6 }
  0x1f   : > { %389 = vrot.lane.b32.xlu0 %v335_v4, %s1525_s29  ;;  %364 = vrot.lane.b32.xlu1 %v357_v33, %s1526_s30  ;;  %v1707_v45 = vsel %vm1620_vm4, %v602_v13, %v763_v41  ;;  %v1711_v49 = vsel %vm1620_vm4, %v765_v43, %v766_v42  ;;  %v537_v57 = vrot.slane %v503_v54, 6  ;;  %v540_v58 = vrot.slane %v504_v55, 6  ;;  %v895_v23 = vld [vmem:[%s1979_s3] sm:$0xf] }
  0x20   : > { %v425_v52 = vsel %vm1620_vm4, %v423_v47, %v424_v48  ;;  %v539_v59 = vrot.slane %v535_v56, 4 }
  0x21   : > { %v538_v60 = vsel %vm1620_vm4, %v1617_v9, %v537_v57 }
  0x22   : > { %v541_v61 = vsel %vm1620_vm4, %v539_v59, %v540_v58 }
  0x23   : > { %426 = vrot.lane.b32.xlu0 %v1607_v3, %s1528_s6  ;;  %428 = vrot.lane.b32.xlu1 %v419_v19, %s1528_s6 }
  0x27   : > { %430 = vrot.lane.b32.xlu0 %v422_v51, %s1528_s6  ;;  %432 = vrot.lane.b32.xlu1 %v425_v52, %s1528_s6 }
  0x2b   : > { %451 = vrot.lane.b32.xlu0 %v1598_v1, %s1529_s7  ;;  %453 = vrot.lane.b32.xlu1 %v411_v11, %s1529_s7 }
  0x2f   : > { %455 = vrot.lane.b32.xlu0 %v412_v26, %s1529_s7  ;;  %457 = vrot.lane.b32.xlu1 %v413_v27, %s1529_s7 }
  0x33   : > { %476 = vrot.lane.b32.xlu0 %v1607_v3, %s1530_s8  ;;  %478 = vrot.lane.b32.xlu1 %v419_v19, %s1530_s8 }
  0x37   : > { %480 = vrot.lane.b32.xlu0 %v422_v51, %s1530_s8  ;;  %482 = vrot.lane.b32.xlu1 %v425_v52, %s1530_s8 }
  0x3b   : > { %509 = vrot.lane.b32.xlu0 %v1598_v1, %s1531_s9  ;;  %511 = vrot.lane.b32.xlu1 %v502_v53, %s1531_s9 }
  0x3f   : > { %513 = vrot.lane.b32.xlu0 %v503_v54, %s1531_s9  ;;  %515 = vrot.lane.b32.xlu1 %v504_v55, %s1531_s9 }
  0x43   : > { %542 = vrot.lane.b32.xlu0 %v1607_v3, %s1532_s10  ;;  %544 = vrot.lane.b32.xlu1 %v535_v56, %s1532_s10 }
  0x47   : > { %546 = vrot.lane.b32.xlu0 %v538_v60, %s1532_s10  ;;  %548 = vrot.lane.b32.xlu1 %v541_v61, %s1532_s10 }
  0x4b   : > { %567 = vrot.lane.b32.xlu0 %v1598_v1, %s1533_s11  ;;  %569 = vrot.lane.b32.xlu1 %v502_v53, %s1533_s11 }
  0x4f   : > { %571 = vrot.lane.b32.xlu0 %v503_v54, %s1533_s11  ;;  %573 = vrot.lane.b32.xlu1 %v504_v55, %s1533_s11 }
  0x53   : > { %616 = vrot.lane.b32.xlu0 %v1611_v5, %s1526_s30  ;;  %618 = vrot.lane.b32.xlu1 %v1630_v12, %s1526_s30 }
  0x57   : > { %620 = vrot.lane.b32.xlu0 %v1640_v18, %s1526_s30  ;;  %622 = vrot.lane.b32.xlu1 %v1644_v21, %s1526_s30 }
  0x5b   : > { %640 = vrot.lane.b32.xlu0 %v1614_v8, %s1525_s29  ;;  %642 = vrot.lane.b32.xlu1 %v1637_v17, %s1525_s29 }
  0x5f   : > { %644 = vrot.lane.b32.xlu0 %v1662_v28, %s1525_s29  ;;  %646 = vrot.lane.b32.xlu1 %v1676_v34, %s1525_s29 }
  0x63   : > { %672 = vrot.lane.b32.xlu0 %v1611_v5, %s1528_s6  ;;  %674 = vrot.lane.b32.xlu1 %v1651_v24, %s1528_s6 }
  0x67   : > { %676 = vrot.lane.b32.xlu0 %v1654_v25, %s1528_s6  ;;  %678 = vrot.lane.b32.xlu1 %v1666_v30, %s1528_s6 }
  0x6b   : > { %704 = vrot.lane.b32.xlu0 %v1614_v8, %s1529_s7  ;;  %706 = vrot.lane.b32.xlu1 %v697_v31, %s1529_s7 }
  0x6f   : > { %708 = vrot.lane.b32.xlu0 %v1694_v40, %s1529_s7  ;;  %710 = vrot.lane.b32.xlu1 %v1703_v44, %s1529_s7 }
  0x73   : > { %728 = vrot.lane.b32.xlu0 %v1611_v5, %s1530_s8  ;;  %730 = vrot.lane.b32.xlu1 %v1651_v24, %s1530_s8 }
  0x77   : > { %732 = vrot.lane.b32.xlu0 %v1654_v25, %s1530_s8  ;;  %734 = vrot.lane.b32.xlu1 %v1666_v30, %s1530_s8 }
  0x7b   : > { %768 = vrot.lane.b32.xlu0 %v1614_v8, %s1531_s9  ;;  %770 = vrot.lane.b32.xlu1 %v1680_v36, %s1531_s9 }
  0x7f   : > { %772 = vrot.lane.b32.xlu0 %v1707_v45, %s1531_s9  ;;  %774 = vrot.lane.b32.xlu1 %v1711_v49, %s1531_s9 }
  0x83   : > { %792 = vrot.lane.b32.xlu0 %v1611_v5, %s1532_s10  ;;  %794 = vrot.lane.b32.xlu1 %v1670_v32, %s1532_s10 }
  0x85   : > { %v388_v62 = vpop.permute.xlu1 %387  ;;  %v386_v63 = vpop.permute.xlu0 %385 }
  0x86   : > { %v394_v0 = vrot.slane %v388_v62, 4  ;;  %407 = vst.msk [vmem:[#allocation2 + $0x2c] sm:$0xf] %vm338_vm0, %v388_v62  ;;  %v393_v2 = vrot.slane %v386_v63, 4 }
  0x87   : > { %796 = vrot.lane.b32.xlu0 %v1683_v37, %s1532_s10  ;;  %798 = vrot.lane.b32.xlu1 %v1686_v38, %s1532_s10 }
  0x88   : > { %v397_v3 = vsel %vm370_vm6, %v393_v2, %v394_v0 }
  0x89   : > { %v1818_v4 = vsel %vm398_vm7, %v386_v63, %v397_v3  ;;  %v392_v5 = vpop.permute.xlu1 %391  ;;  %v359_v6 = vpop.permute.xlu0 %358 }
  0x8a   : > { %409 = vst.msk [vmem:[#allocation2 + $0x38] sm:$0x3] %vm341_vm1, %v392_v5  ;;  %v366_v10 = vrot.slane %v359_v6, 4  ;;  %v396_v17 = vrot.slane %v392_v5, 4 }
  0x8b   : > { %816 = vrot.lane.b32.xlu0 %v1614_v8, %s1533_s11  ;;  %818 = vrot.lane.b32.xlu1 %v1680_v36, %s1533_s11  ;;  %v1833_v8 = vld.sshfl [vmem:[%s1978_s2] sm:$0x33 pattern:$0x76325410] }
  0x8c   : > { %v909_v13 = vcombine.high %v1833_v8, %v1833_v8 }
  0x8d   : > { %v361_v7 = vpop.permute.xlu0 %360  ;;  %v363_v9 = vpop.permute.xlu1 %362 }
  0x8e   : > { %v367_v11 = vrot.slane %v361_v7, 4  ;;  %382 = vst.msk [vmem:[#allocation2 + $0x14] sm:$0xc] %vm381_vm5, %v361_v7  ;;  %v368_v18 = vrot.slane %v363_v9, 4  ;;  %1446 = vmatprep.mubr.msk.bf16.mxu1 %vm1127_vm9, %v909_v13  ;;  %1445 = vmatprep.mubr.msk.bf16.mxu0 %vm1127_vm9, %v909_v13 }
  0x8f   : > { %820 = vrot.lane.b32.xlu0 %v1707_v45, %s1533_s11  ;;  %822 = vrot.lane.b32.xlu1 %v1711_v49, %s1533_s11 }
  0x90   : > { %v371_v12 = vsel %vm370_vm6, %v366_v10, %v367_v11 }
  0x91   : > { %v373_v14 = vsel %vm372_vm8, %v359_v6, %v371_v12  ;;  %v390_v15 = vpop.permute.xlu0 %389  ;;  %v365_v16 = vpop.permute.xlu1 %364 }
  0x92   : > { %380 = vst [vmem:[#allocation2 + $0xc] sm:$0xcc] %v373_v14  ;;  %v395_v19 = vrot.slane %v390_v15, 4  ;;  %v369_v20 = vrot.slane %v365_v16, 4  ;;  %384 = vst.msk [vmem:[#allocation2 + $0x20] sm:$0xf] %vm338_vm0, %v365_v16 }
  0x93   : > { %898 = vperm.xlu0 %1486, %v895_v23  }
  0x94   : > { %v400_v21 = vsel %vm370_vm6, %v395_v19, %v396_v17  ;;  %v374_v22 = vsel %vm370_vm6, %v368_v18, %v369_v20 }
  0x95   : > { %v401_v24 = vsel %vm398_vm7, %v390_v15, %v400_v21  ;;  %v375_v25 = vsel %vm372_vm8, %v363_v9, %v374_v22  ;;  %v427_v26 = vpop.permute.xlu0 %426  ;;  %v429_v27 = vpop.permute.xlu1 %428  ;;  %v1487_v29 = vld [vmem:[#allocation2 + $0x8] ss:$12 sps:$4 sm:$0xff]  }
  0x96   : > { %408 = vst [vmem:[#allocation2 + $0x30] sm:$0x33] %v401_v24  ;;  %v434_v30 = vrot.slane %v427_v26, 4  ;;  %v435_v31 = vrot.slane %v429_v27, 4  ;;  %448 = vst.msk [vmem:[#allocation2 + $0x38] sm:$0xc] %vm381_vm5, %v429_v27  ;;  %1183 = vmatpush1.bf16.msra.mxu1 %v1487_v29  ;;  %v1406_v43 = vcombine.high %v375_v25, %v1818_v4 }
  0x97   : > { %1184 = vmatprep.subr.bf16.mxu1 %v1527_v50 }
  0x98   : > { %v438_v32 = vsel %vm370_vm6, %v434_v30, %v435_v31 }
  0x99   : > { %v440_v33 = vsel %vm439_vm10, %v427_v26, %v438_v32  ;;  %v431_v34 = vpop.permute.xlu0 %430  ;;  %v433_v35 = vpop.permute.xlu1 %432  ;;  %v843_v36 = vld [vmem:[#allocation2 + $0xc] sm:$0xff] }
  0x9a   : > { %v1488_v37 = vld [vmem:[#allocation2 + $0x20] ss:$12 sps:$4 sm:$0xff]   ;;  %447 = vst [vmem:[#allocation2 + $0x30] sm:$0xcc] %v440_v33  ;;  %v436_v38 = vrot.slane %v431_v34, 4  ;;  %v437_v39 = vrot.slane %v433_v35, 4  ;;  %v1403_v40 = vcombine.high %v1598_v1, %v843_v36  ;;  %v1402_v41 = vcombine.low %v1598_v1, %v843_v36 }
  0x9b   : > { %450 = vst.msk [vmem:[#allocation2 + $0x44] sm:$0xf] %vm338_vm0, %v433_v35  ;;  %1185 = vmatpush1.bf16.msra.mxu1 %v1488_v37  ;;  %v1405_v1 = vcombine.low %v375_v25, %v1818_v4 }
  0x9c   : > { %v441_v42 = vsel %vm370_vm6, %v436_v38, %v437_v39  ;;  %1141 = vmatprep.subr.bf16.mxu0 %v1403_v40  ;;  %1186 = vmatprep.subr.bf16.mxu1 %v1527_v50 }
  0x9d   : > { %v442_v44 = vsel %vm439_vm10, %v431_v34, %v441_v42  ;;  %v452_v45 = vpop.permute.xlu0 %451  ;;  %v454_v46 = vpop.permute.xlu1 %453  ;;  %1142 = vmatpush1.bf16.msra.mxu0 %v1402_v41 }
  0x9e   : > { %v459_v47 = vrot.slane %v452_v45, 4  ;;  %v460_v48 = vrot.slane %v454_v46, 4  ;;  %473 = vst.msk [vmem:[#allocation2 + $0x50] sm:$0xf] %vm338_vm0, %v454_v46  ;;  %1143 = vmatprep.subr.bf16.mxu0 %v1406_v43 }
  0xa0   : > { %v463_v49 = vsel %vm370_vm6, %v459_v47, %v460_v48 }
  0xa1   : > { %v465_v51 = vsel %vm464_vm11, %v452_v45, %v463_v49  ;;  %v456_v52 = vpop.permute.xlu0 %455  ;;  %v458_v53 = vpop.permute.xlu1 %457  ;;  %1144 = vmatpush1.bf16.msra.mxu0 %v1405_v1  ;;  %v849_v55 = vld [vmem:[#allocation2 + $0x30] sm:$0xff] }
  0xa2   : > { %v1489_v54 = vld [vmem:[#allocation2 + $0x38] ss:$12 sps:$4 sm:$0xff]   ;;  %v461_v56 = vrot.slane %v456_v52, 4  ;;  %v462_v57 = vrot.slane %v458_v53, 4  ;;  %475 = vst.msk [vmem:[#allocation2 + $0x5c] sm:$0x3] %vm341_vm1, %v458_v53  ;;  %v1409_v58 = vcombine.high %v849_v55, %v442_v44  ;;  %v1408_v59 = vcombine.low %v849_v55, %v442_v44 }
  0xa3   : > { %1187 = vmatpush1.bf16.msra.mxu1 %v1489_v54 }
  0xa4   : > { %v466_v60 = vsel %vm370_vm6, %v461_v56, %v462_v57  ;;  %1145 = vmatprep.subr.bf16.mxu0 %v1409_v58  ;;  %1188 = vmatprep.subr.bf16.mxu1 %v1527_v50 }
  0xa5   : > { %v467_v61 = vsel %vm464_vm11, %v456_v52, %v466_v60  ;;  %v477_v62 = vpop.permute.xlu0 %476  ;;  %v479_v63 = vpop.permute.xlu1 %478  ;;  %1146 = vmatpush1.bf16.msra.mxu0 %v1408_v59 }
  0xa6   : > { %474 = vst [vmem:[#allocation2 + $0x54] sm:$0x33] %v467_v61  ;;  %v484_v0 = vrot.slane %v477_v62, 4  ;;  %v485_v2 = vrot.slane %v479_v63, 4  ;;  %498 = vst.msk [vmem:[#allocation2 + $0x5c] sm:$0xc] %vm381_vm5, %v479_v63 }
  0xa8   : > { %v488_v3 = vsel %vm370_vm6, %v484_v0, %v485_v2 }
  0xa9   : > { %v490_v4 = vsel %vm489_vm12, %v477_v62, %v488_v3  ;;  %v481_v5 = vpop.permute.xlu0 %480  ;;  %v483_v6 = vpop.permute.xlu1 %482 }
  0xaa   : > { %497 = vst [vmem:[#allocation2 + $0x54] sm:$0xcc] %v490_v4  ;;  %v486_v7 = vrot.slane %v481_v5, 4  ;;  %v487_v9 = vrot.slane %v483_v6, 4  ;;  %500 = vst.msk [vmem:[#allocation2 + $0x68] sm:$0xf] %vm338_vm0, %v483_v6 }
  0xac   : > { %v491_v10 = vsel %vm370_vm6, %v486_v7, %v487_v9 }
  0xad   : > { %v492_v11 = vsel %vm489_vm12, %v481_v5, %v491_v10  ;;  %v510_v12 = vpop.permute.xlu0 %509  ;;  %v512_v13 = vpop.permute.xlu1 %511  ;;  %v1490_v14 = vld [vmem:[#allocation2 + $0x50] ss:$12 sps:$4 sm:$0xff]  }
  0xae   : > { %v517_v15 = vrot.slane %v510_v12, 4  ;;  %v518_v16 = vrot.slane %v512_v13, 4  ;;  %531 = vst.msk [vmem:[#allocation2 + $0x74] sm:$0xf] %vm338_vm0, %v512_v13  ;;  %1189 = vmatpush1.bf16.msra.mxu1 %v1490_v14 }
  0xaf   : > { %1190 = vmatprep.subr.bf16.mxu1 %v1527_v50 }
  0xb0   : > { %v521_v17 = vsel %vm370_vm6, %v517_v15, %v518_v16 }
  0xb1   : > { %v523_v18 = vsel %vm522_vm13, %v510_v12, %v521_v17  ;;  %v514_v19 = vpop.permute.xlu0 %513  ;;  %v516_v20 = vpop.permute.xlu1 %515  ;;  %v855_v21 = vld [vmem:[#allocation2 + $0x54] sm:$0xff] }
  0xb2   : > { %v519_v22 = vrot.slane %v514_v19, 4  ;;  %v520_v23 = vrot.slane %v516_v20, 4  ;;  %533 = vst.msk [vmem:[#allocation2 + $0x80] sm:$0x3] %vm341_vm1, %v516_v20  ;;  %v1412_v24 = vcombine.high %v465_v51, %v855_v21  ;;  %v1411_v25 = vcombine.low %v465_v51, %v855_v21 }
  0xb3   : > { %v1415_v27 = vcombine.high %v492_v11, %v523_v18  ;;  %v1414_v35 = vcombine.low %v492_v11, %v523_v18 }
  0xb4   : > { %v524_v26 = vsel %vm370_vm6, %v519_v22, %v520_v23  ;;  %1147 = vmatprep.subr.bf16.mxu0 %v1412_v24 }
  0xb5   : > { %v525_v29 = vsel %vm522_vm13, %v514_v19, %v524_v26  ;;  %v543_v30 = vpop.permute.xlu0 %542  ;;  %v545_v31 = vpop.permute.xlu1 %544  ;;  %1148 = vmatpush1.bf16.msra.mxu0 %v1411_v25  ;;  %v1491_v32 = vld [vmem:[#allocation2 + $0x68] ss:$12 sps:$4 sm:$0xff]  }
  0xb6   : > { %532 = vst [vmem:[#allocation2 + $0x78] sm:$0x33] %v525_v29  ;;  %v550_v33 = vrot.slane %v543_v30, 4  ;;  %v551_v34 = vrot.slane %v545_v31, 4  ;;  %564 = vst.msk [vmem:[#allocation2 + $0x80] sm:$0xc] %vm381_vm5, %v545_v31  ;;  %1149 = vmatprep.subr.bf16.mxu0 %v1415_v27  ;;  %1191 = vmatpush1.bf16.msra.mxu1 %v1491_v32 }
  0xb7   : > { %1192 = vmatprep.subr.bf16.mxu1 %v1527_v50 }
  0xb8   : > { %v554_v36 = vsel %vm370_vm6, %v550_v33, %v551_v34 }
  0xb9   : > { %v556_v37 = vsel %vm555_vm14, %v543_v30, %v554_v36  ;;  %v547_v38 = vpop.permute.xlu0 %546  ;;  %v549_v39 = vpop.permute.xlu1 %548  ;;  %1150 = vmatpush1.bf16.msra.mxu0 %v1414_v35 }
  0xba   : > { %563 = vst [vmem:[#allocation2 + $0x78] sm:$0xcc] %v556_v37  ;;  %v552_v40 = vrot.slane %v547_v38, 4  ;;  %v553_v41 = vrot.slane %v549_v39, 4  ;;  %566 = vst.msk [vmem:[#allocation2 + $0x8c] sm:$0xf] %vm338_vm0, %v549_v39 }
  0xbc   : > { %v557_v42 = vsel %vm370_vm6, %v552_v40, %v553_v41 }
  0xbd   : > { %v558_v43 = vsel %vm555_vm14, %v547_v38, %v557_v42  ;;  %v568_v44 = vpop.permute.xlu0 %567  ;;  %v570_v45 = vpop.permute.xlu1 %569 }
  0xbe   : > { %v575_v46 = vrot.slane %v568_v44, 4  ;;  %v576_v47 = vrot.slane %v570_v45, 4  ;;  %589 = vst.msk [vmem:[#allocation2 + $0x98] sm:$0xf] %vm338_vm0, %v570_v45 }
  0xc0   : > { %v579_v48 = vsel %vm370_vm6, %v575_v46, %v576_v47 }
  0xc1   : > { %v581_v1 = vsel %vm580_vm15, %v568_v44, %v579_v48  ;;  %v572_v49 = vpop.permute.xlu0 %571  ;;  %v574_v51 = vpop.permute.xlu1 %573  ;;  %v1492_v52 = vld [vmem:[#allocation2 + $0x80] ss:$12 sps:$4 sm:$0xff]   ;;  %v861_v53 = vld [vmem:[#allocation2 + $0x78] sm:$0xff] }
  0xc2   : > { %v577_v54 = vrot.slane %v572_v49, 4  ;;  %v578_v55 = vrot.slane %v574_v51, 4  ;;  %591 = vst.msk [vmem:[#allocation2 + $0xa4] sm:$0x3] %vm341_vm1, %v574_v51  ;;  %v1418_v56 = vcombine.high %v861_v53, %v558_v43  ;;  %v1417_v57 = vcombine.low %v861_v53, %v558_v43  ;;  %1193 = vmatpush1.bf16.msra.mxu1 %v1492_v52 }
  0xc3   : > { %1194 = vmatprep.subr.bf16.mxu1 %v1527_v50 }
  0xc4   : > { %v582_v58 = vsel %vm370_vm6, %v577_v54, %v578_v55  ;;  %1151 = vmatprep.subr.bf16.mxu0 %v1418_v56 }
  0xc5   : > { %v583_v59 = vsel %vm580_vm15, %v572_v49, %v582_v58  ;;  %v617_v60 = vpop.permute.xlu0 %616  ;;  %v619_v61 = vpop.permute.xlu1 %618  ;;  %1152 = vmatpush1.bf16.msra.mxu0 %v1417_v57 }
  0xc6   : > { %590 = vst [vmem:[#allocation2 + $0x9c] sm:$0x33] %v583_v59  ;;  %v624_v62 = vrot.slane %v617_v60, 4  ;;  %v625_v63 = vrot.slane %v619_v61, 4  ;;  %637 = vst.msk [vmem:[#allocation2 + $0xbc] sm:$0xf] %vm338_vm0, %v619_v61 }
  0xc8   : > { %v628_v0 = vsel %vm370_vm6, %v624_v62, %v625_v63 }
  0xc9   : > { %v629_v2 = vsel %vm372_vm8, %v617_v60, %v628_v0  ;;  %v621_v3 = vpop.permute.xlu0 %620  ;;  %v623_v4 = vpop.permute.xlu1 %622  ;;  %v1493_v5 = vld [vmem:[#allocation2 + $0x98] ss:$12 sps:$4 sm:$0xff]  }
  0xca   : > { %v626_v6 = vrot.slane %v621_v3, 4  ;;  %v627_v7 = vrot.slane %v623_v4, 4  ;;  %639 = vst.msk [vmem:[#allocation2 + $0xc8] sm:$0x3] %vm341_vm1, %v623_v4  ;;  %1195 = vmatpush1.bf16.msra.mxu1 %v1493_v5  ;;  %v1424_v20 = vcombine.high %v1662_v28, %v629_v2  ;;  %v1423_v26 = vcombine.low %v1662_v28, %v629_v2 }
  0xcb   : > { %1196 = vmatprep.subr.bf16.mxu1 %v1527_v50 }
  0xcc   : > { %v630_v9 = vsel %vm370_vm6, %v626_v6, %v627_v7 }
  0xcd   : > { %v631_v10 = vsel %vm372_vm8, %v621_v3, %v630_v9  ;;  %v641_v11 = vpop.permute.xlu0 %640  ;;  %v643_v12 = vpop.permute.xlu1 %642  ;;  %v867_v13 = vld [vmem:[#allocation2 + $0x9c] sm:$0xff] }
  0xce   : > { %v1494_v14 = vld [vmem:[#allocation2 + $0xb0] ss:$12 sps:$4 sm:$0xff]   ;;  %638 = vst [vmem:[#allocation2 + $0xc0] sm:$0x33] %v631_v10  ;;  %v648_v15 = vrot.slane %v641_v11, 4  ;;  %v649_v16 = vrot.slane %v643_v12, 4  ;;  %v1421_v17 = vcombine.high %v581_v1, %v867_v13  ;;  %v1420_v18 = vcombine.low %v581_v1, %v867_v13 }
  0xcf   : > { %661 = vst.msk [vmem:[#allocation2 + $0xc8] sm:$0xc] %vm381_vm5, %v643_v12  ;;  %1197 = vmatpush1.bf16.msra.mxu1 %v1494_v14 }
  0xd0   : > { %v652_v19 = vsel %vm370_vm6, %v648_v15, %v649_v16  ;;  %1153 = vmatprep.subr.bf16.mxu0 %v1421_v17  ;;  %1198 = vmatprep.subr.bf16.mxu1 %v1527_v50 }
  0xd1   : > { %v653_v21 = vsel %vm398_vm7, %v641_v11, %v652_v19  ;;  %v645_v22 = vpop.permute.xlu0 %644  ;;  %v647_v23 = vpop.permute.xlu1 %646  ;;  %1154 = vmatpush1.bf16.msra.mxu0 %v1420_v18 }
  0xd2   : > { %660 = vst [vmem:[#allocation2 + $0xc0] sm:$0xcc] %v653_v21  ;;  %v650_v24 = vrot.slane %v645_v22, 4  ;;  %v651_v25 = vrot.slane %v647_v23, 4  ;;  %663 = vst.msk [vmem:[#allocation2 + $0xd4] sm:$0xf] %vm338_vm0, %v647_v23  ;;  %1155 = vmatprep.subr.bf16.mxu0 %v1424_v20 }
  0xd4   : > { %v654_v27 = vsel %vm370_vm6, %v650_v24, %v651_v25 }
  0xd5   : > { %v655_v29 = vsel %vm398_vm7, %v645_v22, %v654_v27  ;;  %v673_v30 = vpop.permute.xlu0 %672  ;;  %v675_v31 = vpop.permute.xlu1 %674  ;;  %1156 = vmatpush1.bf16.msra.mxu0 %v1423_v26 }
  0xd6   : > { %v680_v32 = vrot.slane %v673_v30, 4  ;;  %v681_v33 = vrot.slane %v675_v31, 4  ;;  %693 = vst.msk [vmem:[#allocation2 + $0xe0] sm:$0xf] %vm338_vm0, %v675_v31 }
  0xd8   : > { %v684_v34 = vsel %vm370_vm6, %v680_v32, %v681_v33 }
  0xd9   : > { %v685_v35 = vsel %vm439_vm10, %v673_v30, %v684_v34  ;;  %v677_v36 = vpop.permute.xlu0 %676  ;;  %v679_v37 = vpop.permute.xlu1 %678  ;;  %v1495_v38 = vld [vmem:[#allocation2 + $0xc8] ss:$12 sps:$4 sm:$0xff]   ;;  %v873_v39 = vld [vmem:[#allocation2 + $0xc0] sm:$0xff] }
  0xda   : > { %v682_v28 = vrot.slane %v677_v36, 4  ;;  %v683_v40 = vrot.slane %v679_v37, 4  ;;  %695 = vst.msk [vmem:[#allocation2 + $0xec] sm:$0x3] %vm341_vm1, %v679_v37  ;;  %v1427_v41 = vcombine.high %v873_v39, %v655_v29  ;;  %v1426_v42 = vcombine.low %v873_v39, %v655_v29  ;;  %1199 = vmatpush1.bf16.msra.mxu1 %v1495_v38 }
  0xdb   : > { %1200 = vmatprep.subr.bf16.mxu1 %v1527_v50 }
  0xdc   : > { %v686_v43 = vsel %vm370_vm6, %v682_v28, %v683_v40  ;;  %1157 = vmatprep.subr.bf16.mxu0 %v1427_v41 }
  0xdd   : > { %v687_v44 = vsel %vm439_vm10, %v677_v36, %v686_v43  ;;  %v705_v45 = vpop.permute.xlu0 %704  ;;  %v707_v46 = vpop.permute.xlu1 %706  ;;  %1158 = vmatpush1.bf16.msra.mxu0 %v1426_v42 }
  0xde   : > { %694 = vst [vmem:[#allocation2 + $0xe4] sm:$0x33] %v687_v44  ;;  %v712_v47 = vrot.slane %v705_v45, 4  ;;  %v713_v48 = vrot.slane %v707_v46, 4  ;;  %725 = vst.msk [vmem:[#allocation2 + $0xec] sm:$0xc] %vm381_vm5, %v707_v46 }
  0xe0   : > { %v716_v1 = vsel %vm370_vm6, %v712_v47, %v713_v48 }
  0xe1   : > { %v717_v49 = vsel %vm464_vm11, %v705_v45, %v716_v1  ;;  %v709_v51 = vpop.permute.xlu0 %708  ;;  %v711_v52 = vpop.permute.xlu1 %710 }
  0xe2   : > { %724 = vst [vmem:[#allocation2 + $0xe4] sm:$0xcc] %v717_v49  ;;  %v714_v53 = vrot.slane %v709_v51, 4  ;;  %v715_v54 = vrot.slane %v711_v52, 4  ;;  %727 = vst.msk [vmem:[#allocation2 + $0xf8] sm:$0xf] %vm338_vm0, %v711_v52 }
  0xe4   : > { %v718_v55 = vsel %vm370_vm6, %v714_v53, %v715_v54 }
  0xe5   : > { %v719_v56 = vsel %vm464_vm11, %v709_v51, %v718_v55  ;;  %v729_v57 = vpop.permute.xlu0 %728  ;;  %v731_v58 = vpop.permute.xlu1 %730  ;;  %v1496_v59 = vld [vmem:[#allocation2 + $0xe0] ss:$12 sps:$4 sm:$0xff]  }
  0xe6   : > { %v736_v60 = vrot.slane %v729_v57, 4  ;;  %v737_v61 = vrot.slane %v731_v58, 4  ;;  %749 = vst.msk [vmem:[#allocation2 + $0x104] sm:$0xf] %vm338_vm0, %v731_v58  ;;  %1201 = vmatpush1.bf16.msra.mxu1 %v1496_v59 }
  0xe7   : > { %1202 = vmatprep.subr.bf16.mxu1 %v1527_v50 }
  0xe8   : > { %v740_v62 = vsel %vm370_vm6, %v736_v60, %v737_v61 }
  0xe9   : > { %v741_v63 = vsel %vm489_vm12, %v729_v57, %v740_v62  ;;  %v733_v0 = vpop.permute.xlu0 %732  ;;  %v735_v2 = vpop.permute.xlu1 %734  ;;  %v879_v3 = vld [vmem:[#allocation2 + $0xe4] sm:$0xff] }
  0xea   : > { %v738_v4 = vrot.slane %v733_v0, 4  ;;  %v739_v5 = vrot.slane %v735_v2, 4  ;;  %751 = vst.msk [vmem:[#allocation2 + $0x110] sm:$0x3] %vm341_vm1, %v735_v2  ;;  %v1430_v6 = vcombine.high %v685_v35, %v879_v3  ;;  %v1429_v7 = vcombine.low %v685_v35, %v879_v3 }
  0xeb   : > { %v1433_v10 = vcombine.high %v719_v56, %v741_v63  ;;  %v1432_v17 = vcombine.low %v719_v56, %v741_v63 }
  0xec   : > { %v742_v9 = vsel %vm370_vm6, %v738_v4, %v739_v5  ;;  %1159 = vmatprep.subr.bf16.mxu0 %v1430_v6  ;;  %v1534_v4 = vmov 1983009808   ;;  %v1244_v6 = vlaneseq }
  0xed   : > { %v743_v11 = vsel %vm489_vm12, %v733_v0, %v742_v9  ;;  %v769_v12 = vpop.permute.xlu0 %768  ;;  %v771_v13 = vpop.permute.xlu1 %770  ;;  %1160 = vmatpush1.bf16.msra.mxu0 %v1429_v7  ;;  %v1497_v14 = vld [vmem:[#allocation2 + $0xf8] ss:$12 sps:$4 sm:$0xff]   ;;  %v1242_v5 = vunpack.c.l.s4 %v1534_v4 }
  0xee   : > { %750 = vst [vmem:[#allocation2 + $0x108] sm:$0x33] %v743_v11  ;;  %v776_v15 = vrot.slane %v769_v12, 4  ;;  %v777_v16 = vrot.slane %v771_v13, 4  ;;  %789 = vst.msk [vmem:[#allocation2 + $0x110] sm:$0xc] %vm381_vm5, %v771_v13  ;;  %1161 = vmatprep.subr.bf16.mxu0 %v1433_v10  ;;  %1203 = vmatpush1.bf16.msra.mxu1 %v1497_v14 }
  0xef   : > { %1204 = vmatprep.subr.bf16.mxu1 %v1527_v50  ;;  %v1225_v0 = vld [vmem:[%s320_s23] sm:$0x3f]  ;;  %v1245_v13 = vshrl.u32 %v1244_v6, 7 }
  0xf0   : > { %v780_v18 = vsel %vm370_vm6, %v776_v15, %v777_v16  ;;  %v1227_v3 = vunpack.c.h.bf16 %v1225_v0  ;;  %v1226_v11 = vunpack.c.l.bf16 %v1225_v0 }
  0xf1   : > { %v781_v19 = vsel %vm522_vm13, %v769_v12, %v780_v18  ;;  %v773_v20 = vpop.permute.xlu0 %772  ;;  %v775_v21 = vpop.permute.xlu1 %774  ;;  %1162 = vmatpush1.bf16.msra.mxu0 %v1432_v17 }
  0xf2   : > { %788 = vst [vmem:[#allocation2 + $0x108] sm:$0xcc] %v781_v19  ;;  %v778_v22 = vrot.slane %v773_v20, 4  ;;  %v779_v23 = vrot.slane %v775_v21, 4  ;;  %791 = vst.msk [vmem:[#allocation2 + $0x11c] sm:$0xf] %vm338_vm0, %v775_v21  ;;  %v1229_v19 = vcombine.high %v1226_v11, %v1226_v11 }
  0xf4   : > { %v782_v24 = vsel %vm370_vm6, %v778_v22, %v779_v23 }
  0xf5   : > { %v783_v25 = vsel %vm522_vm13, %v773_v20, %v782_v24  ;;  %v793_v26 = vpop.permute.xlu0 %792  ;;  %v795_v27 = vpop.permute.xlu1 %794 }
  0xf6   : > { %v800_v29 = vrot.slane %v793_v26, 4  ;;  %v801_v30 = vrot.slane %v795_v27, 4  ;;  %813 = vst.msk [vmem:[#allocation2 + $0x128] sm:$0xf] %vm338_vm0, %v795_v27 }
  0xf8   : > { %v804_v31 = vsel %vm370_vm6, %v800_v29, %v801_v30 }
  0xf9   : > { %v805_v32 = vsel %vm555_vm14, %v793_v26, %v804_v31  ;;  %v797_v33 = vpop.permute.xlu0 %796  ;;  %v799_v34 = vpop.permute.xlu1 %798  ;;  %v1498_v35 = vld [vmem:[#allocation2 + $0x110] ss:$12 sps:$4 sm:$0xff]   ;;  %v885_v36 = vld [vmem:[#allocation2 + $0x108] sm:$0xff] }
  0xfa   : > { %v802_v37 = vrot.slane %v797_v33, 4  ;;  %v803_v38 = vrot.slane %v799_v34, 4  ;;  %815 = vst.msk [vmem:[#allocation2 + $0x134] sm:$0x3] %vm341_vm1, %v799_v34  ;;  %v1436_v39 = vcombine.high %v885_v36, %v783_v25  ;;  %v1435_v28 = vcombine.low %v885_v36, %v783_v25  ;;  %1205 = vmatpush1.bf16.msra.mxu1 %v1498_v35 }
  0xfb   : > { %1206 = vmatprep.subr.bf16.mxu1 %v1527_v50 }
  0xfc   : > { %v806_v40 = vsel %vm370_vm6, %v802_v37, %v803_v38  ;;  %1163 = vmatprep.subr.bf16.mxu0 %v1436_v39 }
  0xfd   : > { %v807_v41 = vsel %vm555_vm14, %v797_v33, %v806_v40  ;;  %v817_v42 = vpop.permute.xlu0 %816  ;;  %v819_v43 = vpop.permute.xlu1 %818  ;;  %1164 = vmatpush1.bf16.msra.mxu0 %v1435_v28 }
  0xfe   : > { %814 = vst [vmem:[#allocation2 + $0x12c] sm:$0x33] %v807_v41  ;;  %v824_v44 = vrot.slane %v817_v42, 4  ;;  %v825_v45 = vrot.slane %v819_v43, 4  ;;  %837 = vst.msk [vmem:[#allocation2 + $0x134] sm:$0xc] %vm381_vm5, %v819_v43 }
 0x100   : > { %v828_v46 = vsel %vm370_vm6, %v824_v44, %v825_v45 }
 0x101   : > { %v829_v47 = vsel %vm580_vm15, %v817_v42, %v828_v46  ;;  %v821_v48 = vpop.permute.xlu0 %820  ;;  %v823_v1 = vpop.permute.xlu1 %822 }
 0x102   : > { %836 = vst [vmem:[#allocation2 + $0x12c] sm:$0xcc] %v829_v47  ;;  %v826_v49 = vrot.slane %v821_v48, 4  ;;  %v827_v51 = vrot.slane %v823_v1, 4  ;;  %839 = vst.msk [vmem:[#allocation2 + $0x140] sm:$0xf] %vm338_vm0, %v823_v1 }
 0x103   : > { %vm1258_vm0 = vcmask 1043458  }
 0x104   : > { %v830_v52 = vsel %vm370_vm6, %v826_v49, %v827_v51  ;;  %vm1259_vm1 = vmor %vm1258_vm0, %vm347_vm2 }
 0x105   : > { %v831_v53 = vsel %vm580_vm15, %v821_v48, %v830_v52  ;;  %v1499_v54 = vld [vmem:[#allocation2 + $0x128] ss:$12 sps:$4 sm:$0xff]   ;;  %vm1261_vm4 = vmor %vm1260_vm3, %vm1259_vm1 }
 0x106   : > { %1207 = vmatpush1.bf16.msra.mxu1 %v1499_v54  ;;  %v1442_v59 = vcombine.high %v831_v53, %v831_v53  ;;  %v1441_v61 = vcombine.low %v831_v53, %v831_v53 }
 0x107   : > { %1208 = vmatprep.subr.bf16.mxu1 %v1527_v50 }
 0x108   : > { %v1133_v62 = vsel %vm370_vm6, %v1441_v61, 0 }
 0x109   : > { %v891_v55 = vld [vmem:[#allocation2 + $0x12c] sm:$0xff]  ;;  %v1500_v56 = vld [vmem:[#allocation2 + $0x140] ss:$0 sps:$4 sm:$0xff]  }
 0x10a   : > { %v1439_v57 = vcombine.high %v805_v32, %v891_v55  ;;  %v1438_v58 = vcombine.low %v805_v32, %v891_v55  ;;  %v1139_v60 = vsel %vm370_vm6, %v1500_v56, 0 }
 0x10b   : > { %1209 = vmatpush1.bf16.msra.mxu1 %v1139_v60 }
 0x10c   : > { %1165 = vmatprep.subr.bf16.mxu0 %v1439_v57 }
 0x10d   : > { %1166 = vmatpush1.bf16.msra.mxu0 %v1438_v58 }
 0x10e   : > { %1444 = vmatprep.subr.msk.bf16.mxu0 %vm370_vm6, %v1442_v59  ;;  %1215 = vmatmul.mubr.bf16.vlgmr.msra.gmra.mrb[0].mxu1 %v1833_v8 }
 0x111   : > { %1168 = vmatpush1.bf16.msra.mxu0 %v1133_v62 }
 0x112   : > { %v899_v50 = vpop.permute.xlu0 %898 }
 0x114   : > { %1174 = vmatmul.mubr.bf16.vlgmr.msra.gmra.mrb[0].mxu0 %v1833_v8  ;;  %v1243_v8 = vunpack.c.0.s8 %v1242_v5 }
 0x116   : > { %v1246_v23 = vsub.s32 %v1243_v8, %v1245_v13 }
 0x1e1   : > { %v1216_v63 = vpop.f32.mrb[0].mxu1 }
 0x1e2   : > { %v1218_v2 = vpop.f32.mrb[1].mxu1  ;;  %v1217_v7 = vadd.f32 %v1216_v63, %v899_v50 }
 0x1e3   : > { %v1219_v9 = vpop.f32.mrb[2].mxu1 }
 0x1e4   : > { %v1224_v10 = vmax.f32 %v1217_v7, 0.0  ;;  %v1220_v12 = vpop.f32.mrb[3].mxu1 }
 0x1e6   : > { %v1233_v14 = vadd.f32 %v1227_v3, %v1224_v10 }
 0x1e7   : > { %v1175_v15 = vpop.f32.mrb[0].mxu0 }
 0x1e8   : > { %v1176_v16 = vadd.f32 %v1175_v15, %v899_v50  ;;  %v1177_v17 = vpop.f32.mrb[1].mxu0  ;;  %v1236_v24 = vpack.c.bf16 %v1233_v14, %v1233_v14 }
 0x1e9   : > { %v1178_v18 = vadd.f32 %v1177_v17, %v899_v50  ;;  %v1179_v20 = vpop.f32.mrb[2].mxu0 }
 0x1ea   : > { %v1222_v21 = vmax.f32 %v1176_v16, 0.0  ;;  %v1180_v22 = vpop.f32.mrb[3].mxu0  ;;  %v1254_v29 = vrot.slane %v1236_v24, %v1246_v23 }
 0x1eb   : > { %v1223_v25 = vmax.f32 %v1178_v18, 0.0 }
 0x1ec   : > { %v1231_v26 = vadd.f32 %v1226_v11, %v1222_v21 }
 0x1ed   : > { %v1232_v27 = vadd.f32 %v1229_v19, %v1223_v25 }
 0x1ef   : > { %v1447_v30 = vpack.c.bf16 %v1232_v27, %v1231_v26 }
 0x1f1   : > { %v1247_v31 = vrot.slane %v1447_v30, %v1246_v23 }
 0x1f3   : > { %v1255_v32 = vcombine.low %v1247_v31, %v1254_v29 }
 0x1f5   : > { %1262 = vst.msk [vmem:[%s330_s26] sm:$0x3f] %vm1261_vm4, %v1255_v32 }
 0x1f6 PF: > { %s15_s20 = sadd.s32 1, %s1523_s20   ;;  %s1984_s18 = smov %s1519_s19 }
 0x1f7   : > { %p12_p5 = scmp.ge.s32.totalorder %s15_s20, 4   ;;  %s1985_s19 = smov %s1987_s21 }
 0x1f9   :  { %14 = sbr.rel (!%p12_p5) target bundleno = 2 (0x2), region = 76 }

</bundles_post_ra>
